<compile_context>
chip_gen: v7x
topology: tpu7x:2x2x1
jax: 0.10.0
libtpu: 0.0.40
codegen_flags: <defaults>
</compile_context>

<pallas_src>
import functools

import jax
import jax.numpy as jnp
from jax.experimental import pallas as pl
from jax.experimental.pallas import tpu as pltpu


def _round_up(x, m):
    return (x + m - 1) // m * m


# --------------------------------------------------------------------------- #
# Fused, layer-pipelined 2-layer GRU kernel (single invocation, no grid).
# --------------------------------------------------------------------------- #
def _encoder_gru_kernel(gi0_ref,                     # (T, Bp, 3*Hp) f32
                        w0_hh_ref, b0_hn_ref,        # (Hp, 3*Hp) bf16 / (1, Hp) f32
                        w1_ih_ref, b1_ih_ref,        # (Hp, 3*Hp) bf16 / (1, 3*Hp) f32
                        w1_hh_ref, b1_hn_ref,        # (Hp, 3*Hp) bf16 / (1, Hp) f32
                        h0_ref,                      # (2, Bp, Hp) f32
                        out_ref, hN_ref,             # (T, Bp, Hp) / (2, Bp, Hp) f32
                        *, seq_len, hidden_pad, compute_dtype, unroll):
    Hp = hidden_pad

    # Loop-invariant bias rows, loaded once (hoisted out of the loop).
    b0_hn = b0_hn_ref[...]          # (1, Hp)
    b1_ih = b1_ih_ref[...]          # (1, 3*Hp) = [b1_ir+b1_hr | b1_iz+b1_hz | b1_in]
    b1_hn = b1_hn_ref[...]          # (1, Hp)

    def gru_cell(h_prev, gi, w_hh_ref, b_hn):
        """One GRU step.  gi = packed (Bp, 3*Hp) input gates with folded
        biases.  ONE packed (Bp,Hp)x(Hp,3*Hp) MXU issue per step; gate slices
        at static 128-multiples; sigmoid/tanh/gating in f32."""
        h_c = h_prev.astype(compute_dtype)
        gh = jnp.dot(h_c, w_hh_ref[...], preferred_element_type=jnp.float32)
        r = jax.nn.sigmoid(gi[:, 0:Hp] + gh[:, 0:Hp])
        z = jax.nn.sigmoid(gi[:, Hp:2 * Hp] + gh[:, Hp:2 * Hp])
        n = jnp.tanh(gi[:, 2 * Hp:3 * Hp] + r * (gh[:, 2 * Hp:3 * Hp] + b_hn))
        return (1.0 - z) * n + z * h_prev

    def layer1_gates(h0_t):
        """Layer-1 packed input projection of a fresh layer-0 hidden state."""
        h_c = h0_t.astype(compute_dtype)
        return jnp.dot(h_c, w1_ih_ref[...],
                       preferred_element_type=jnp.float32) + b1_ih

    # ----- Prologue: layer-0 step 0 and its layer-1 input projection.
    h0_t = gru_cell(h0_ref[0], gi0_ref[0], w0_hh_ref, b0_hn)
    gi1_t = layer1_gates(h0_t)

    # ----- Pipelined main loop (1-step skew): at iteration t, layer-1 cell
    # t-1 (consumes gi1 from the previous iteration) and layer-0 cell t are
    # independent, so the two serial recurrence chains overlap.
    def step(t, carry):
        h0_prev, h1_prev, gi1_prev = carry
        h1_new = gru_cell(h1_prev, gi1_prev, w1_hh_ref, b1_hn)
        out_ref[t - 1] = h1_new
        h0_new = gru_cell(h0_prev, gi0_ref[t], w0_hh_ref, b0_hn)
        gi1_new = layer1_gates(h0_new)
        return h0_new, h1_new, gi1_new

    h0_last, h1_prev, gi1_last = jax.lax.fori_loop(
        1, seq_len, step, (h0_t, h0_ref[1], gi1_t), unroll=unroll)

    # ----- Epilogue: final layer-1 step.
    h1_last = gru_cell(h1_prev, gi1_last, w1_hh_ref, b1_hn)
    out_ref[seq_len - 1] = h1_last
    hN_ref[0] = h0_last
    hN_ref[1] = h1_last


# --------------------------------------------------------------------------- #
# Parameters (PyTorch-equivalent raw params + kernel-ready packed params).
# --------------------------------------------------------------------------- #
class EncoderParams:
    def __init__(self, input_dim, hidden_dim, n_layers=2, bidirectional=False,
                 key=None, compute_dtype=jnp.bfloat16):
        assert n_layers == 2, "fused kernel implements the module default n_layers=2"
        assert not bidirectional, "bidirectional=False (module default)"
        self.input_dim = input_dim
        self.hidden_dim = hidden_dim
        self.n_layers = n_layers
        self.compute_dtype = compute_dtype
        self.hidden_pad = _round_up(hidden_dim, 128)   # lane-dense last dim

        key = jax.random.PRNGKey(0) if key is None else key
        H, Hp = hidden_dim, self.hidden_pad
        bound = 1.0 / float(H) ** 0.5

        k_emb, key = jax.random.split(key)
        embedding = jax.random.normal(k_emb, (input_dim, H), jnp.float32)

        raw_layers = []
        for _ in range(n_layers):
            k1, k2, k3, k4, key = jax.random.split(key, 5)
            raw_layers.append(dict(
                w_ih=jax.random.uniform(k1, (3 * H, H), jnp.float32, -bound, bound),
                w_hh=jax.random.uniform(k2, (3 * H, H), jnp.float32, -bound, bound),
                b_ih=jax.random.uniform(k3, (3 * H,), jnp.float32, -bound, bound),
                b_hh=jax.random.uniform(k4, (3 * H,), jnp.float32, -bound, bound),
            ))
        self.raw = dict(embedding=embedding, layers=raw_layers)

        # ---- Kernel-ready params: split gates, transpose, zero-pad to Hp,
        # pack the 3 gates side-by-side (r|z|n) on the lane axis, fold the
        # layer-0 input projection (and foldable biases) into one embedding
        # gate table, cast matmul weights to compute_dtype (tables stay f32).
        def splitg(a):
            return a[0:H], a[H:2 * H], a[2 * H:3 * H]

        def pad_sq(w):       # (H,H) -> (Hp,Hp); zero pad keeps padded h == 0
            return jnp.pad(w, ((0, Hp - H), (0, Hp - H)))

        def pad_cols(a):     # (V,H) -> (V,Hp)
            return jnp.pad(a, ((0, 0), (0, Hp - H)))

        def pad_row(b):      # (H,) -> (1,Hp)
            return jnp.pad(b, (0, Hp - H)).reshape(1, Hp)

        def pack3(a, b, c):  # concat gates on the lane axis
            return jnp.concatenate([a, b, c], axis=1)

        l0, l1 = raw_layers
        w0_ir, w0_iz, w0_in = splitg(l0["w_ih"])
        w0_hr, w0_hz, w0_hn = splitg(l0["w_hh"])
        b0_ir, b0_iz, b0_in = splitg(l0["b_ih"])
        b0_hr, b0_hz, b0_hn = splitg(l0["b_hh"])

        # take(E, x) @ W^T == take(E @ W^T, x): fused layer-0 gate table.
        self.emb_gates = pack3(
            pad_cols(embedding @ w0_ir.T + b0_ir + b0_hr),
            pad_cols(embedding @ w0_iz.T + b0_iz + b0_hz),
            pad_cols(embedding @ w0_in.T + b0_in))          # (V, 3*Hp) f32

        self.w0_hh = pack3(pad_sq(w0_hr.T), pad_sq(w0_hz.T),
                           pad_sq(w0_hn.T)).astype(compute_dtype)  # (Hp, 3*Hp)
        self.b0_hn = pad_row(b0_hn)                                 # (1, Hp)

        w1_ir, w1_iz, w1_in = splitg(l1["w_ih"])
        w1_hr, w1_hz, w1_hn = splitg(l1["w_hh"])
        b1_ir, b1_iz, b1_in = splitg(l1["b_ih"])
        b1_hr, b1_hz, b1_hn = splitg(l1["b_hh"])

        self.w1_ih = pack3(pad_sq(w1_ir.T), pad_sq(w1_iz.T),
                           pad_sq(w1_in.T)).astype(compute_dtype)   # (Hp, 3*Hp)
        self.b1_ih = pack3(pad_row(b1_ir + b1_hr), pad_row(b1_iz + b1_hz),
                           pad_row(b1_in))                          # (1, 3*Hp)
        self.w1_hh = pack3(pad_sq(w1_hr.T), pad_sq(w1_hz.T),
                           pad_sq(w1_hn.T)).astype(compute_dtype)   # (Hp, 3*Hp)
        self.b1_hn = pad_row(b1_hn)                                 # (1, Hp)


# --------------------------------------------------------------------------- #
# Forward pass (matches Encoder.forward semantics, eval mode).
# --------------------------------------------------------------------------- #
def encoder_forward(params: EncoderParams, x, hidden=None):
    """x: (seq_len, batch) int32 tokens.  Returns (output, hidden) like the
    PyTorch module: output (T, B, H), hidden (n_layers, B, H)."""
    T, B = x.shape
    H, Hp = params.hidden_dim, params.hidden_pad
    Bp = _round_up(B, 8)

    # ONE gather on the fused (vocab, 3*Hp) gate table + ONE batch pad:
    # the gather directly yields the packed layer-0 input gates.
    gi0 = jnp.take(params.emb_gates, x, axis=0)          # (T, B, 3*Hp)
    gi0 = jnp.pad(gi0, ((0, 0), (0, Bp - B), (0, 0)))    # (T, Bp, 3*Hp)

    if hidden is None:
        h0 = jnp.zeros((params.n_layers, Bp, Hp), jnp.float32)
    else:
        h0 = jnp.pad(hidden.astype(jnp.float32),
                     ((0, 0), (0, Bp - B), (0, Hp - H)))

    kernel = functools.partial(
        _encoder_gru_kernel, seq_len=T, hidden_pad=Hp,
        compute_dtype=params.compute_dtype,
        unroll=max(1, min(8, T - 1)))
    vmem = pl.BlockSpec(memory_space=pltpu.MemorySpace.VMEM)

    # Explicit VMEM budget: actual residency * 2 + headroom, floored at the
    # default 32 MiB so small shapes never under-provision.
    arg_bytes = sum(int(a.size) * a.dtype.itemsize for a in
                    (gi0, params.w0_hh, params.b0_hn, params.w1_ih,
                     params.b1_ih, params.w1_hh, params.b1_hn, h0))
    out_bytes = (T * Bp * Hp + params.n_layers * Bp * Hp) * 4
    vmem_limit = int(min(120 << 20,
                         max(32 << 20, 2 * (arg_bytes + out_bytes) + (2 << 20))))

    out_p, hN_p = pl.pallas_call(
        kernel,
        out_shape=(
            jax.ShapeDtypeStruct((T, Bp, Hp), jnp.float32),
            jax.ShapeDtypeStruct((params.n_layers, Bp, Hp), jnp.float32),
        ),
        in_specs=[vmem] * 8,
        out_specs=(vmem, vmem),
        compiler_params=pltpu.CompilerParams(vmem_limit_bytes=vmem_limit),
    )(gi0,
      params.w0_hh, params.b0_hn,
      params.w1_ih, params.b1_ih, params.w1_hh, params.b1_hn,
      h0)

    output = out_p[:, :B, :H]
    hidden_out = hN_p[:, :B, :H]
    # self.dropout(hidden): eval-mode dropout == identity.
    # bidirectional == False -> no fc branch.
    return output, hidden_out


# --------------------------------------------------------------------------- #
# Pure-JAX f32 reference (PyTorch GRU math, unpadded raw params).
# --------------------------------------------------------------------------- #
def encoder_reference(params: EncoderParams, x, hidden=None):
    T, B = x.shape
    H = params.hidden_dim
    emb = jnp.take(params.raw["embedding"], x, axis=0)
    h = (jnp.zeros((params.n_layers, B, H), jnp.float32)
         if hidden is None else hidden)
    layer_in = emb
    finals = []
    for l, p in enumerate(params.raw["layers"]):
        h_t = h[l]
        outs = []
        for t in range(T):
            gi = layer_in[t] @ p["w_ih"].T + p["b_ih"]
            gh = h_t @ p["w_hh"].T + p["b_hh"]
            i_r, i_z, i_n = gi[:, :H], gi[:, H:2 * H], gi[:, 2 * H:]
            h_r, h_z, h_n = gh[:, :H], gh[:, H:2 * H], gh[:, 2 * H:]
            r = jax.nn.sigmoid(i_r + h_r)
            z = jax.nn.sigmoid(i_z + h_z)
            n = jnp.tanh(i_n + r * h_n)
            h_t = (1.0 - z) * n + z * h_t
            outs.append(h_t)
        layer_in = jnp.stack(outs, axis=0)
        finals.append(h_t)
    return layer_in, jnp.stack(finals, axis=0)


if __name__ == "__main__":
    input_dim = 16     # vocab size
    hidden_dim = 32
    n_layers = 2
    seq_len = 8
    batch = 4

    params = EncoderParams(input_dim, hidden_dim, n_layers=n_layers,
                           bidirectional=False, key=jax.random.PRNGKey(0))

    x = jax.random.randint(jax.random.PRNGKey(0), (seq_len, batch), 0,
                           input_dim, jnp.int32)

    output, hidden = encoder_forward(params, x)
    jax.block_until_ready(output)
    jax.block_until_ready(hidden)

    assert output.shape == (seq_len, batch, hidden_dim)
    assert hidden.shape == (n_layers, batch, hidden_dim)

    # Correctness check vs. f32 reference (loose tolerance absorbs the
    # intentional bf16 matmul cast; expected max-abs-diff ~1e-2).
    ref_out, ref_hidden = encoder_reference(params, x)
    assert float(jnp.max(jnp.abs(output - ref_out))) < 0.15
    assert float(jnp.max(jnp.abs(hidden - ref_hidden))) < 0.15

    print("KERNEL_OK")
</pallas_src>

<mosaic_0001>
module attributes {stable_mosaic.version = 11 : i64} {
  func.func @_encoder_gru_kernel(%arg0: memref<8x8x384xf32, #tpu.memory_space<vmem>>, %arg1: memref<128x384xbf16, #tpu.memory_space<vmem>>, %arg2: memref<1x128xf32, #tpu.memory_space<vmem>>, %arg3: memref<128x384xbf16, #tpu.memory_space<vmem>>, %arg4: memref<1x384xf32, #tpu.memory_space<vmem>>, %arg5: memref<128x384xbf16, #tpu.memory_space<vmem>>, %arg6: memref<1x128xf32, #tpu.memory_space<vmem>>, %arg7: memref<2x8x128xf32, #tpu.memory_space<vmem>>, %arg8: memref<8x8x128xf32, #tpu.memory_space<vmem>>, %arg9: memref<2x8x128xf32, #tpu.memory_space<vmem>>) attributes {dimension_semantics = [], scalar_prefetch = 0 : i64, scratch_operands = 0 : i64, tpu.core_type = #tpu.core_type<tc>} {
    %c0 = arith.constant 0 : index
    %c0_0 = arith.constant 0 : index
    %0 = vector.load %arg2[%c0, %c0_0] : memref<1x128xf32, #tpu.memory_space<vmem>>, vector<1x128xf32>
    %c0_1 = arith.constant 0 : index
    %c0_2 = arith.constant 0 : index
    %1 = vector.load %arg4[%c0_1, %c0_2] : memref<1x384xf32, #tpu.memory_space<vmem>>, vector<1x384xf32>
    %c0_3 = arith.constant 0 : index
    %c0_4 = arith.constant 0 : index
    %2 = vector.load %arg6[%c0_3, %c0_4] : memref<1x128xf32, #tpu.memory_space<vmem>>, vector<1x128xf32>
    %c0_5 = arith.constant 0 : index
    %c0_6 = arith.constant 0 : index
    %c0_7 = arith.constant 0 : index
    %3 = vector.load %arg7[%c0_5, %c0_6, %c0_7] : memref<2x8x128xf32, #tpu.memory_space<vmem>>, vector<1x8x128xf32>
    %4 = vector.shape_cast %3 : vector<1x8x128xf32> to vector<8x128xf32>
    %c0_8 = arith.constant 0 : index
    %c0_9 = arith.constant 0 : index
    %c0_10 = arith.constant 0 : index
    %5 = vector.load %arg0[%c0_8, %c0_9, %c0_10] : memref<8x8x384xf32, #tpu.memory_space<vmem>>, vector<1x8x384xf32>
    %6 = vector.shape_cast %5 : vector<1x8x384xf32> to vector<8x384xf32>
    %7 = arith.truncf %4 : vector<8x128xf32> to vector<8x128xbf16>
    %c0_11 = arith.constant 0 : index
    %c0_12 = arith.constant 0 : index
    %8 = vector.load %arg1[%c0_11, %c0_12] : memref<128x384xbf16, #tpu.memory_space<vmem>>, vector<128x384xbf16>
    %cst = arith.constant dense<0.000000e+00> : vector<8x384xf32>
    %9 = tpu.matmul %7, %8, %cst {dimension_numbers = #tpu.dot_dimension_numbers<[1], [0], [0], [1], [0, 0, 1, 1], [], []>} : vector<8x128xbf16>, vector<128x384xbf16>, vector<8x384xf32> -> vector<8x384xf32>
    %10 = vector.extract_strided_slice %6 {offsets = [0, 0], sizes = [8, 128], strides = [1, 1]} : vector<8x384xf32> to vector<8x128xf32>
    %11 = vector.extract_strided_slice %9 {offsets = [0, 0], sizes = [8, 128], strides = [1, 1]} : vector<8x384xf32> to vector<8x128xf32>
    %12 = arith.addf %10, %11 : vector<8x128xf32>
    %13 = arith.negf %12 : vector<8x128xf32>
    %14 = math.exp %13 : vector<8x128xf32>
    %cst_13 = arith.constant 1.000000e+00 : f32
    %15 = vector.broadcast %cst_13 : f32 to vector<8x128xf32>
    %16 = arith.addf %15, %14 : vector<8x128xf32>
    %17 = arith.divf %15, %16 : vector<8x128xf32>
    %18 = vector.extract_strided_slice %6 {offsets = [0, 128], sizes = [8, 128], strides = [1, 1]} : vector<8x384xf32> to vector<8x128xf32>
    %19 = vector.extract_strided_slice %9 {offsets = [0, 128], sizes = [8, 128], strides = [1, 1]} : vector<8x384xf32> to vector<8x128xf32>
    %20 = arith.addf %18, %19 : vector<8x128xf32>
    %21 = arith.negf %20 : vector<8x128xf32>
    %22 = math.exp %21 : vector<8x128xf32>
    %cst_14 = arith.constant 1.000000e+00 : f32
    %23 = vector.broadcast %cst_14 : f32 to vector<8x128xf32>
    %24 = arith.addf %23, %22 : vector<8x128xf32>
    %25 = arith.divf %23, %24 : vector<8x128xf32>
    %26 = vector.extract_strided_slice %6 {offsets = [0, 256], sizes = [8, 128], strides = [1, 1]} : vector<8x384xf32> to vector<8x128xf32>
    %27 = vector.extract_strided_slice %9 {offsets = [0, 256], sizes = [8, 128], strides = [1, 1]} : vector<8x384xf32> to vector<8x128xf32>
    %28 = vector.broadcast %0 : vector<1x128xf32> to vector<8x128xf32>
    %29 = arith.addf %27, %28 : vector<8x128xf32>
    %30 = arith.mulf %17, %29 : vector<8x128xf32>
    %31 = arith.addf %26, %30 : vector<8x128xf32>
    %32 = math.tanh %31 : vector<8x128xf32>
    %cst_15 = arith.constant 1.000000e+00 : f32
    %33 = vector.broadcast %cst_15 : f32 to vector<8x128xf32>
    %34 = arith.subf %33, %25 : vector<8x128xf32>
    %35 = arith.mulf %34, %32 : vector<8x128xf32>
    %36 = arith.mulf %25, %4 : vector<8x128xf32>
    %37 = arith.addf %35, %36 : vector<8x128xf32>
    %38 = arith.truncf %37 : vector<8x128xf32> to vector<8x128xbf16>
    %c0_16 = arith.constant 0 : index
    %c0_17 = arith.constant 0 : index
    %39 = vector.load %arg3[%c0_16, %c0_17] : memref<128x384xbf16, #tpu.memory_space<vmem>>, vector<128x384xbf16>
    %cst_18 = arith.constant dense<0.000000e+00> : vector<8x384xf32>
    %40 = tpu.matmul %38, %39, %cst_18 {dimension_numbers = #tpu.dot_dimension_numbers<[1], [0], [0], [1], [0, 0, 1, 1], [], []>} : vector<8x128xbf16>, vector<128x384xbf16>, vector<8x384xf32> -> vector<8x384xf32>
    %41 = vector.broadcast %1 : vector<1x384xf32> to vector<8x384xf32>
    %42 = arith.addf %40, %41 : vector<8x384xf32>
    %c1 = arith.constant 1 : index
    %c0_19 = arith.constant 0 : index
    %c0_20 = arith.constant 0 : index
    %43 = vector.load %arg7[%c1, %c0_19, %c0_20] : memref<2x8x128xf32, #tpu.memory_space<vmem>>, vector<1x8x128xf32>
    %44 = vector.shape_cast %43 : vector<1x8x128xf32> to vector<8x128xf32>
    %c1_i32 = arith.constant 1 : i32
    %45 = arith.truncf %44 : vector<8x128xf32> to vector<8x128xbf16>
    %c0_21 = arith.constant 0 : index
    %c0_22 = arith.constant 0 : index
    %46 = vector.load %arg5[%c0_21, %c0_22] : memref<128x384xbf16, #tpu.memory_space<vmem>>, vector<128x384xbf16>
    %cst_23 = arith.constant dense<0.000000e+00> : vector<8x384xf32>
    %47 = tpu.matmul %45, %46, %cst_23 {dimension_numbers = #tpu.dot_dimension_numbers<[1], [0], [0], [1], [0, 0, 1, 1], [], []>} : vector<8x128xbf16>, vector<128x384xbf16>, vector<8x384xf32> -> vector<8x384xf32>
    %48 = vector.extract_strided_slice %42 {offsets = [0, 0], sizes = [8, 128], strides = [1, 1]} : vector<8x384xf32> to vector<8x128xf32>
    %49 = vector.extract_strided_slice %47 {offsets = [0, 0], sizes = [8, 128], strides = [1, 1]} : vector<8x384xf32> to vector<8x128xf32>
    %50 = arith.addf %48, %49 : vector<8x128xf32>
    %51 = arith.negf %50 : vector<8x128xf32>
    %52 = math.exp %51 : vector<8x128xf32>
    %cst_24 = arith.constant 1.000000e+00 : f32
    %53 = vector.broadcast %cst_24 : f32 to vector<8x128xf32>
    %54 = arith.addf %53, %52 : vector<8x128xf32>
    %55 = arith.divf %53, %54 : vector<8x128xf32>
    %56 = vector.extract_strided_slice %42 {offsets = [0, 128], sizes = [8, 128], strides = [1, 1]} : vector<8x384xf32> to vector<8x128xf32>
    %57 = vector.extract_strided_slice %47 {offsets = [0, 128], sizes = [8, 128], strides = [1, 1]} : vector<8x384xf32> to vector<8x128xf32>
    %58 = arith.addf %56, %57 : vector<8x128xf32>
    %59 = arith.negf %58 : vector<8x128xf32>
    %60 = math.exp %59 : vector<8x128xf32>
    %cst_25 = arith.constant 1.000000e+00 : f32
    %61 = vector.broadcast %cst_25 : f32 to vector<8x128xf32>
    %62 = arith.addf %61, %60 : vector<8x128xf32>
    %63 = arith.divf %61, %62 : vector<8x128xf32>
    %64 = vector.extract_strided_slice %42 {offsets = [0, 256], sizes = [8, 128], strides = [1, 1]} : vector<8x384xf32> to vector<8x128xf32>
    %65 = vector.extract_strided_slice %47 {offsets = [0, 256], sizes = [8, 128], strides = [1, 1]} : vector<8x384xf32> to vector<8x128xf32>
    %66 = vector.broadcast %2 : vector<1x128xf32> to vector<8x128xf32>
    %67 = arith.addf %65, %66 : vector<8x128xf32>
    %68 = arith.mulf %55, %67 : vector<8x128xf32>
    %69 = arith.addf %64, %68 : vector<8x128xf32>
    %70 = math.tanh %69 : vector<8x128xf32>
    %cst_26 = arith.constant 1.000000e+00 : f32
    %71 = vector.broadcast %cst_26 : f32 to vector<8x128xf32>
    %72 = arith.subf %71, %63 : vector<8x128xf32>
    %73 = arith.mulf %72, %70 : vector<8x128xf32>
    %74 = arith.mulf %63, %44 : vector<8x128xf32>
    %75 = arith.addf %73, %74 : vector<8x128xf32>
    %c1_i32_27 = arith.constant 1 : i32
    %76 = arith.subi %c1_i32, %c1_i32_27 : i32
    %77 = arith.index_cast %76 : i32 to index
    %c0_28 = arith.constant 0 : index
    %c0_29 = arith.constant 0 : index
    %78 = vector.load %arg8[%77, %c0_28, %c0_29] : memref<8x8x128xf32, #tpu.memory_space<vmem>>, vector<1x8x128xf32>
    %79 = vector.shape_cast %78 : vector<1x8x128xf32> to vector<8x128xf32>
    %80 = vector.shape_cast %75 : vector<8x128xf32> to vector<1x8x128xf32>
    tpu.vector_store %arg8[%77, %c0_28, %c0_29], %80 {strides = array<i32>} : memref<8x8x128xf32, #tpu.memory_space<vmem>>, vector<1x8x128xf32>,
    %81 = arith.index_cast %c1_i32 : i32 to index
    %c0_30 = arith.constant 0 : index
    %c0_31 = arith.constant 0 : index
    %82 = vector.load %arg0[%81, %c0_30, %c0_31] : memref<8x8x384xf32, #tpu.memory_space<vmem>>, vector<1x8x384xf32>
    %83 = vector.shape_cast %82 : vector<1x8x384xf32> to vector<8x384xf32>
    %84 = arith.truncf %37 : vector<8x128xf32> to vector<8x128xbf16>
    %c0_32 = arith.constant 0 : index
    %c0_33 = arith.constant 0 : index
    %85 = vector.load %arg1[%c0_32, %c0_33] : memref<128x384xbf16, #tpu.memory_space<vmem>>, vector<128x384xbf16>
    %cst_34 = arith.constant dense<0.000000e+00> : vector<8x384xf32>
    %86 = tpu.matmul %84, %85, %cst_34 {dimension_numbers = #tpu.dot_dimension_numbers<[1], [0], [0], [1], [0, 0, 1, 1], [], []>} : vector<8x128xbf16>, vector<128x384xbf16>, vector<8x384xf32> -> vector<8x384xf32>
    %87 = vector.extract_strided_slice %83 {offsets = [0, 0], sizes = [8, 128], strides = [1, 1]} : vector<8x384xf32> to vector<8x128xf32>
    %88 = vector.extract_strided_slice %86 {offsets = [0, 0], sizes = [8, 128], strides = [1, 1]} : vector<8x384xf32> to vector<8x128xf32>
    %89 = arith.addf %87, %88 : vector<8x128xf32>
    %90 = arith.negf %89 : vector<8x128xf32>
    %91 = math.exp %90 : vector<8x128xf32>
    %cst_35 = arith.constant 1.000000e+00 : f32
    %92 = vector.broadcast %cst_35 : f32 to vector<8x128xf32>
    %93 = arith.addf %92, %91 : vector<8x128xf32>
    %94 = arith.divf %92, %93 : vector<8x128xf32>
    %95 = vector.extract_strided_slice %83 {offsets = [0, 128], sizes = [8, 128], strides = [1, 1]} : vector<8x384xf32> to vector<8x128xf32>
    %96 = vector.extract_strided_slice %86 {offsets = [0, 128], sizes = [8, 128], strides = [1, 1]} : vector<8x384xf32> to vector<8x128xf32>
    %97 = arith.addf %95, %96 : vector<8x128xf32>
    %98 = arith.negf %97 : vector<8x128xf32>
    %99 = math.exp %98 : vector<8x128xf32>
    %cst_36 = arith.constant 1.000000e+00 : f32
    %100 = vector.broadcast %cst_36 : f32 to vector<8x128xf32>
    %101 = arith.addf %100, %99 : vector<8x128xf32>
    %102 = arith.divf %100, %101 : vector<8x128xf32>
    %103 = vector.extract_strided_slice %83 {offsets = [0, 256], sizes = [8, 128], strides = [1, 1]} : vector<8x384xf32> to vector<8x128xf32>
    %104 = vector.extract_strided_slice %86 {offsets = [0, 256], sizes = [8, 128], strides = [1, 1]} : vector<8x384xf32> to vector<8x128xf32>
    %105 = vector.broadcast %0 : vector<1x128xf32> to vector<8x128xf32>
    %106 = arith.addf %104, %105 : vector<8x128xf32>
    %107 = arith.mulf %94, %106 : vector<8x128xf32>
    %108 = arith.addf %103, %107 : vector<8x128xf32>
    %109 = math.tanh %108 : vector<8x128xf32>
    %cst_37 = arith.constant 1.000000e+00 : f32
    %110 = vector.broadcast %cst_37 : f32 to vector<8x128xf32>
    %111 = arith.subf %110, %102 : vector<8x128xf32>
    %112 = arith.mulf %111, %109 : vector<8x128xf32>
    %113 = arith.mulf %102, %37 : vector<8x128xf32>
    %114 = arith.addf %112, %113 : vector<8x128xf32>
    %115 = arith.truncf %114 : vector<8x128xf32> to vector<8x128xbf16>
    %c0_38 = arith.constant 0 : index
    %c0_39 = arith.constant 0 : index
    %116 = vector.load %arg3[%c0_38, %c0_39] : memref<128x384xbf16, #tpu.memory_space<vmem>>, vector<128x384xbf16>
    %cst_40 = arith.constant dense<0.000000e+00> : vector<8x384xf32>
    %117 = tpu.matmul %115, %116, %cst_40 {dimension_numbers = #tpu.dot_dimension_numbers<[1], [0], [0], [1], [0, 0, 1, 1], [], []>} : vector<8x128xbf16>, vector<128x384xbf16>, vector<8x384xf32> -> vector<8x384xf32>
    %118 = vector.broadcast %1 : vector<1x384xf32> to vector<8x384xf32>
    %119 = arith.addf %117, %118 : vector<8x384xf32>
    %c2_i32 = arith.constant 2 : i32
    %120 = arith.truncf %75 : vector<8x128xf32> to vector<8x128xbf16>
    %c0_41 = arith.constant 0 : index
    %c0_42 = arith.constant 0 : index
    %121 = vector.load %arg5[%c0_41, %c0_42] : memref<128x384xbf16, #tpu.memory_space<vmem>>, vector<128x384xbf16>
    %cst_43 = arith.constant dense<0.000000e+00> : vector<8x384xf32>
    %122 = tpu.matmul %120, %121, %cst_43 {dimension_numbers = #tpu.dot_dimension_numbers<[1], [0], [0], [1], [0, 0, 1, 1], [], []>} : vector<8x128xbf16>, vector<128x384xbf16>, vector<8x384xf32> -> vector<8x384xf32>
    %123 = vector.extract_strided_slice %119 {offsets = [0, 0], sizes = [8, 128], strides = [1, 1]} : vector<8x384xf32> to vector<8x128xf32>
    %124 = vector.extract_strided_slice %122 {offsets = [0, 0], sizes = [8, 128], strides = [1, 1]} : vector<8x384xf32> to vector<8x128xf32>
    %125 = arith.addf %123, %124 : vector<8x128xf32>
    %126 = arith.negf %125 : vector<8x128xf32>
    %127 = math.exp %126 : vector<8x128xf32>
    %cst_44 = arith.constant 1.000000e+00 : f32
    %128 = vector.broadcast %cst_44 : f32 to vector<8x128xf32>
    %129 = arith.addf %128, %127 : vector<8x128xf32>
    %130 = arith.divf %128, %129 : vector<8x128xf32>
    %131 = vector.extract_strided_slice %119 {offsets = [0, 128], sizes = [8, 128], strides = [1, 1]} : vector<8x384xf32> to vector<8x128xf32>
    %132 = vector.extract_strided_slice %122 {offsets = [0, 128], sizes = [8, 128], strides = [1, 1]} : vector<8x384xf32> to vector<8x128xf32>
    %133 = arith.addf %131, %132 : vector<8x128xf32>
    %134 = arith.negf %133 : vector<8x128xf32>
    %135 = math.exp %134 : vector<8x128xf32>
    %cst_45 = arith.constant 1.000000e+00 : f32
    %136 = vector.broadcast %cst_45 : f32 to vector<8x128xf32>
    %137 = arith.addf %136, %135 : vector<8x128xf32>
    %138 = arith.divf %136, %137 : vector<8x128xf32>
    %139 = vector.extract_strided_slice %119 {offsets = [0, 256], sizes = [8, 128], strides = [1, 1]} : vector<8x384xf32> to vector<8x128xf32>
    %140 = vector.extract_strided_slice %122 {offsets = [0, 256], sizes = [8, 128], strides = [1, 1]} : vector<8x384xf32> to vector<8x128xf32>
    %141 = vector.broadcast %2 : vector<1x128xf32> to vector<8x128xf32>
    %142 = arith.addf %140, %141 : vector<8x128xf32>
    %143 = arith.mulf %130, %142 : vector<8x128xf32>
    %144 = arith.addf %139, %143 : vector<8x128xf32>
    %145 = math.tanh %144 : vector<8x128xf32>
    %cst_46 = arith.constant 1.000000e+00 : f32
    %146 = vector.broadcast %cst_46 : f32 to vector<8x128xf32>
    %147 = arith.subf %146, %138 : vector<8x128xf32>
    %148 = arith.mulf %147, %145 : vector<8x128xf32>
    %149 = arith.mulf %138, %75 : vector<8x128xf32>
    %150 = arith.addf %148, %149 : vector<8x128xf32>
    %c1_i32_47 = arith.constant 1 : i32
    %151 = arith.subi %c2_i32, %c1_i32_47 : i32
    %152 = arith.index_cast %151 : i32 to index
    %c0_48 = arith.constant 0 : index
    %c0_49 = arith.constant 0 : index
    %153 = vector.load %arg8[%152, %c0_48, %c0_49] : memref<8x8x128xf32, #tpu.memory_space<vmem>>, vector<1x8x128xf32>
    %154 = vector.shape_cast %153 : vector<1x8x128xf32> to vector<8x128xf32>
    %155 = vector.shape_cast %150 : vector<8x128xf32> to vector<1x8x128xf32>
    tpu.vector_store %arg8[%152, %c0_48, %c0_49], %155 {strides = array<i32>} : memref<8x8x128xf32, #tpu.memory_space<vmem>>, vector<1x8x128xf32>,
    %156 = arith.index_cast %c2_i32 : i32 to index
    %c0_50 = arith.constant 0 : index
    %c0_51 = arith.constant 0 : index
    %157 = vector.load %arg0[%156, %c0_50, %c0_51] : memref<8x8x384xf32, #tpu.memory_space<vmem>>, vector<1x8x384xf32>
    %158 = vector.shape_cast %157 : vector<1x8x384xf32> to vector<8x384xf32>
    %159 = arith.truncf %114 : vector<8x128xf32> to vector<8x128xbf16>
    %c0_52 = arith.constant 0 : index
    %c0_53 = arith.constant 0 : index
    %160 = vector.load %arg1[%c0_52, %c0_53] : memref<128x384xbf16, #tpu.memory_space<vmem>>, vector<128x384xbf16>
    %cst_54 = arith.constant dense<0.000000e+00> : vector<8x384xf32>
    %161 = tpu.matmul %159, %160, %cst_54 {dimension_numbers = #tpu.dot_dimension_numbers<[1], [0], [0], [1], [0, 0, 1, 1], [], []>} : vector<8x128xbf16>, vector<128x384xbf16>, vector<8x384xf32> -> vector<8x384xf32>
    %162 = vector.extract_strided_slice %158 {offsets = [0, 0], sizes = [8, 128], strides = [1, 1]} : vector<8x384xf32> to vector<8x128xf32>
    %163 = vector.extract_strided_slice %161 {offsets = [0, 0], sizes = [8, 128], strides = [1, 1]} : vector<8x384xf32> to vector<8x128xf32>
    %164 = arith.addf %162, %163 : vector<8x128xf32>
    %165 = arith.negf %164 : vector<8x128xf32>
    %166 = math.exp %165 : vector<8x128xf32>
    %cst_55 = arith.constant 1.000000e+00 : f32
    %167 = vector.broadcast %cst_55 : f32 to vector<8x128xf32>
    %168 = arith.addf %167, %166 : vector<8x128xf32>
    %169 = arith.divf %167, %168 : vector<8x128xf32>
    %170 = vector.extract_strided_slice %158 {offsets = [0, 128], sizes = [8, 128], strides = [1, 1]} : vector<8x384xf32> to vector<8x128xf32>
    %171 = vector.extract_strided_slice %161 {offsets = [0, 128], sizes = [8, 128], strides = [1, 1]} : vector<8x384xf32> to vector<8x128xf32>
    %172 = arith.addf %170, %171 : vector<8x128xf32>
    %173 = arith.negf %172 : vector<8x128xf32>
    %174 = math.exp %173 : vector<8x128xf32>
    %cst_56 = arith.constant 1.000000e+00 : f32
    %175 = vector.broadcast %cst_56 : f32 to vector<8x128xf32>
    %176 = arith.addf %175, %174 : vector<8x128xf32>
    %177 = arith.divf %175, %176 : vector<8x128xf32>
    %178 = vector.extract_strided_slice %158 {offsets = [0, 256], sizes = [8, 128], strides = [1, 1]} : vector<8x384xf32> to vector<8x128xf32>
    %179 = vector.extract_strided_slice %161 {offsets = [0, 256], sizes = [8, 128], strides = [1, 1]} : vector<8x384xf32> to vector<8x128xf32>
    %180 = vector.broadcast %0 : vector<1x128xf32> to vector<8x128xf32>
    %181 = arith.addf %179, %180 : vector<8x128xf32>
    %182 = arith.mulf %169, %181 : vector<8x128xf32>
    %183 = arith.addf %178, %182 : vector<8x128xf32>
    %184 = math.tanh %183 : vector<8x128xf32>
    %cst_57 = arith.constant 1.000000e+00 : f32
    %185 = vector.broadcast %cst_57 : f32 to vector<8x128xf32>
    %186 = arith.subf %185, %177 : vector<8x128xf32>
    %187 = arith.mulf %186, %184 : vector<8x128xf32>
    %188 = arith.mulf %177, %114 : vector<8x128xf32>
    %189 = arith.addf %187, %188 : vector<8x128xf32>
    %190 = arith.truncf %189 : vector<8x128xf32> to vector<8x128xbf16>
    %c0_58 = arith.constant 0 : index
    %c0_59 = arith.constant 0 : index
    %191 = vector.load %arg3[%c0_58, %c0_59] : memref<128x384xbf16, #tpu.memory_space<vmem>>, vector<128x384xbf16>
    %cst_60 = arith.constant dense<0.000000e+00> : vector<8x384xf32>
    %192 = tpu.matmul %190, %191, %cst_60 {dimension_numbers = #tpu.dot_dimension_numbers<[1], [0], [0], [1], [0, 0, 1, 1], [], []>} : vector<8x128xbf16>, vector<128x384xbf16>, vector<8x384xf32> -> vector<8x384xf32>
    %193 = vector.broadcast %1 : vector<1x384xf32> to vector<8x384xf32>
    %194 = arith.addf %192, %193 : vector<8x384xf32>
    %c3_i32 = arith.constant 3 : i32
    %195 = arith.truncf %150 : vector<8x128xf32> to vector<8x128xbf16>
    %c0_61 = arith.constant 0 : index
    %c0_62 = arith.constant 0 : index
    %196 = vector.load %arg5[%c0_61, %c0_62] : memref<128x384xbf16, #tpu.memory_space<vmem>>, vector<128x384xbf16>
    %cst_63 = arith.constant dense<0.000000e+00> : vector<8x384xf32>
    %197 = tpu.matmul %195, %196, %cst_63 {dimension_numbers = #tpu.dot_dimension_numbers<[1], [0], [0], [1], [0, 0, 1, 1], [], []>} : vector<8x128xbf16>, vector<128x384xbf16>, vector<8x384xf32> -> vector<8x384xf32>
    %198 = vector.extract_strided_slice %194 {offsets = [0, 0], sizes = [8, 128], strides = [1, 1]} : vector<8x384xf32> to vector<8x128xf32>
    %199 = vector.extract_strided_slice %197 {offsets = [0, 0], sizes = [8, 128], strides = [1, 1]} : vector<8x384xf32> to vector<8x128xf32>
    %200 = arith.addf %198, %199 : vector<8x128xf32>
    %201 = arith.negf %200 : vector<8x128xf32>
    %202 = math.exp %201 : vector<8x128xf32>
    %cst_64 = arith.constant 1.000000e+00 : f32
    %203 = vector.broadcast %cst_64 : f32 to vector<8x128xf32>
    %204 = arith.addf %203, %202 : vector<8x128xf32>
    %205 = arith.divf %203, %204 : vector<8x128xf32>
    %206 = vector.extract_strided_slice %194 {offsets = [0, 128], sizes = [8, 128], strides = [1, 1]} : vector<8x384xf32> to vector<8x128xf32>
    %207 = vector.extract_strided_slice %197 {offsets = [0, 128], sizes = [8, 128], strides = [1, 1]} : vector<8x384xf32> to vector<8x128xf32>
    %208 = arith.addf %206, %207 : vector<8x128xf32>
    %209 = arith.negf %208 : vector<8x128xf32>
    %210 = math.exp %209 : vector<8x128xf32>
    %cst_65 = arith.constant 1.000000e+00 : f32
    %211 = vector.broadcast %cst_65 : f32 to vector<8x128xf32>
    %212 = arith.addf %211, %210 : vector<8x128xf32>
    %213 = arith.divf %211, %212 : vector<8x128xf32>
    %214 = vector.extract_strided_slice %194 {offsets = [0, 256], sizes = [8, 128], strides = [1, 1]} : vector<8x384xf32> to vector<8x128xf32>
    %215 = vector.extract_strided_slice %197 {offsets = [0, 256], sizes = [8, 128], strides = [1, 1]} : vector<8x384xf32> to vector<8x128xf32>
    %216 = vector.broadcast %2 : vector<1x128xf32> to vector<8x128xf32>
    %217 = arith.addf %215, %216 : vector<8x128xf32>
    %218 = arith.mulf %205, %217 : vector<8x128xf32>
    %219 = arith.addf %214, %218 : vector<8x128xf32>
    %220 = math.tanh %219 : vector<8x128xf32>
    %cst_66 = arith.constant 1.000000e+00 : f32
    %221 = vector.broadcast %cst_66 : f32 to vector<8x128xf32>
    %222 = arith.subf %221, %213 : vector<8x128xf32>
    %223 = arith.mulf %222, %220 : vector<8x128xf32>
    %224 = arith.mulf %213, %150 : vector<8x128xf32>
    %225 = arith.addf %223, %224 : vector<8x128xf32>
    %c1_i32_67 = arith.constant 1 : i32
    %226 = arith.subi %c3_i32, %c1_i32_67 : i32
    %227 = arith.index_cast %226 : i32 to index
    %c0_68 = arith.constant 0 : index
    %c0_69 = arith.constant 0 : index
    %228 = vector.load %arg8[%227, %c0_68, %c0_69] : memref<8x8x128xf32, #tpu.memory_space<vmem>>, vector<1x8x128xf32>
    %229 = vector.shape_cast %228 : vector<1x8x128xf32> to vector<8x128xf32>
    %230 = vector.shape_cast %225 : vector<8x128xf32> to vector<1x8x128xf32>
    tpu.vector_store %arg8[%227, %c0_68, %c0_69], %230 {strides = array<i32>} : memref<8x8x128xf32, #tpu.memory_space<vmem>>, vector<1x8x128xf32>,
    %231 = arith.index_cast %c3_i32 : i32 to index
    %c0_70 = arith.constant 0 : index
    %c0_71 = arith.constant 0 : index
    %232 = vector.load %arg0[%231, %c0_70, %c0_71] : memref<8x8x384xf32, #tpu.memory_space<vmem>>, vector<1x8x384xf32>
    %233 = vector.shape_cast %232 : vector<1x8x384xf32> to vector<8x384xf32>
    %234 = arith.truncf %189 : vector<8x128xf32> to vector<8x128xbf16>
    %c0_72 = arith.constant 0 : index
    %c0_73 = arith.constant 0 : index
    %235 = vector.load %arg1[%c0_72, %c0_73] : memref<128x384xbf16, #tpu.memory_space<vmem>>, vector<128x384xbf16>
    %cst_74 = arith.constant dense<0.000000e+00> : vector<8x384xf32>
    %236 = tpu.matmul %234, %235, %cst_74 {dimension_numbers = #tpu.dot_dimension_numbers<[1], [0], [0], [1], [0, 0, 1, 1], [], []>} : vector<8x128xbf16>, vector<128x384xbf16>, vector<8x384xf32> -> vector<8x384xf32>
    %237 = vector.extract_strided_slice %233 {offsets = [0, 0], sizes = [8, 128], strides = [1, 1]} : vector<8x384xf32> to vector<8x128xf32>
    %238 = vector.extract_strided_slice %236 {offsets = [0, 0], sizes = [8, 128], strides = [1, 1]} : vector<8x384xf32> to vector<8x128xf32>
    %239 = arith.addf %237, %238 : vector<8x128xf32>
    %240 = arith.negf %239 : vector<8x128xf32>
    %241 = math.exp %240 : vector<8x128xf32>
    %cst_75 = arith.constant 1.000000e+00 : f32
    %242 = vector.broadcast %cst_75 : f32 to vector<8x128xf32>
    %243 = arith.addf %242, %241 : vector<8x128xf32>
    %244 = arith.divf %242, %243 : vector<8x128xf32>
    %245 = vector.extract_strided_slice %233 {offsets = [0, 128], sizes = [8, 128], strides = [1, 1]} : vector<8x384xf32> to vector<8x128xf32>
    %246 = vector.extract_strided_slice %236 {offsets = [0, 128], sizes = [8, 128], strides = [1, 1]} : vector<8x384xf32> to vector<8x128xf32>
    %247 = arith.addf %245, %246 : vector<8x128xf32>
    %248 = arith.negf %247 : vector<8x128xf32>
    %249 = math.exp %248 : vector<8x128xf32>
    %cst_76 = arith.constant 1.000000e+00 : f32
    %250 = vector.broadcast %cst_76 : f32 to vector<8x128xf32>
    %251 = arith.addf %250, %249 : vector<8x128xf32>
    %252 = arith.divf %250, %251 : vector<8x128xf32>
    %253 = vector.extract_strided_slice %233 {offsets = [0, 256], sizes = [8, 128], strides = [1, 1]} : vector<8x384xf32> to vector<8x128xf32>
    %254 = vector.extract_strided_slice %236 {offsets = [0, 256], sizes = [8, 128], strides = [1, 1]} : vector<8x384xf32> to vector<8x128xf32>
    %255 = vector.broadcast %0 : vector<1x128xf32> to vector<8x128xf32>
    %256 = arith.addf %254, %255 : vector<8x128xf32>
    %257 = arith.mulf %244, %256 : vector<8x128xf32>
    %258 = arith.addf %253, %257 : vector<8x128xf32>
    %259 = math.tanh %258 : vector<8x128xf32>
    %cst_77 = arith.constant 1.000000e+00 : f32
    %260 = vector.broadcast %cst_77 : f32 to vector<8x128xf32>
    %261 = arith.subf %260, %252 : vector<8x128xf32>
    %262 = arith.mulf %261, %259 : vector<8x128xf32>
    %263 = arith.mulf %252, %189 : vector<8x128xf32>
    %264 = arith.addf %262, %263 : vector<8x128xf32>
    %265 = arith.truncf %264 : vector<8x128xf32> to vector<8x128xbf16>
    %c0_78 = arith.constant 0 : index
    %c0_79 = arith.constant 0 : index
    %266 = vector.load %arg3[%c0_78, %c0_79] : memref<128x384xbf16, #tpu.memory_space<vmem>>, vector<128x384xbf16>
    %cst_80 = arith.constant dense<0.000000e+00> : vector<8x384xf32>
    %267 = tpu.matmul %265, %266, %cst_80 {dimension_numbers = #tpu.dot_dimension_numbers<[1], [0], [0], [1], [0, 0, 1, 1], [], []>} : vector<8x128xbf16>, vector<128x384xbf16>, vector<8x384xf32> -> vector<8x384xf32>
    %268 = vector.broadcast %1 : vector<1x384xf32> to vector<8x384xf32>
    %269 = arith.addf %267, %268 : vector<8x384xf32>
    %c4_i32 = arith.constant 4 : i32
    %270 = arith.truncf %225 : vector<8x128xf32> to vector<8x128xbf16>
    %c0_81 = arith.constant 0 : index
    %c0_82 = arith.constant 0 : index
    %271 = vector.load %arg5[%c0_81, %c0_82] : memref<128x384xbf16, #tpu.memory_space<vmem>>, vector<128x384xbf16>
    %cst_83 = arith.constant dense<0.000000e+00> : vector<8x384xf32>
    %272 = tpu.matmul %270, %271, %cst_83 {dimension_numbers = #tpu.dot_dimension_numbers<[1], [0], [0], [1], [0, 0, 1, 1], [], []>} : vector<8x128xbf16>, vector<128x384xbf16>, vector<8x384xf32> -> vector<8x384xf32>
    %273 = vector.extract_strided_slice %269 {offsets = [0, 0], sizes = [8, 128], strides = [1, 1]} : vector<8x384xf32> to vector<8x128xf32>
    %274 = vector.extract_strided_slice %272 {offsets = [0, 0], sizes = [8, 128], strides = [1, 1]} : vector<8x384xf32> to vector<8x128xf32>
    %275 = arith.addf %273, %274 : vector<8x128xf32>
    %276 = arith.negf %275 : vector<8x128xf32>
    %277 = math.exp %276 : vector<8x128xf32>
    %cst_84 = arith.constant 1.000000e+00 : f32
    %278 = vector.broadcast %cst_84 : f32 to vector<8x128xf32>
    %279 = arith.addf %278, %277 : vector<8x128xf32>
    %280 = arith.divf %278, %279 : vector<8x128xf32>
    %281 = vector.extract_strided_slice %269 {offsets = [0, 128], sizes = [8, 128], strides = [1, 1]} : vector<8x384xf32> to vector<8x128xf32>
    %282 = vector.extract_strided_slice %272 {offsets = [0, 128], sizes = [8, 128], strides = [1, 1]} : vector<8x384xf32> to vector<8x128xf32>
    %283 = arith.addf %281, %282 : vector<8x128xf32>
    %284 = arith.negf %283 : vector<8x128xf32>
    %285 = math.exp %284 : vector<8x128xf32>
    %cst_85 = arith.constant 1.000000e+00 : f32
    %286 = vector.broadcast %cst_85 : f32 to vector<8x128xf32>
    %287 = arith.addf %286, %285 : vector<8x128xf32>
    %288 = arith.divf %286, %287 : vector<8x128xf32>
    %289 = vector.extract_strided_slice %269 {offsets = [0, 256], sizes = [8, 128], strides = [1, 1]} : vector<8x384xf32> to vector<8x128xf32>
    %290 = vector.extract_strided_slice %272 {offsets = [0, 256], sizes = [8, 128], strides = [1, 1]} : vector<8x384xf32> to vector<8x128xf32>
    %291 = vector.broadcast %2 : vector<1x128xf32> to vector<8x128xf32>
    %292 = arith.addf %290, %291 : vector<8x128xf32>
    %293 = arith.mulf %280, %292 : vector<8x128xf32>
    %294 = arith.addf %289, %293 : vector<8x128xf32>
    %295 = math.tanh %294 : vector<8x128xf32>
    %cst_86 = arith.constant 1.000000e+00 : f32
    %296 = vector.broadcast %cst_86 : f32 to vector<8x128xf32>
    %297 = arith.subf %296, %288 : vector<8x128xf32>
    %298 = arith.mulf %297, %295 : vector<8x128xf32>
    %299 = arith.mulf %288, %225 : vector<8x128xf32>
    %300 = arith.addf %298, %299 : vector<8x128xf32>
    %c1_i32_87 = arith.constant 1 : i32
    %301 = arith.subi %c4_i32, %c1_i32_87 : i32
    %302 = arith.index_cast %301 : i32 to index
    %c0_88 = arith.constant 0 : index
    %c0_89 = arith.constant 0 : index
    %303 = vector.load %arg8[%302, %c0_88, %c0_89] : memref<8x8x128xf32, #tpu.memory_space<vmem>>, vector<1x8x128xf32>
    %304 = vector.shape_cast %303 : vector<1x8x128xf32> to vector<8x128xf32>
    %305 = vector.shape_cast %300 : vector<8x128xf32> to vector<1x8x128xf32>
    tpu.vector_store %arg8[%302, %c0_88, %c0_89], %305 {strides = array<i32>} : memref<8x8x128xf32, #tpu.memory_space<vmem>>, vector<1x8x128xf32>,
    %306 = arith.index_cast %c4_i32 : i32 to index
    %c0_90 = arith.constant 0 : index
    %c0_91 = arith.constant 0 : index
    %307 = vector.load %arg0[%306, %c0_90, %c0_91] : memref<8x8x384xf32, #tpu.memory_space<vmem>>, vector<1x8x384xf32>
    %308 = vector.shape_cast %307 : vector<1x8x384xf32> to vector<8x384xf32>
    %309 = arith.truncf %264 : vector<8x128xf32> to vector<8x128xbf16>
    %c0_92 = arith.constant 0 : index
    %c0_93 = arith.constant 0 : index
    %310 = vector.load %arg1[%c0_92, %c0_93] : memref<128x384xbf16, #tpu.memory_space<vmem>>, vector<128x384xbf16>
    %cst_94 = arith.constant dense<0.000000e+00> : vector<8x384xf32>
    %311 = tpu.matmul %309, %310, %cst_94 {dimension_numbers = #tpu.dot_dimension_numbers<[1], [0], [0], [1], [0, 0, 1, 1], [], []>} : vector<8x128xbf16>, vector<128x384xbf16>, vector<8x384xf32> -> vector<8x384xf32>
    %312 = vector.extract_strided_slice %308 {offsets = [0, 0], sizes = [8, 128], strides = [1, 1]} : vector<8x384xf32> to vector<8x128xf32>
    %313 = vector.extract_strided_slice %311 {offsets = [0, 0], sizes = [8, 128], strides = [1, 1]} : vector<8x384xf32> to vector<8x128xf32>
    %314 = arith.addf %312, %313 : vector<8x128xf32>
    %315 = arith.negf %314 : vector<8x128xf32>
    %316 = math.exp %315 : vector<8x128xf32>
    %cst_95 = arith.constant 1.000000e+00 : f32
    %317 = vector.broadcast %cst_95 : f32 to vector<8x128xf32>
    %318 = arith.addf %317, %316 : vector<8x128xf32>
    %319 = arith.divf %317, %318 : vector<8x128xf32>
    %320 = vector.extract_strided_slice %308 {offsets = [0, 128], sizes = [8, 128], strides = [1, 1]} : vector<8x384xf32> to vector<8x128xf32>
    %321 = vector.extract_strided_slice %311 {offsets = [0, 128], sizes = [8, 128], strides = [1, 1]} : vector<8x384xf32> to vector<8x128xf32>
    %322 = arith.addf %320, %321 : vector<8x128xf32>
    %323 = arith.negf %322 : vector<8x128xf32>
    %324 = math.exp %323 : vector<8x128xf32>
    %cst_96 = arith.constant 1.000000e+00 : f32
    %325 = vector.broadcast %cst_96 : f32 to vector<8x128xf32>
    %326 = arith.addf %325, %324 : vector<8x128xf32>
    %327 = arith.divf %325, %326 : vector<8x128xf32>
    %328 = vector.extract_strided_slice %308 {offsets = [0, 256], sizes = [8, 128], strides = [1, 1]} : vector<8x384xf32> to vector<8x128xf32>
    %329 = vector.extract_strided_slice %311 {offsets = [0, 256], sizes = [8, 128], strides = [1, 1]} : vector<8x384xf32> to vector<8x128xf32>
    %330 = vector.broadcast %0 : vector<1x128xf32> to vector<8x128xf32>
    %331 = arith.addf %329, %330 : vector<8x128xf32>
    %332 = arith.mulf %319, %331 : vector<8x128xf32>
    %333 = arith.addf %328, %332 : vector<8x128xf32>
    %334 = math.tanh %333 : vector<8x128xf32>
    %cst_97 = arith.constant 1.000000e+00 : f32
    %335 = vector.broadcast %cst_97 : f32 to vector<8x128xf32>
    %336 = arith.subf %335, %327 : vector<8x128xf32>
    %337 = arith.mulf %336, %334 : vector<8x128xf32>
    %338 = arith.mulf %327, %264 : vector<8x128xf32>
    %339 = arith.addf %337, %338 : vector<8x128xf32>
    %340 = arith.truncf %339 : vector<8x128xf32> to vector<8x128xbf16>
    %c0_98 = arith.constant 0 : index
    %c0_99 = arith.constant 0 : index
    %341 = vector.load %arg3[%c0_98, %c0_99] : memref<128x384xbf16, #tpu.memory_space<vmem>>, vector<128x384xbf16>
    %cst_100 = arith.constant dense<0.000000e+00> : vector<8x384xf32>
    %342 = tpu.matmul %340, %341, %cst_100 {dimension_numbers = #tpu.dot_dimension_numbers<[1], [0], [0], [1], [0, 0, 1, 1], [], []>} : vector<8x128xbf16>, vector<128x384xbf16>, vector<8x384xf32> -> vector<8x384xf32>
    %343 = vector.broadcast %1 : vector<1x384xf32> to vector<8x384xf32>
    %344 = arith.addf %342, %343 : vector<8x384xf32>
    %c5_i32 = arith.constant 5 : i32
    %345 = arith.truncf %300 : vector<8x128xf32> to vector<8x128xbf16>
    %c0_101 = arith.constant 0 : index
    %c0_102 = arith.constant 0 : index
    %346 = vector.load %arg5[%c0_101, %c0_102] : memref<128x384xbf16, #tpu.memory_space<vmem>>, vector<128x384xbf16>
    %cst_103 = arith.constant dense<0.000000e+00> : vector<8x384xf32>
    %347 = tpu.matmul %345, %346, %cst_103 {dimension_numbers = #tpu.dot_dimension_numbers<[1], [0], [0], [1], [0, 0, 1, 1], [], []>} : vector<8x128xbf16>, vector<128x384xbf16>, vector<8x384xf32> -> vector<8x384xf32>
    %348 = vector.extract_strided_slice %344 {offsets = [0, 0], sizes = [8, 128], strides = [1, 1]} : vector<8x384xf32> to vector<8x128xf32>
    %349 = vector.extract_strided_slice %347 {offsets = [0, 0], sizes = [8, 128], strides = [1, 1]} : vector<8x384xf32> to vector<8x128xf32>
    %350 = arith.addf %348, %349 : vector<8x128xf32>
    %351 = arith.negf %350 : vector<8x128xf32>
    %352 = math.exp %351 : vector<8x128xf32>
    %cst_104 = arith.constant 1.000000e+00 : f32
    %353 = vector.broadcast %cst_104 : f32 to vector<8x128xf32>
    %354 = arith.addf %353, %352 : vector<8x128xf32>
    %355 = arith.divf %353, %354 : vector<8x128xf32>
    %356 = vector.extract_strided_slice %344 {offsets = [0, 128], sizes = [8, 128], strides = [1, 1]} : vector<8x384xf32> to vector<8x128xf32>
    %357 = vector.extract_strided_slice %347 {offsets = [0, 128], sizes = [8, 128], strides = [1, 1]} : vector<8x384xf32> to vector<8x128xf32>
    %358 = arith.addf %356, %357 : vector<8x128xf32>
    %359 = arith.negf %358 : vector<8x128xf32>
    %360 = math.exp %359 : vector<8x128xf32>
    %cst_105 = arith.constant 1.000000e+00 : f32
    %361 = vector.broadcast %cst_105 : f32 to vector<8x128xf32>
    %362 = arith.addf %361, %360 : vector<8x128xf32>
    %363 = arith.divf %361, %362 : vector<8x128xf32>
    %364 = vector.extract_strided_slice %344 {offsets = [0, 256], sizes = [8, 128], strides = [1, 1]} : vector<8x384xf32> to vector<8x128xf32>
    %365 = vector.extract_strided_slice %347 {offsets = [0, 256], sizes = [8, 128], strides = [1, 1]} : vector<8x384xf32> to vector<8x128xf32>
    %366 = vector.broadcast %2 : vector<1x128xf32> to vector<8x128xf32>
    %367 = arith.addf %365, %366 : vector<8x128xf32>
    %368 = arith.mulf %355, %367 : vector<8x128xf32>
    %369 = arith.addf %364, %368 : vector<8x128xf32>
    %370 = math.tanh %369 : vector<8x128xf32>
    %cst_106 = arith.constant 1.000000e+00 : f32
    %371 = vector.broadcast %cst_106 : f32 to vector<8x128xf32>
    %372 = arith.subf %371, %363 : vector<8x128xf32>
    %373 = arith.mulf %372, %370 : vector<8x128xf32>
    %374 = arith.mulf %363, %300 : vector<8x128xf32>
    %375 = arith.addf %373, %374 : vector<8x128xf32>
    %c1_i32_107 = arith.constant 1 : i32
    %376 = arith.subi %c5_i32, %c1_i32_107 : i32
    %377 = arith.index_cast %376 : i32 to index
    %c0_108 = arith.constant 0 : index
    %c0_109 = arith.constant 0 : index
    %378 = vector.load %arg8[%377, %c0_108, %c0_109] : memref<8x8x128xf32, #tpu.memory_space<vmem>>, vector<1x8x128xf32>
    %379 = vector.shape_cast %378 : vector<1x8x128xf32> to vector<8x128xf32>
    %380 = vector.shape_cast %375 : vector<8x128xf32> to vector<1x8x128xf32>
    tpu.vector_store %arg8[%377, %c0_108, %c0_109], %380 {strides = array<i32>} : memref<8x8x128xf32, #tpu.memory_space<vmem>>, vector<1x8x128xf32>,
    %381 = arith.index_cast %c5_i32 : i32 to index
    %c0_110 = arith.constant 0 : index
    %c0_111 = arith.constant 0 : index
    %382 = vector.load %arg0[%381, %c0_110, %c0_111] : memref<8x8x384xf32, #tpu.memory_space<vmem>>, vector<1x8x384xf32>
    %383 = vector.shape_cast %382 : vector<1x8x384xf32> to vector<8x384xf32>
    %384 = arith.truncf %339 : vector<8x128xf32> to vector<8x128xbf16>
    %c0_112 = arith.constant 0 : index
    %c0_113 = arith.constant 0 : index
    %385 = vector.load %arg1[%c0_112, %c0_113] : memref<128x384xbf16, #tpu.memory_space<vmem>>, vector<128x384xbf16>
    %cst_114 = arith.constant dense<0.000000e+00> : vector<8x384xf32>
    %386 = tpu.matmul %384, %385, %cst_114 {dimension_numbers = #tpu.dot_dimension_numbers<[1], [0], [0], [1], [0, 0, 1, 1], [], []>} : vector<8x128xbf16>, vector<128x384xbf16>, vector<8x384xf32> -> vector<8x384xf32>
    %387 = vector.extract_strided_slice %383 {offsets = [0, 0], sizes = [8, 128], strides = [1, 1]} : vector<8x384xf32> to vector<8x128xf32>
    %388 = vector.extract_strided_slice %386 {offsets = [0, 0], sizes = [8, 128], strides = [1, 1]} : vector<8x384xf32> to vector<8x128xf32>
    %389 = arith.addf %387, %388 : vector<8x128xf32>
    %390 = arith.negf %389 : vector<8x128xf32>
    %391 = math.exp %390 : vector<8x128xf32>
    %cst_115 = arith.constant 1.000000e+00 : f32
    %392 = vector.broadcast %cst_115 : f32 to vector<8x128xf32>
    %393 = arith.addf %392, %391 : vector<8x128xf32>
    %394 = arith.divf %392, %393 : vector<8x128xf32>
    %395 = vector.extract_strided_slice %383 {offsets = [0, 128], sizes = [8, 128], strides = [1, 1]} : vector<8x384xf32> to vector<8x128xf32>
    %396 = vector.extract_strided_slice %386 {offsets = [0, 128], sizes = [8, 128], strides = [1, 1]} : vector<8x384xf32> to vector<8x128xf32>
    %397 = arith.addf %395, %396 : vector<8x128xf32>
    %398 = arith.negf %397 : vector<8x128xf32>
    %399 = math.exp %398 : vector<8x128xf32>
    %cst_116 = arith.constant 1.000000e+00 : f32
    %400 = vector.broadcast %cst_116 : f32 to vector<8x128xf32>
    %401 = arith.addf %400, %399 : vector<8x128xf32>
    %402 = arith.divf %400, %401 : vector<8x128xf32>
    %403 = vector.extract_strided_slice %383 {offsets = [0, 256], sizes = [8, 128], strides = [1, 1]} : vector<8x384xf32> to vector<8x128xf32>
    %404 = vector.extract_strided_slice %386 {offsets = [0, 256], sizes = [8, 128], strides = [1, 1]} : vector<8x384xf32> to vector<8x128xf32>
    %405 = vector.broadcast %0 : vector<1x128xf32> to vector<8x128xf32>
    %406 = arith.addf %404, %405 : vector<8x128xf32>
    %407 = arith.mulf %394, %406 : vector<8x128xf32>
    %408 = arith.addf %403, %407 : vector<8x128xf32>
    %409 = math.tanh %408 : vector<8x128xf32>
    %cst_117 = arith.constant 1.000000e+00 : f32
    %410 = vector.broadcast %cst_117 : f32 to vector<8x128xf32>
    %411 = arith.subf %410, %402 : vector<8x128xf32>
    %412 = arith.mulf %411, %409 : vector<8x128xf32>
    %413 = arith.mulf %402, %339 : vector<8x128xf32>
    %414 = arith.addf %412, %413 : vector<8x128xf32>
    %415 = arith.truncf %414 : vector<8x128xf32> to vector<8x128xbf16>
    %c0_118 = arith.constant 0 : index
    %c0_119 = arith.constant 0 : index
    %416 = vector.load %arg3[%c0_118, %c0_119] : memref<128x384xbf16, #tpu.memory_space<vmem>>, vector<128x384xbf16>
    %cst_120 = arith.constant dense<0.000000e+00> : vector<8x384xf32>
    %417 = tpu.matmul %415, %416, %cst_120 {dimension_numbers = #tpu.dot_dimension_numbers<[1], [0], [0], [1], [0, 0, 1, 1], [], []>} : vector<8x128xbf16>, vector<128x384xbf16>, vector<8x384xf32> -> vector<8x384xf32>
    %418 = vector.broadcast %1 : vector<1x384xf32> to vector<8x384xf32>
    %419 = arith.addf %417, %418 : vector<8x384xf32>
    %c6_i32 = arith.constant 6 : i32
    %420 = arith.truncf %375 : vector<8x128xf32> to vector<8x128xbf16>
    %c0_121 = arith.constant 0 : index
    %c0_122 = arith.constant 0 : index
    %421 = vector.load %arg5[%c0_121, %c0_122] : memref<128x384xbf16, #tpu.memory_space<vmem>>, vector<128x384xbf16>
    %cst_123 = arith.constant dense<0.000000e+00> : vector<8x384xf32>
    %422 = tpu.matmul %420, %421, %cst_123 {dimension_numbers = #tpu.dot_dimension_numbers<[1], [0], [0], [1], [0, 0, 1, 1], [], []>} : vector<8x128xbf16>, vector<128x384xbf16>, vector<8x384xf32> -> vector<8x384xf32>
    %423 = vector.extract_strided_slice %419 {offsets = [0, 0], sizes = [8, 128], strides = [1, 1]} : vector<8x384xf32> to vector<8x128xf32>
    %424 = vector.extract_strided_slice %422 {offsets = [0, 0], sizes = [8, 128], strides = [1, 1]} : vector<8x384xf32> to vector<8x128xf32>
    %425 = arith.addf %423, %424 : vector<8x128xf32>
    %426 = arith.negf %425 : vector<8x128xf32>
    %427 = math.exp %426 : vector<8x128xf32>
    %cst_124 = arith.constant 1.000000e+00 : f32
    %428 = vector.broadcast %cst_124 : f32 to vector<8x128xf32>
    %429 = arith.addf %428, %427 : vector<8x128xf32>
    %430 = arith.divf %428, %429 : vector<8x128xf32>
    %431 = vector.extract_strided_slice %419 {offsets = [0, 128], sizes = [8, 128], strides = [1, 1]} : vector<8x384xf32> to vector<8x128xf32>
    %432 = vector.extract_strided_slice %422 {offsets = [0, 128], sizes = [8, 128], strides = [1, 1]} : vector<8x384xf32> to vector<8x128xf32>
    %433 = arith.addf %431, %432 : vector<8x128xf32>
    %434 = arith.negf %433 : vector<8x128xf32>
    %435 = math.exp %434 : vector<8x128xf32>
    %cst_125 = arith.constant 1.000000e+00 : f32
    %436 = vector.broadcast %cst_125 : f32 to vector<8x128xf32>
    %437 = arith.addf %436, %435 : vector<8x128xf32>
    %438 = arith.divf %436, %437 : vector<8x128xf32>
    %439 = vector.extract_strided_slice %419 {offsets = [0, 256], sizes = [8, 128], strides = [1, 1]} : vector<8x384xf32> to vector<8x128xf32>
    %440 = vector.extract_strided_slice %422 {offsets = [0, 256], sizes = [8, 128], strides = [1, 1]} : vector<8x384xf32> to vector<8x128xf32>
    %441 = vector.broadcast %2 : vector<1x128xf32> to vector<8x128xf32>
    %442 = arith.addf %440, %441 : vector<8x128xf32>
    %443 = arith.mulf %430, %442 : vector<8x128xf32>
    %444 = arith.addf %439, %443 : vector<8x128xf32>
    %445 = math.tanh %444 : vector<8x128xf32>
    %cst_126 = arith.constant 1.000000e+00 : f32
    %446 = vector.broadcast %cst_126 : f32 to vector<8x128xf32>
    %447 = arith.subf %446, %438 : vector<8x128xf32>
    %448 = arith.mulf %447, %445 : vector<8x128xf32>
    %449 = arith.mulf %438, %375 : vector<8x128xf32>
    %450 = arith.addf %448, %449 : vector<8x128xf32>
    %c1_i32_127 = arith.constant 1 : i32
    %451 = arith.subi %c6_i32, %c1_i32_127 : i32
    %452 = arith.index_cast %451 : i32 to index
    %c0_128 = arith.constant 0 : index
    %c0_129 = arith.constant 0 : index
    %453 = vector.load %arg8[%452, %c0_128, %c0_129] : memref<8x8x128xf32, #tpu.memory_space<vmem>>, vector<1x8x128xf32>
    %454 = vector.shape_cast %453 : vector<1x8x128xf32> to vector<8x128xf32>
    %455 = vector.shape_cast %450 : vector<8x128xf32> to vector<1x8x128xf32>
    tpu.vector_store %arg8[%452, %c0_128, %c0_129], %455 {strides = array<i32>} : memref<8x8x128xf32, #tpu.memory_space<vmem>>, vector<1x8x128xf32>,
    %456 = arith.index_cast %c6_i32 : i32 to index
    %c0_130 = arith.constant 0 : index
    %c0_131 = arith.constant 0 : index
    %457 = vector.load %arg0[%456, %c0_130, %c0_131] : memref<8x8x384xf32, #tpu.memory_space<vmem>>, vector<1x8x384xf32>
    %458 = vector.shape_cast %457 : vector<1x8x384xf32> to vector<8x384xf32>
    %459 = arith.truncf %414 : vector<8x128xf32> to vector<8x128xbf16>
    %c0_132 = arith.constant 0 : index
    %c0_133 = arith.constant 0 : index
    %460 = vector.load %arg1[%c0_132, %c0_133] : memref<128x384xbf16, #tpu.memory_space<vmem>>, vector<128x384xbf16>
    %cst_134 = arith.constant dense<0.000000e+00> : vector<8x384xf32>
    %461 = tpu.matmul %459, %460, %cst_134 {dimension_numbers = #tpu.dot_dimension_numbers<[1], [0], [0], [1], [0, 0, 1, 1], [], []>} : vector<8x128xbf16>, vector<128x384xbf16>, vector<8x384xf32> -> vector<8x384xf32>
    %462 = vector.extract_strided_slice %458 {offsets = [0, 0], sizes = [8, 128], strides = [1, 1]} : vector<8x384xf32> to vector<8x128xf32>
    %463 = vector.extract_strided_slice %461 {offsets = [0, 0], sizes = [8, 128], strides = [1, 1]} : vector<8x384xf32> to vector<8x128xf32>
    %464 = arith.addf %462, %463 : vector<8x128xf32>
    %465 = arith.negf %464 : vector<8x128xf32>
    %466 = math.exp %465 : vector<8x128xf32>
    %cst_135 = arith.constant 1.000000e+00 : f32
    %467 = vector.broadcast %cst_135 : f32 to vector<8x128xf32>
    %468 = arith.addf %467, %466 : vector<8x128xf32>
    %469 = arith.divf %467, %468 : vector<8x128xf32>
    %470 = vector.extract_strided_slice %458 {offsets = [0, 128], sizes = [8, 128], strides = [1, 1]} : vector<8x384xf32> to vector<8x128xf32>
    %471 = vector.extract_strided_slice %461 {offsets = [0, 128], sizes = [8, 128], strides = [1, 1]} : vector<8x384xf32> to vector<8x128xf32>
    %472 = arith.addf %470, %471 : vector<8x128xf32>
    %473 = arith.negf %472 : vector<8x128xf32>
    %474 = math.exp %473 : vector<8x128xf32>
    %cst_136 = arith.constant 1.000000e+00 : f32
    %475 = vector.broadcast %cst_136 : f32 to vector<8x128xf32>
    %476 = arith.addf %475, %474 : vector<8x128xf32>
    %477 = arith.divf %475, %476 : vector<8x128xf32>
    %478 = vector.extract_strided_slice %458 {offsets = [0, 256], sizes = [8, 128], strides = [1, 1]} : vector<8x384xf32> to vector<8x128xf32>
    %479 = vector.extract_strided_slice %461 {offsets = [0, 256], sizes = [8, 128], strides = [1, 1]} : vector<8x384xf32> to vector<8x128xf32>
    %480 = vector.broadcast %0 : vector<1x128xf32> to vector<8x128xf32>
    %481 = arith.addf %479, %480 : vector<8x128xf32>
    %482 = arith.mulf %469, %481 : vector<8x128xf32>
    %483 = arith.addf %478, %482 : vector<8x128xf32>
    %484 = math.tanh %483 : vector<8x128xf32>
    %cst_137 = arith.constant 1.000000e+00 : f32
    %485 = vector.broadcast %cst_137 : f32 to vector<8x128xf32>
    %486 = arith.subf %485, %477 : vector<8x128xf32>
    %487 = arith.mulf %486, %484 : vector<8x128xf32>
    %488 = arith.mulf %477, %414 : vector<8x128xf32>
    %489 = arith.addf %487, %488 : vector<8x128xf32>
    %490 = arith.truncf %489 : vector<8x128xf32> to vector<8x128xbf16>
    %c0_138 = arith.constant 0 : index
    %c0_139 = arith.constant 0 : index
    %491 = vector.load %arg3[%c0_138, %c0_139] : memref<128x384xbf16, #tpu.memory_space<vmem>>, vector<128x384xbf16>
    %cst_140 = arith.constant dense<0.000000e+00> : vector<8x384xf32>
    %492 = tpu.matmul %490, %491, %cst_140 {dimension_numbers = #tpu.dot_dimension_numbers<[1], [0], [0], [1], [0, 0, 1, 1], [], []>} : vector<8x128xbf16>, vector<128x384xbf16>, vector<8x384xf32> -> vector<8x384xf32>
    %493 = vector.broadcast %1 : vector<1x384xf32> to vector<8x384xf32>
    %494 = arith.addf %492, %493 : vector<8x384xf32>
    %c7_i32 = arith.constant 7 : i32
    %495 = arith.truncf %450 : vector<8x128xf32> to vector<8x128xbf16>
    %c0_141 = arith.constant 0 : index
    %c0_142 = arith.constant 0 : index
    %496 = vector.load %arg5[%c0_141, %c0_142] : memref<128x384xbf16, #tpu.memory_space<vmem>>, vector<128x384xbf16>
    %cst_143 = arith.constant dense<0.000000e+00> : vector<8x384xf32>
    %497 = tpu.matmul %495, %496, %cst_143 {dimension_numbers = #tpu.dot_dimension_numbers<[1], [0], [0], [1], [0, 0, 1, 1], [], []>} : vector<8x128xbf16>, vector<128x384xbf16>, vector<8x384xf32> -> vector<8x384xf32>
    %498 = vector.extract_strided_slice %494 {offsets = [0, 0], sizes = [8, 128], strides = [1, 1]} : vector<8x384xf32> to vector<8x128xf32>
    %499 = vector.extract_strided_slice %497 {offsets = [0, 0], sizes = [8, 128], strides = [1, 1]} : vector<8x384xf32> to vector<8x128xf32>
    %500 = arith.addf %498, %499 : vector<8x128xf32>
    %501 = arith.negf %500 : vector<8x128xf32>
    %502 = math.exp %501 : vector<8x128xf32>
    %cst_144 = arith.constant 1.000000e+00 : f32
    %503 = vector.broadcast %cst_144 : f32 to vector<8x128xf32>
    %504 = arith.addf %503, %502 : vector<8x128xf32>
    %505 = arith.divf %503, %504 : vector<8x128xf32>
    %506 = vector.extract_strided_slice %494 {offsets = [0, 128], sizes = [8, 128], strides = [1, 1]} : vector<8x384xf32> to vector<8x128xf32>
    %507 = vector.extract_strided_slice %497 {offsets = [0, 128], sizes = [8, 128], strides = [1, 1]} : vector<8x384xf32> to vector<8x128xf32>
    %508 = arith.addf %506, %507 : vector<8x128xf32>
    %509 = arith.negf %508 : vector<8x128xf32>
    %510 = math.exp %509 : vector<8x128xf32>
    %cst_145 = arith.constant 1.000000e+00 : f32
    %511 = vector.broadcast %cst_145 : f32 to vector<8x128xf32>
    %512 = arith.addf %511, %510 : vector<8x128xf32>
    %513 = arith.divf %511, %512 : vector<8x128xf32>
    %514 = vector.extract_strided_slice %494 {offsets = [0, 256], sizes = [8, 128], strides = [1, 1]} : vector<8x384xf32> to vector<8x128xf32>
    %515 = vector.extract_strided_slice %497 {offsets = [0, 256], sizes = [8, 128], strides = [1, 1]} : vector<8x384xf32> to vector<8x128xf32>
    %516 = vector.broadcast %2 : vector<1x128xf32> to vector<8x128xf32>
    %517 = arith.addf %515, %516 : vector<8x128xf32>
    %518 = arith.mulf %505, %517 : vector<8x128xf32>
    %519 = arith.addf %514, %518 : vector<8x128xf32>
    %520 = math.tanh %519 : vector<8x128xf32>
    %cst_146 = arith.constant 1.000000e+00 : f32
    %521 = vector.broadcast %cst_146 : f32 to vector<8x128xf32>
    %522 = arith.subf %521, %513 : vector<8x128xf32>
    %523 = arith.mulf %522, %520 : vector<8x128xf32>
    %524 = arith.mulf %513, %450 : vector<8x128xf32>
    %525 = arith.addf %523, %524 : vector<8x128xf32>
    %c1_i32_147 = arith.constant 1 : i32
    %526 = arith.subi %c7_i32, %c1_i32_147 : i32
    %527 = arith.index_cast %526 : i32 to index
    %c0_148 = arith.constant 0 : index
    %c0_149 = arith.constant 0 : index
    %528 = vector.load %arg8[%527, %c0_148, %c0_149] : memref<8x8x128xf32, #tpu.memory_space<vmem>>, vector<1x8x128xf32>
    %529 = vector.shape_cast %528 : vector<1x8x128xf32> to vector<8x128xf32>
    %530 = vector.shape_cast %525 : vector<8x128xf32> to vector<1x8x128xf32>
    tpu.vector_store %arg8[%527, %c0_148, %c0_149], %530 {strides = array<i32>} : memref<8x8x128xf32, #tpu.memory_space<vmem>>, vector<1x8x128xf32>,
    %531 = arith.index_cast %c7_i32 : i32 to index
    %c0_150 = arith.constant 0 : index
    %c0_151 = arith.constant 0 : index
    %532 = vector.load %arg0[%531, %c0_150, %c0_151] : memref<8x8x384xf32, #tpu.memory_space<vmem>>, vector<1x8x384xf32>
    %533 = vector.shape_cast %532 : vector<1x8x384xf32> to vector<8x384xf32>
    %534 = arith.truncf %489 : vector<8x128xf32> to vector<8x128xbf16>
    %c0_152 = arith.constant 0 : index
    %c0_153 = arith.constant 0 : index
    %535 = vector.load %arg1[%c0_152, %c0_153] : memref<128x384xbf16, #tpu.memory_space<vmem>>, vector<128x384xbf16>
    %cst_154 = arith.constant dense<0.000000e+00> : vector<8x384xf32>
    %536 = tpu.matmul %534, %535, %cst_154 {dimension_numbers = #tpu.dot_dimension_numbers<[1], [0], [0], [1], [0, 0, 1, 1], [], []>} : vector<8x128xbf16>, vector<128x384xbf16>, vector<8x384xf32> -> vector<8x384xf32>
    %537 = vector.extract_strided_slice %533 {offsets = [0, 0], sizes = [8, 128], strides = [1, 1]} : vector<8x384xf32> to vector<8x128xf32>
    %538 = vector.extract_strided_slice %536 {offsets = [0, 0], sizes = [8, 128], strides = [1, 1]} : vector<8x384xf32> to vector<8x128xf32>
    %539 = arith.addf %537, %538 : vector<8x128xf32>
    %540 = arith.negf %539 : vector<8x128xf32>
    %541 = math.exp %540 : vector<8x128xf32>
    %cst_155 = arith.constant 1.000000e+00 : f32
    %542 = vector.broadcast %cst_155 : f32 to vector<8x128xf32>
    %543 = arith.addf %542, %541 : vector<8x128xf32>
    %544 = arith.divf %542, %543 : vector<8x128xf32>
    %545 = vector.extract_strided_slice %533 {offsets = [0, 128], sizes = [8, 128], strides = [1, 1]} : vector<8x384xf32> to vector<8x128xf32>
    %546 = vector.extract_strided_slice %536 {offsets = [0, 128], sizes = [8, 128], strides = [1, 1]} : vector<8x384xf32> to vector<8x128xf32>
    %547 = arith.addf %545, %546 : vector<8x128xf32>
    %548 = arith.negf %547 : vector<8x128xf32>
    %549 = math.exp %548 : vector<8x128xf32>
    %cst_156 = arith.constant 1.000000e+00 : f32
    %550 = vector.broadcast %cst_156 : f32 to vector<8x128xf32>
    %551 = arith.addf %550, %549 : vector<8x128xf32>
    %552 = arith.divf %550, %551 : vector<8x128xf32>
    %553 = vector.extract_strided_slice %533 {offsets = [0, 256], sizes = [8, 128], strides = [1, 1]} : vector<8x384xf32> to vector<8x128xf32>
    %554 = vector.extract_strided_slice %536 {offsets = [0, 256], sizes = [8, 128], strides = [1, 1]} : vector<8x384xf32> to vector<8x128xf32>
    %555 = vector.broadcast %0 : vector<1x128xf32> to vector<8x128xf32>
    %556 = arith.addf %554, %555 : vector<8x128xf32>
    %557 = arith.mulf %544, %556 : vector<8x128xf32>
    %558 = arith.addf %553, %557 : vector<8x128xf32>
    %559 = math.tanh %558 : vector<8x128xf32>
    %cst_157 = arith.constant 1.000000e+00 : f32
    %560 = vector.broadcast %cst_157 : f32 to vector<8x128xf32>
    %561 = arith.subf %560, %552 : vector<8x128xf32>
    %562 = arith.mulf %561, %559 : vector<8x128xf32>
    %563 = arith.mulf %552, %489 : vector<8x128xf32>
    %564 = arith.addf %562, %563 : vector<8x128xf32>
    %565 = arith.truncf %564 : vector<8x128xf32> to vector<8x128xbf16>
    %c0_158 = arith.constant 0 : index
    %c0_159 = arith.constant 0 : index
    %566 = vector.load %arg3[%c0_158, %c0_159] : memref<128x384xbf16, #tpu.memory_space<vmem>>, vector<128x384xbf16>
    %cst_160 = arith.constant dense<0.000000e+00> : vector<8x384xf32>
    %567 = tpu.matmul %565, %566, %cst_160 {dimension_numbers = #tpu.dot_dimension_numbers<[1], [0], [0], [1], [0, 0, 1, 1], [], []>} : vector<8x128xbf16>, vector<128x384xbf16>, vector<8x384xf32> -> vector<8x384xf32>
    %568 = vector.broadcast %1 : vector<1x384xf32> to vector<8x384xf32>
    %569 = arith.addf %567, %568 : vector<8x384xf32>
    %c7_i32_161 = arith.constant 7 : i32
    %570 = arith.truncf %525 : vector<8x128xf32> to vector<8x128xbf16>
    %c0_162 = arith.constant 0 : index
    %c0_163 = arith.constant 0 : index
    %571 = vector.load %arg5[%c0_162, %c0_163] : memref<128x384xbf16, #tpu.memory_space<vmem>>, vector<128x384xbf16>
    %cst_164 = arith.constant dense<0.000000e+00> : vector<8x384xf32>
    %572 = tpu.matmul %570, %571, %cst_164 {dimension_numbers = #tpu.dot_dimension_numbers<[1], [0], [0], [1], [0, 0, 1, 1], [], []>} : vector<8x128xbf16>, vector<128x384xbf16>, vector<8x384xf32> -> vector<8x384xf32>
    %573 = vector.extract_strided_slice %569 {offsets = [0, 0], sizes = [8, 128], strides = [1, 1]} : vector<8x384xf32> to vector<8x128xf32>
    %574 = vector.extract_strided_slice %572 {offsets = [0, 0], sizes = [8, 128], strides = [1, 1]} : vector<8x384xf32> to vector<8x128xf32>
    %575 = arith.addf %573, %574 : vector<8x128xf32>
    %576 = arith.negf %575 : vector<8x128xf32>
    %577 = math.exp %576 : vector<8x128xf32>
    %cst_165 = arith.constant 1.000000e+00 : f32
    %578 = vector.broadcast %cst_165 : f32 to vector<8x128xf32>
    %579 = arith.addf %578, %577 : vector<8x128xf32>
    %580 = arith.divf %578, %579 : vector<8x128xf32>
    %581 = vector.extract_strided_slice %569 {offsets = [0, 128], sizes = [8, 128], strides = [1, 1]} : vector<8x384xf32> to vector<8x128xf32>
    %582 = vector.extract_strided_slice %572 {offsets = [0, 128], sizes = [8, 128], strides = [1, 1]} : vector<8x384xf32> to vector<8x128xf32>
    %583 = arith.addf %581, %582 : vector<8x128xf32>
    %584 = arith.negf %583 : vector<8x128xf32>
    %585 = math.exp %584 : vector<8x128xf32>
    %cst_166 = arith.constant 1.000000e+00 : f32
    %586 = vector.broadcast %cst_166 : f32 to vector<8x128xf32>
    %587 = arith.addf %586, %585 : vector<8x128xf32>
    %588 = arith.divf %586, %587 : vector<8x128xf32>
    %589 = vector.extract_strided_slice %569 {offsets = [0, 256], sizes = [8, 128], strides = [1, 1]} : vector<8x384xf32> to vector<8x128xf32>
    %590 = vector.extract_strided_slice %572 {offsets = [0, 256], sizes = [8, 128], strides = [1, 1]} : vector<8x384xf32> to vector<8x128xf32>
    %591 = vector.broadcast %2 : vector<1x128xf32> to vector<8x128xf32>
    %592 = arith.addf %590, %591 : vector<8x128xf32>
    %593 = arith.mulf %580, %592 : vector<8x128xf32>
    %594 = arith.addf %589, %593 : vector<8x128xf32>
    %595 = math.tanh %594 : vector<8x128xf32>
    %cst_167 = arith.constant 1.000000e+00 : f32
    %596 = vector.broadcast %cst_167 : f32 to vector<8x128xf32>
    %597 = arith.subf %596, %588 : vector<8x128xf32>
    %598 = arith.mulf %597, %595 : vector<8x128xf32>
    %599 = arith.mulf %588, %525 : vector<8x128xf32>
    %600 = arith.addf %598, %599 : vector<8x128xf32>
    %c7 = arith.constant 7 : index
    %c0_168 = arith.constant 0 : index
    %c0_169 = arith.constant 0 : index
    %601 = vector.load %arg8[%c7, %c0_168, %c0_169] : memref<8x8x128xf32, #tpu.memory_space<vmem>>, vector<1x8x128xf32>
    %602 = vector.shape_cast %601 : vector<1x8x128xf32> to vector<8x128xf32>
    %603 = vector.shape_cast %600 : vector<8x128xf32> to vector<1x8x128xf32>
    tpu.vector_store %arg8[%c7, %c0_168, %c0_169], %603 {strides = array<i32>} : memref<8x8x128xf32, #tpu.memory_space<vmem>>, vector<1x8x128xf32>,
    %c0_170 = arith.constant 0 : index
    %c0_171 = arith.constant 0 : index
    %c0_172 = arith.constant 0 : index
    %604 = vector.load %arg9[%c0_170, %c0_171, %c0_172] : memref<2x8x128xf32, #tpu.memory_space<vmem>>, vector<1x8x128xf32>
    %605 = vector.shape_cast %604 : vector<1x8x128xf32> to vector<8x128xf32>
    %606 = vector.shape_cast %564 : vector<8x128xf32> to vector<1x8x128xf32>
    tpu.vector_store %arg9[%c0_170, %c0_171, %c0_172], %606 {strides = array<i32>} : memref<2x8x128xf32, #tpu.memory_space<vmem>>, vector<1x8x128xf32>,
    %c1_173 = arith.constant 1 : index
    %c0_174 = arith.constant 0 : index
    %c0_175 = arith.constant 0 : index
    %607 = vector.load %arg9[%c1_173, %c0_174, %c0_175] : memref<2x8x128xf32, #tpu.memory_space<vmem>>, vector<1x8x128xf32>
    %608 = vector.shape_cast %607 : vector<1x8x128xf32> to vector<8x128xf32>
    %609 = vector.shape_cast %600 : vector<8x128xf32> to vector<1x8x128xf32>
    tpu.vector_store %arg9[%c1_173, %c0_174, %c0_175], %609 {strides = array<i32>} : memref<2x8x128xf32, #tpu.memory_space<vmem>>, vector<1x8x128xf32>,
    return
  }
}

</mosaic_0001>

<bundles_post_ra>
// kernel: tpu_custom_call.1
= control target key start
LH: loop header
LB: loop body
LE: loop exit
PB: predicated region body
PF: predicated region fallthrough
CT: control target
= control target key end

     0   :  { %15 = vsyncpa [#allocation3], 0  ;;  %s9873_s0 = inlined_call_operand.hbm [shape: f32[8,8,384], index: 0, kind: input, shape index: {}]   ;;  %s9874_s1 = inlined_call_operand.hbm [shape: bf16[128,384], index: 1, kind: input, shape index: {}]   ;;  %s9875_s2 = inlined_call_operand.vmem [shape: f32[1,128], index: 2, kind: input, shape index: {}]   ;;  %s9876_s3 = inlined_call_operand.hbm [shape: bf16[128,384], index: 3, kind: input, shape index: {}]   ;;  %s9877_s4 = inlined_call_operand.vmem [shape: f32[1,384], index: 4, kind: input, shape index: {}]   ;;  %s9878_s5 = inlined_call_operand.hbm [shape: bf16[128,384], index: 5, kind: input, shape index: {}]   ;;  %s9879_s6 = inlined_call_operand.vmem [shape: f32[1,128], index: 6, kind: input, shape index: {}]   ;;  %s9880_s7 = inlined_call_operand.vmem [shape: f32[2,8,128], index: 7, kind: input, shape index: {}]   ;;  %s9881_s8 = inlined_call_operand.hbm [shape: f32[8,8,128], index: 8, kind: output, shape index: {0}]   ;;  %s9882_s9 = inlined_call_operand.hbm [shape: f32[2,8,128], index: 9, kind: output, shape index: {1}]  }
   0x1   :  { %16 = vsyncpa [#allocation6], 0 }
   0x2   :  { %17 = vsyncpa [#allocation9], 0 }
   0x3   :  { %18 = vsyncpa [#allocation4], 0 }
   0x4   :  { %19 = vsyncpa [#allocation12], 0  ;;  %s8533_s30 = smov [#allocation5]   ;;  %s8391_s13 = scalar_lea.hbm %s9874_s1, 3072 }
   0x5   :  { %s37_s10 = sshll.u32 %s8533_s30, 4  ;;  %p8392_p0 = scmp.ne.s32.totalorder %s9874_s1, %s8391_s13  ;;  %s38_s10 = int_to_ptr.vmem [resolvable:$true] %s37_s10 }
   0x6   :  { %p8395_p1 = scmp.lt.u32.totalorder %s8391_s13, %s9874_s1 }
   0x8   :  { %p8397_p2 = pnand %p8395_p1, %p8392_p0 }
   0xa   :  { %8400 = shalt.err (!%p8397_p2)
}
   0xb   :  { %s8401_s18 = scalar_lea.vmem %s38_s10, 3072  ;;  %p8406_p4 = scmp.lt.s32.totalorder %s38_s10, %s38_s10 }
   0xc   :  { %p8402_p3 = scmp.ne.s32.totalorder %s38_s10, %s8401_s18  ;;  %p8407_p5 = scmp.lt.s32.totalorder %s8401_s18, %s8401_s18 }
   0xe   :  { %p8408_p6 = por %p8407_p5, %p8406_p4 }
  0x10   :  { %p8409_p7 = pnand %p8408_p6, %p8402_p3 }
  0x12   :  { %8412 = shalt.err (!%p8409_p7)
}
  0x13   :  { %s8534_s19 = smov 192   ;;  %s8535_s20 = smov 12  }
  0x14   :  { %43 = dma.hbm_to_vmem [thread:$0]  %s9874_s1, 3072, %s38_s10, [#allocation6], %s8534_s19, %s8534_s19, %s8535_s20  }
  0x15   :  { %s8536_s23 = smov [#allocation2]   ;;  %s8413_s27 = scalar_lea.hbm %s9873_s0, 3072 }
  0x16   :  { %s25_s24 = sshll.u32 %s8536_s23, 4  ;;  %p8414_p8 = scmp.ne.s32.totalorder %s9873_s0, %s8413_s27  ;;  %s26_s24 = int_to_ptr.vmem [resolvable:$true] %s25_s24 }
  0x17   :  { %p8417_p9 = scmp.lt.u32.totalorder %s8413_s27, %s9873_s0 }
  0x19   :  { %p8419_p10 = pnand %p8417_p9, %p8414_p8 }
  0x1b   :  { %8422 = shalt.err (!%p8419_p10)
}
  0x1c   :  { %s8423_s12 = scalar_lea.vmem %s26_s24, 3072  ;;  %p8428_p12 = scmp.lt.s32.totalorder %s26_s24, %s26_s24 }
  0x1d   :  { %p8424_p11 = scmp.ne.s32.totalorder %s26_s24, %s8423_s12  ;;  %p8429_p13 = scmp.lt.s32.totalorder %s8423_s12, %s8423_s12 }
  0x1f   :  { %p8430_p0 = por %p8429_p13, %p8428_p12 }
  0x21   :  { %p8431_p1 = pnand %p8430_p0, %p8424_p11 }
  0x23   :  { %8434 = shalt.err (!%p8431_p1)
}
  0x24   :  { %s8537_s1 = smov 384   ;;  %s8538_s10 = smov 24  }
  0x25   :  { %31 = dma.hbm_to_vmem [thread:$0]  %s9873_s0, 3072, %s26_s24, [#allocation3], %s8537_s1, %s8537_s1, %s8538_s10  }
  0x26   :  { %s8539_s15 = smov [#allocation7]   ;;  %s8540_s17 = smov [#allocation8]  }
  0x27   :  { %s51_s16 = sshll.u32 %s8539_s15, 4  ;;  %s65_s18 = sshll.u32 %s8540_s17, 4  ;;  %s52_s16 = int_to_ptr.vmem [resolvable:$true] %s51_s16  ;;  %s8625_s18 = int_to_ptr.vmem [resolvable:$true] %s65_s18 }
  0x28   :  { %s8435_s23 = scalar_lea.hbm %s9876_s3, 3072 }
  0x29   :  { %p8436_p2 = scmp.ne.s32.totalorder %s9876_s3, %s8435_s23  ;;  %p8439_p3 = scmp.lt.u32.totalorder %s8435_s23, %s9876_s3 }
  0x2b   :  { %p8441_p4 = pnand %p8439_p3, %p8436_p2 }
  0x2d   :  { %8444 = shalt.err (!%p8441_p4)
}
  0x2e   :  { %s8445_s0 = scalar_lea.vmem %s52_s16, 3072  ;;  %p8450_p6 = scmp.lt.s32.totalorder %s52_s16, %s52_s16 }
  0x2f   :  { %p8446_p5 = scmp.ne.s32.totalorder %s52_s16, %s8445_s0  ;;  %p8451_p7 = scmp.lt.s32.totalorder %s8445_s0, %s8445_s0 }
  0x31   :  { %p8452_p8 = por %p8451_p7, %p8450_p6 }
  0x33   :  { %p8453_p9 = pnand %p8452_p8, %p8446_p5 }
  0x35   :  { %8456 = shalt.err (!%p8453_p9)
}
  0x36   :  { %57 = dma.hbm_to_vmem [thread:$0]  %s9876_s3, 3072, %s52_s16, [#allocation6], %s8534_s19, %s8534_s19, %s8535_s20  }
  0x37   :  { %s8457_s12 = scalar_lea.hbm %s9878_s5, 3072 }
  0x38   :  { %p8458_p10 = scmp.ne.s32.totalorder %s9878_s5, %s8457_s12  ;;  %p8461_p11 = scmp.lt.u32.totalorder %s8457_s12, %s9878_s5 }
  0x3a   :  { %p8463_p12 = pnand %p8461_p11, %p8458_p10 }
  0x3c   :  { %8466 = shalt.err (!%p8463_p12)
}
  0x3d   :  { %s8467_s15 = scalar_lea.vmem %s8625_s18, 3072  ;;  %p8472_p0 = scmp.lt.s32.totalorder %s8625_s18, %s8625_s18 }
  0x3e   :  { %p8468_p13 = scmp.ne.s32.totalorder %s8625_s18, %s8467_s15  ;;  %p8473_p1 = scmp.lt.s32.totalorder %s8467_s15, %s8467_s15 }
  0x40   :  { %p8474_p2 = por %p8473_p1, %p8472_p0 }
  0x42   :  { %p8475_p3 = pnand %p8474_p2, %p8468_p13 }
  0x44   :  { %8478 = shalt.err (!%p8475_p3)
}
  0x45   :  { %71 = dma.hbm_to_vmem [thread:$0]  %s9878_s5, 3072, %s8625_s18, [#allocation9], %s8534_s19, %s8534_s19, %s8535_s20  }
  0x46   :  { %8523 = dma.done.wait [#allocation3], 3072  }
  0x47   :  { %8524 = vsyncadd [#allocation3], 4294964224 }
  0x48   :  { %8525 = dma.done.wait [#allocation6], 6144  }
  0x49   :  { %8526 = vsyncadd [#allocation6], 4294961152 }
  0x4a   :  { %8527 = dma.done.wait [#allocation9], 3072  }
  0x4b   :  { %8528 = vsyncadd [#allocation9], 4294964224  ;;  %v8541_v0 = vmov 0.0   ;;  %v8542_v1 = vmov 0   ;;  %vm8543_vm0 = vmmov 0   ;;  %v92_v23 = vld [vmem:[%s9880_s7] sm:$0xff] }
  0x4c   :  { %7187 = vmatprep.subr.bf16.mxu1 %v8541_v0  ;;  %289 = vmatprep.mubr.bf16.mxu0 %v8542_v1  ;;  %v7730_v2 = vld [vmem:[#allocation5 + $0x4] ss:$12 sps:$4 sm:$0xff]   ;;  %v7732_v3 = vld [vmem:[#allocation5] ss:$12 sps:$4 sm:$0xff]   ;;  %v7733_v4 = vld [vmem:[#allocation5 + $0x1c] ss:$12 sps:$4 sm:$0xff]   ;;  %v96_v26 = vpack.c.bf16 %v92_v23, %v92_v23 }
  0x4d   :  { %7203 = vmatprep.mubr.msk.bf16.mxu1 %vm8543_vm0, %v8541_v0  ;;  %257 = vmatprep.subr.bf16.mxu0 %v7730_v2  ;;  %v7735_v5 = vld [vmem:[#allocation5 + $0x18] ss:$12 sps:$4 sm:$0xff]   ;;  %v7736_v6 = vld [vmem:[#allocation5 + $0x34] ss:$12 sps:$4 sm:$0xff]   ;;  %v7738_v7 = vld [vmem:[#allocation5 + $0x30] ss:$12 sps:$4 sm:$0xff]  }
  0x4e   :  { %258 = vmatpush1.bf16.msra.mxu0 %v7732_v3  ;;  %v7739_v8 = vld [vmem:[#allocation5 + $0x4c] ss:$12 sps:$4 sm:$0xff]   ;;  %v7750_v9 = vld [vmem:[#allocation5 + $0x8] ss:$12 sps:$4 sm:$0xff]   ;;  %v7742_v11 = vld [vmem:[#allocation5 + $0x64] ss:$12 sps:$4 sm:$0xff]  }
  0x4f   :  { %259 = vmatprep.subr.bf16.mxu0 %v7733_v4  ;;  %v7741_v10 = vld [vmem:[#allocation5 + $0x48] ss:$12 sps:$4 sm:$0xff]   ;;  %7188 = vmatpush3.bf16.msra.mxu1 %v7750_v9  ;;  %v7754_v12 = vld [vmem:[#allocation5 + $0x20] ss:$12 sps:$4 sm:$0xff]   ;;  %v7756_v14 = vld [vmem:[#allocation5 + $0x38] ss:$12 sps:$4 sm:$0xff]  }
  0x50   :  { %7189 = vmatprep.subr.bf16.mxu1 %v8541_v0  ;;  %v7744_v13 = vld [vmem:[#allocation5 + $0x60] ss:$12 sps:$4 sm:$0xff]   ;;  %v7745_v15 = vld [vmem:[#allocation5 + $0x7c] ss:$12 sps:$4 sm:$0xff]   ;;  %v7747_v16 = vld [vmem:[#allocation5 + $0x78] ss:$12 sps:$4 sm:$0xff]  }
  0x51   :  { %v7748_v17 = vld [vmem:[#allocation5 + $0x94] ss:$12 sps:$4 sm:$0xff]   ;;  %v7757_v18 = vld [vmem:[#allocation5 + $0x50] ss:$12 sps:$4 sm:$0xff]   ;;  %v7752_v21 = vld [vmem:[#allocation5 + $0xac] ss:$12 sps:$4 sm:$0xff]  }
  0x52   :  { %260 = vmatpush1.bf16.msra.mxu0 %v7735_v5  ;;  %v7751_v19 = vld [vmem:[#allocation5 + $0x90] ss:$12 sps:$4 sm:$0xff]   ;;  %v7758_v20 = vld [vmem:[#allocation5 + $0x68] ss:$12 sps:$4 sm:$0xff]   ;;  %v7759_v24 = vld [vmem:[#allocation5 + $0x80] ss:$12 sps:$4 sm:$0xff]  }
  0x53   :  { %261 = vmatprep.subr.bf16.mxu0 %v7736_v6  ;;  %7190 = vmatpush3.bf16.msra.mxu1 %v7754_v12  ;;  %v7755_v22 = vld [vmem:[#allocation5 + $0xa8] ss:$12 sps:$4 sm:$0xff]   ;;  %v7760_v25 = vld [vmem:[#allocation5 + $0x98] ss:$12 sps:$4 sm:$0xff]   ;;  %v7761_v27 = vld [vmem:[#allocation5 + $0xb0] ss:$12 sps:$4 sm:$0xff]  }
  0x54   :  { %7191 = vmatprep.subr.bf16.mxu1 %v8541_v0  ;;  %v8680_v28 = vld [vmem:[#allocation7 + $0x4] ss:$12 sps:$4 sm:$0xff]   ;;  %v8682_v29 = vld [vmem:[#allocation7] ss:$12 sps:$4 sm:$0xff]   ;;  %v7765_v30 = vld [vmem:[#allocation7 + $0x8] ss:$12 sps:$4 sm:$0xff]  }
  0x55   :  { %v8686_v31 = vld [vmem:[#allocation7 + $0x18] ss:$12 sps:$4 sm:$0xff]   ;;  %v8688_v32 = vld [vmem:[#allocation7 + $0x1c] ss:$12 sps:$4 sm:$0xff]   ;;  %v7769_v33 = vld [vmem:[#allocation7 + $0x20] ss:$12 sps:$4 sm:$0xff]  }
  0x56   :  { %262 = vmatpush1.bf16.msra.mxu0 %v7738_v7  ;;  %v8693_v34 = vld [vmem:[#allocation7 + $0x34] ss:$12 sps:$4 sm:$0xff]   ;;  %v8696_v35 = vld [vmem:[#allocation7 + $0x30] ss:$12 sps:$4 sm:$0xff]   ;;  %v7773_v36 = vld [vmem:[#allocation7 + $0x38] ss:$12 sps:$4 sm:$0xff]  }
  0x57   :  { %263 = vmatprep.subr.bf16.mxu0 %v7739_v8  ;;  %7192 = vmatpush3.bf16.msra.mxu1 %v7756_v14  ;;  %v8700_v37 = vld [vmem:[#allocation7 + $0x4c] ss:$12 sps:$4 sm:$0xff]   ;;  %v8703_v38 = vld [vmem:[#allocation7 + $0x48] ss:$12 sps:$4 sm:$0xff]   ;;  %v7777_v39 = vld [vmem:[#allocation7 + $0x50] ss:$12 sps:$4 sm:$0xff]  }
  0x58   :  { %7193 = vmatprep.subr.bf16.mxu1 %v8541_v0  ;;  %v8707_v40 = vld [vmem:[#allocation7 + $0x64] ss:$12 sps:$4 sm:$0xff]   ;;  %v8710_v41 = vld [vmem:[#allocation7 + $0x60] ss:$12 sps:$4 sm:$0xff]   ;;  %v7781_v42 = vld [vmem:[#allocation7 + $0x68] ss:$12 sps:$4 sm:$0xff]  }
  0x59   :  { %v8713_v43 = vld [vmem:[#allocation7 + $0x7c] ss:$12 sps:$4 sm:$0xff]   ;;  %v8716_v44 = vld [vmem:[#allocation7 + $0x78] ss:$12 sps:$4 sm:$0xff]   ;;  %v7785_v45 = vld [vmem:[#allocation7 + $0x80] ss:$12 sps:$4 sm:$0xff]  }
  0x5a   :  { %264 = vmatpush1.bf16.msra.mxu0 %v7741_v10  ;;  %v8720_v46 = vld [vmem:[#allocation7 + $0x94] ss:$12 sps:$4 sm:$0xff]   ;;  %v8722_v47 = vld [vmem:[#allocation7 + $0x90] ss:$12 sps:$4 sm:$0xff]   ;;  %v7789_v48 = vld [vmem:[#allocation7 + $0x98] ss:$12 sps:$4 sm:$0xff]  }
  0x5b   :  { %265 = vmatprep.subr.bf16.mxu0 %v7742_v11  ;;  %7194 = vmatpush3.bf16.msra.mxu1 %v7757_v18  ;;  %v8724_v49 = vld [vmem:[#allocation7 + $0xac] ss:$12 sps:$4 sm:$0xff]   ;;  %v8729_v50 = vld [vmem:[#allocation7 + $0xa8] ss:$12 sps:$4 sm:$0xff]   ;;  %v7793_v51 = vld [vmem:[#allocation7 + $0xb0] ss:$12 sps:$4 sm:$0xff]  }
  0x5c   :  { %7195 = vmatprep.subr.bf16.mxu1 %v8541_v0  ;;  %v8731_v52 = vld [vmem:[#allocation8 + $0x4] ss:$12 sps:$4 sm:$0xff]   ;;  %v94_v56 = vld [vmem:[#allocation2 + $0x8] sm:$0xff]  ;;  %v8742_v8 = vld [vmem:[%s9875_s2] ss:$0 sm:$0xff]  ;;  %s8545_s1 = smov [#allocation11]  }
  0x5d   :  { %v93_v53 = vld [vmem:[#allocation2] sm:$0xff]  ;;  %v95_v12 = vld [vmem:[#allocation2 + $0x10] sm:$0xff]  ;;  %s6342_s10 = sshll.u32 %s8545_s1, 4  ;;  %s9842_s10 = int_to_ptr.vmem [resolvable:$true] %s6342_s10 }
  0x5e   :  { %266 = vmatpush1.bf16.msra.mxu0 %v7744_v13  ;;  %v7797_v23 = vld [vmem:[#allocation8 + $0x8] ss:$12 sps:$4 sm:$0xff]  }
  0x5f   :  { %267 = vmatprep.subr.bf16.mxu0 %v7745_v15  ;;  %7196 = vmatpush3.bf16.msra.mxu1 %v7758_v20 }
  0x60   :  { %7197 = vmatprep.subr.bf16.mxu1 %v8541_v0 }
  0x62   :  { %268 = vmatpush1.bf16.msra.mxu0 %v7747_v16 }
  0x63   :  { %269 = vmatprep.subr.bf16.mxu0 %v7748_v17  ;;  %7198 = vmatpush3.bf16.msra.mxu1 %v7759_v24 }
  0x64   :  { %7199 = vmatprep.subr.bf16.mxu1 %v8541_v0 }
  0x66   :  { %270 = vmatpush1.bf16.msra.mxu0 %v7751_v19  ;;  %v8370_v19 = vld [vmem:[%s9880_s7] sm:$0xff] }
  0x67   :  { %271 = vmatprep.subr.bf16.mxu0 %v7752_v21  ;;  %7200 = vmatpush3.bf16.msra.mxu1 %v7760_v25  ;;  %v8756_v25 = vld [vmem:[#allocation8 + $0x1c] ss:$12 sps:$4 sm:$0xff]  }
  0x68   :  { %7201 = vmatprep.subr.bf16.mxu1 %v8541_v0 }
  0x6a   :  { %272 = vmatpush1.bf16.msra.mxu0 %v7755_v22  ;;  %v8750_v22 = vld [vmem:[#allocation8] ss:$12 sps:$4 sm:$0xff]  }
  0x6b   :  { %7202 = vmatpush3.bf16.msra.mxu1 %v7761_v27  ;;  %543 = vmatprep.subr.bf16.mxu0 %v8680_v28  ;;  %v7801_v27 = vld [vmem:[#allocation8 + $0x20] ss:$12 sps:$4 sm:$0xff]  }
  0x6c   :  { %7207 = vmatprep.subr.bf16.mxu1 %v8541_v0 }
  0x6d   :  { %290 = vmatmul.mubr.bf16.vlgmr.msra.gmra.mrb[0].mxu0 %v96_v26 }
  0x6e   :  { %575 = vmatprep.mubr.bf16.mxu0 %v8542_v1  ;;  %7204 = vmatmul.mubr.bf16.vlgmr.msra.gmra.mrb[0].mxu1 %v96_v26  ;;  %v8761_v26 = vld [vmem:[#allocation8 + $0x18] ss:$12 sps:$4 sm:$0xff]  }
  0x6f   :  { %7223 = vmatprep.mubr.msk.bf16.mxu1 %vm8543_vm0, %v8541_v0  ;;  %544 = vmatpush1.bf16.msra.mxu0 %v8682_v29 }
  0x70   :  { %7208 = vmatpush3.bf16.msra.mxu1 %v7765_v30  ;;  %545 = vmatprep.subr.bf16.mxu0 %v8688_v32  ;;  %v8765_v30 = vld [vmem:[#allocation8 + $0x34] ss:$12 sps:$4 sm:$0xff]  }
  0x71   :  { %7209 = vmatprep.subr.bf16.mxu1 %v8541_v0 }
  0x73   :  { %546 = vmatpush1.bf16.msra.mxu0 %v8686_v31 }
  0x74   :  { %7210 = vmatpush3.bf16.msra.mxu1 %v7769_v33  ;;  %547 = vmatprep.subr.bf16.mxu0 %v8693_v34  ;;  %v8771_v33 = vld [vmem:[#allocation8 + $0x30] ss:$12 sps:$4 sm:$0xff]  }
  0x75   :  { %7211 = vmatprep.subr.bf16.mxu1 %v8541_v0 }
  0x77   :  { %548 = vmatpush1.bf16.msra.mxu0 %v8696_v35 }
  0x78   :  { %7212 = vmatpush3.bf16.msra.mxu1 %v7773_v36  ;;  %549 = vmatprep.subr.bf16.mxu0 %v8700_v37  ;;  %v7805_v36 = vld [vmem:[#allocation8 + $0x38] ss:$12 sps:$4 sm:$0xff]  }
  0x79   :  { %7213 = vmatprep.subr.bf16.mxu1 %v8541_v0 }
  0x7b   :  { %550 = vmatpush1.bf16.msra.mxu0 %v8703_v38 }
  0x7c   :  { %7214 = vmatpush3.bf16.msra.mxu1 %v7777_v39  ;;  %551 = vmatprep.subr.bf16.mxu0 %v8707_v40  ;;  %v8775_v39 = vld [vmem:[#allocation8 + $0x4c] ss:$12 sps:$4 sm:$0xff]  }
  0x7d   :  { %7215 = vmatprep.subr.bf16.mxu1 %v8541_v0 }
  0x7f   :  { %552 = vmatpush1.bf16.msra.mxu0 %v8710_v41 }
  0x80   :  { %7216 = vmatpush3.bf16.msra.mxu1 %v7781_v42  ;;  %553 = vmatprep.subr.bf16.mxu0 %v8713_v43  ;;  %v8778_v42 = vld [vmem:[#allocation8 + $0x48] ss:$12 sps:$4 sm:$0xff]  }
  0x81   :  { %7217 = vmatprep.subr.bf16.mxu1 %v8541_v0 }
  0x83   :  { %554 = vmatpush1.bf16.msra.mxu0 %v8716_v44 }
  0x84   :  { %7218 = vmatpush3.bf16.msra.mxu1 %v7785_v45  ;;  %555 = vmatprep.subr.bf16.mxu0 %v8720_v46  ;;  %v7809_v45 = vld [vmem:[#allocation8 + $0x50] ss:$12 sps:$4 sm:$0xff]  }
  0x85   :  { %7219 = vmatprep.subr.bf16.mxu1 %v8541_v0 }
  0x87   :  { %556 = vmatpush1.bf16.msra.mxu0 %v8722_v47 }
  0x88   :  { %7220 = vmatpush3.bf16.msra.mxu1 %v7789_v48  ;;  %557 = vmatprep.subr.bf16.mxu0 %v8724_v49  ;;  %v8782_v48 = vld [vmem:[#allocation8 + $0x64] ss:$12 sps:$4 sm:$0xff]  }
  0x89   :  { %7221 = vmatprep.subr.bf16.mxu1 %v8541_v0 }
  0x8b   :  { %558 = vmatpush1.bf16.msra.mxu0 %v8729_v50 }
  0x8c   :  { %7222 = vmatpush3.bf16.msra.mxu1 %v7793_v51  ;;  %787 = vmatprep.subr.bf16.mxu0 %v8731_v52  ;;  %v8785_v51 = vld [vmem:[#allocation8 + $0x60] ss:$12 sps:$4 sm:$0xff]  }
  0x8d   :  { %7227 = vmatprep.subr.bf16.mxu1 %v8541_v0 }
 0x140   :  { %v291_v54 = vpop.f32.mrb[0].mxu0 }
 0x141   :  { %v338_v55 = vadd.f32 %v291_v54, %v93_v53  ;;  %v293_v57 = vpop.f32.mrb[1].mxu0  ;;  %v332_v63 = vpop.f32.mrb[0].mxu1  ;;  %v7813_v53 = vld [vmem:[#allocation8 + $0x68] ss:$12 sps:$4 sm:$0xff]  }
 0x142   :  { %v295_v58 = vpop.f32.mrb[2].mxu0  ;;  %v345_v61 = vadd.f32 %v293_v57, %v94_v56  ;;  %v7205_v2 = vpop.f32.mrb[1].mxu1  ;;  %v358_v10 = vadd.f32 %v8742_v8, %v332_v63  ;;  %v8789_v54 = vld [vmem:[#allocation8 + $0x7c] ss:$12 sps:$4 sm:$0xff]   ;;  %v7817_v56 = vld [vmem:[#allocation8 + $0x80] ss:$12 sps:$4 sm:$0xff]  }
 0x143   :  { %v6384_v59 = vmul.f32 -1.442695, %v338_v55  ;;  %v296_v60 = vpop.f32.mrb[3].mxu0  ;;  %v335_v3 = vpop.f32.mrb[2].mxu1  ;;  %v8792_v55 = vld [vmem:[#allocation8 + $0x78] ss:$12 sps:$4 sm:$0xff]  }
 0x144   :  { %v6385_v62 = vmul.f32 -1.442695, %v345_v61  ;;  %v7206_v4 = vpop.f32.mrb[3].mxu1  ;;  %v8796_v57 = vld [vmem:[#allocation8 + $0x94] ss:$12 sps:$4 sm:$0xff]   ;;  %v8811_v63 = vld [vmem:[%s9880_s7 + $0x8] sm:$0xff] }
 0x145   :  { %8210 = vpow2.f32 %v6384_v59  ;;  %v8799_v58 = vld [vmem:[#allocation8 + $0x90] ss:$12 sps:$4 sm:$0xff]   ;;  %v7821_v59 = vld [vmem:[#allocation8 + $0x98] ss:$12 sps:$4 sm:$0xff]   ;;  %v8806_v61 = vld [vmem:[#allocation8 + $0xa8] ss:$12 sps:$4 sm:$0xff]   ;;  %v626_v2 = vpack.c.bf16 %v8811_v63, %v8811_v63 }
 0x146   :  { %8212 = vpow2.f32 %v6385_v62  ;;  %v8803_v60 = vld [vmem:[#allocation8 + $0xac] ss:$12 sps:$4 sm:$0xff]   ;;  %v7825_v62 = vld [vmem:[#allocation8 + $0xb0] ss:$12 sps:$4 sm:$0xff]   ;;  %v7826_v3 = vld [vmem:[#allocation5 + $0x8] ss:$12 sps:$4 sm:$0xff]  }
 0x147   :  { %v8371_v4 = vld [vmem:[#allocation5 + $0x4] ss:$12 sps:$4 sm:$0xff]  }
 0x14f   :  { %v8211_v5 = vpop.eup %8210 }
 0x150   :  { %v342_v6 = vadd.f32 1.0, %v8211_v5  ;;  %v8213_v7 = vpop.eup %8212  ;;  %v8372_v5 = vld [vmem:[#allocation5] ss:$12 sps:$4 sm:$0xff]  }
 0x151   :  { %v349_v9 = vadd.f32 1.0, %v8213_v7  ;;  %v8373_v7 = vld [vmem:[#allocation5 + $0x1c] ss:$12 sps:$4 sm:$0xff]  }
 0x152   :  { %8214 = vrcp.f32 %v342_v6  ;;  %v7827_v6 = vld [vmem:[#allocation5 + $0x20] ss:$12 sps:$4 sm:$0xff]  }
 0x153   :  { %8216 = vrcp.f32 %v349_v9  ;;  %v8374_v9 = vld [vmem:[#allocation5 + $0x18] ss:$12 sps:$4 sm:$0xff]  }
 0x15c   :  { %v8215_v11 = vpop.eup %8214 }
 0x15d   :  { %v359_v13 = vmul.f32 %v8215_v11, %v358_v10  ;;  %v8217_v15 = vpop.eup %8216  ;;  %v7828_v10 = vld [vmem:[#allocation5 + $0x38] ss:$12 sps:$4 sm:$0xff]   ;;  %v8375_v11 = vld [vmem:[#allocation5 + $0x34] ss:$12 sps:$4 sm:$0xff]  }
 0x15e   :  { %v362_v16 = vsub.f32 1.0, %v8217_v15  ;;  %v364_v20 = vmul.f32 %v8370_v19, %v8217_v15  ;;  %v8378_v15 = vld [vmem:[#allocation5 + $0x48] ss:$12 sps:$4 sm:$0xff]   ;;  %v7831_v19 = vld [vmem:[#allocation5 + $0x80] ss:$12 sps:$4 sm:$0xff]  }
 0x15f   :  { %v360_v14 = vadd.f32 %v359_v13, %v95_v12  ;;  %v8376_v12 = vld [vmem:[#allocation5 + $0x30] ss:$12 sps:$4 sm:$0xff]  }
 0x160   :  { %v7829_v13 = vld [vmem:[#allocation5 + $0x50] ss:$12 sps:$4 sm:$0xff]  }
 0x161   :  { %8218 = vtanh.f32 %v360_v14  ;;  %v8377_v14 = vld [vmem:[#allocation5 + $0x4c] ss:$12 sps:$4 sm:$0xff]  }
 0x16b   :  { %v8219_v17 = vpop.eup %8218 }
 0x16c   :  { %v363_v18 = vmul.f32 %v8219_v17, %v362_v16  ;;  %v7830_v16 = vld [vmem:[#allocation5 + $0x68] ss:$12 sps:$4 sm:$0xff]   ;;  %v8379_v17 = vld [vmem:[#allocation5 + $0x64] ss:$12 sps:$4 sm:$0xff]  }
 0x16e   :  { %v8748_v21 = vadd.f32 %v364_v20, %v363_v18  ;;  %v8380_v18 = vld [vmem:[#allocation5 + $0x60] ss:$12 sps:$4 sm:$0xff]   ;;  %v8381_v20 = vld [vmem:[#allocation5 + $0x7c] ss:$12 sps:$4 sm:$0xff]  }
 0x170   :  { %v8754_v24 = vpack.c.bf16 %v8748_v21, %v8748_v21 }
 0x172   :  { %576 = vmatmul.mubr.bf16.vlgmr.msra.gmra.mrb[4].mxu0 %v8754_v24  ;;  %7224 = vmatmul.mubr.bf16.vlgmr.msra.gmra.mrb[4].mxu1 %v8754_v24 }
 0x173   :  { %788 = vmatpush1.bf16.msra.mxu0 %v8750_v22  ;;  %7228 = vmatpush3.bf16.msra.mxu1 %v7797_v23  ;;  %v8382_v23 = vld [vmem:[#allocation5 + $0x78] ss:$12 sps:$4 sm:$0xff]  }
 0x174   :  { %789 = vmatprep.subr.bf16.mxu0 %v8756_v25  ;;  %7229 = vmatprep.subr.bf16.mxu1 %v8541_v0 }
 0x175   :  { %819 = vmatprep.mubr.bf16.mxu0 %v8542_v1  ;;  %7243 = vmatprep.mubr.msk.bf16.mxu1 %vm8543_vm0, %v8541_v0 }
 0x177   :  { %790 = vmatpush1.bf16.msra.mxu0 %v8761_v26  ;;  %7230 = vmatpush3.bf16.msra.mxu1 %v7801_v27  ;;  %v7832_v27 = vld [vmem:[#allocation5 + $0x98] ss:$12 sps:$4 sm:$0xff]  }
 0x178   :  { %791 = vmatprep.subr.bf16.mxu0 %v8765_v30  ;;  %7231 = vmatprep.subr.bf16.mxu1 %v8541_v0 }
 0x17b   :  { %792 = vmatpush1.bf16.msra.mxu0 %v8771_v33  ;;  %7232 = vmatpush3.bf16.msra.mxu1 %v7805_v36  ;;  %v8383_v36 = vld [vmem:[#allocation5 + $0x94] ss:$12 sps:$4 sm:$0xff]  }
 0x17c   :  { %793 = vmatprep.subr.bf16.mxu0 %v8775_v39  ;;  %7233 = vmatprep.subr.bf16.mxu1 %v8541_v0 }
 0x17f   :  { %794 = vmatpush1.bf16.msra.mxu0 %v8778_v42  ;;  %7234 = vmatpush3.bf16.msra.mxu1 %v7809_v45  ;;  %v8384_v45 = vld [vmem:[#allocation5 + $0x90] ss:$12 sps:$4 sm:$0xff]  }
 0x180   :  { %795 = vmatprep.subr.bf16.mxu0 %v8782_v48  ;;  %7235 = vmatprep.subr.bf16.mxu1 %v8541_v0 }
 0x183   :  { %796 = vmatpush1.bf16.msra.mxu0 %v8785_v51  ;;  %7236 = vmatpush3.bf16.msra.mxu1 %v7813_v53  ;;  %v7833_v53 = vld [vmem:[#allocation5 + $0xb0] ss:$12 sps:$4 sm:$0xff]  }
 0x184   :  { %797 = vmatprep.subr.bf16.mxu0 %v8789_v54  ;;  %7237 = vmatprep.subr.bf16.mxu1 %v8541_v0 }
 0x187   :  { %798 = vmatpush1.bf16.msra.mxu0 %v8792_v55  ;;  %7238 = vmatpush3.bf16.msra.mxu1 %v7817_v56  ;;  %v8385_v56 = vld [vmem:[#allocation5 + $0xac] ss:$12 sps:$4 sm:$0xff]  }
 0x188   :  { %799 = vmatprep.subr.bf16.mxu0 %v8796_v57  ;;  %7239 = vmatprep.subr.bf16.mxu1 %v8541_v0 }
 0x18b   :  { %800 = vmatpush1.bf16.msra.mxu0 %v8799_v58  ;;  %7240 = vmatpush3.bf16.msra.mxu1 %v7821_v59  ;;  %v8386_v59 = vld [vmem:[#allocation5 + $0xa8] ss:$12 sps:$4 sm:$0xff]  }
 0x18c   :  { %801 = vmatprep.subr.bf16.mxu0 %v8803_v60  ;;  %7241 = vmatprep.subr.bf16.mxu1 %v8541_v0 }
 0x18f   :  { %802 = vmatpush1.bf16.msra.mxu0 %v8806_v61  ;;  %7242 = vmatpush3.bf16.msra.mxu1 %v7825_v62 }
 0x190   :  { %1061 = vmatprep.subr.bf16.mxu0 %v8371_v4  ;;  %7247 = vmatprep.subr.bf16.mxu1 %v8541_v0 }
 0x192   :  { %820 = vmatmul.mubr.bf16.vlgmr.msra.gmra.mrb[4].mxu0 %v626_v2  ;;  %7244 = vmatmul.mubr.bf16.vlgmr.msra.gmra.mrb[8].mxu1 %v626_v2 }
 0x193   :  { %1062 = vmatpush1.bf16.msra.mxu0 %v8372_v5  ;;  %7248 = vmatpush3.bf16.msra.mxu1 %v7826_v3 }
 0x194   :  { %1063 = vmatprep.subr.bf16.mxu0 %v8373_v7  ;;  %7249 = vmatprep.subr.bf16.mxu1 %v8541_v0 }
 0x195   :  { %1093 = vmatprep.mubr.bf16.mxu0 %v8542_v1  ;;  %7263 = vmatprep.mubr.msk.bf16.mxu1 %vm8543_vm0, %v8541_v0 }
 0x197   :  { %1064 = vmatpush1.bf16.msra.mxu0 %v8374_v9  ;;  %7250 = vmatpush3.bf16.msra.mxu1 %v7827_v6 }
 0x198   :  { %1065 = vmatprep.subr.bf16.mxu0 %v8375_v11  ;;  %7251 = vmatprep.subr.bf16.mxu1 %v8541_v0 }
 0x19b   :  { %1066 = vmatpush1.bf16.msra.mxu0 %v8376_v12  ;;  %7252 = vmatpush3.bf16.msra.mxu1 %v7828_v10 }
 0x19c   :  { %1067 = vmatprep.subr.bf16.mxu0 %v8377_v14  ;;  %7253 = vmatprep.subr.bf16.mxu1 %v8541_v0 }
 0x19f   :  { %1068 = vmatpush1.bf16.msra.mxu0 %v8378_v15  ;;  %7254 = vmatpush3.bf16.msra.mxu1 %v7829_v13 }
 0x1a0   :  { %1069 = vmatprep.subr.bf16.mxu0 %v8379_v17  ;;  %7255 = vmatprep.subr.bf16.mxu1 %v8541_v0 }
 0x1a3   :  { %1070 = vmatpush1.bf16.msra.mxu0 %v8380_v18  ;;  %7256 = vmatpush3.bf16.msra.mxu1 %v7830_v16 }
 0x1a4   :  { %1071 = vmatprep.subr.bf16.mxu0 %v8381_v20  ;;  %7257 = vmatprep.subr.bf16.mxu1 %v8541_v0 }
 0x1a7   :  { %1072 = vmatpush1.bf16.msra.mxu0 %v8382_v23  ;;  %7258 = vmatpush3.bf16.msra.mxu1 %v7831_v19  ;;  %v8872_v19 = vld [vmem:[%s9879_s6] ss:$0 sm:$0xff] }
 0x1a8   :  { %1073 = vmatprep.subr.bf16.mxu0 %v8383_v36  ;;  %7259 = vmatprep.subr.bf16.mxu1 %v8541_v0 }
 0x1ab   :  { %1074 = vmatpush1.bf16.msra.mxu0 %v8384_v45  ;;  %7260 = vmatpush3.bf16.msra.mxu1 %v7832_v27 }
 0x1ac   :  { %1075 = vmatprep.subr.bf16.mxu0 %v8385_v56  ;;  %7261 = vmatprep.subr.bf16.mxu1 %v8541_v0  ;;  %v898_v56 = vld [vmem:[#allocation2 + $0x18] sm:$0xff] }
 0x1af   :  { %1076 = vmatpush1.bf16.msra.mxu0 %v8386_v59  ;;  %7262 = vmatpush3.bf16.msra.mxu1 %v7833_v53 }
 0x1b0   :  { %1325 = vmatprep.subr.bf16.mxu0 %v8680_v28  ;;  %7267 = vmatprep.subr.bf16.mxu1 %v8541_v0  ;;  %v7834_v28 = vld [vmem:[#allocation7 + $0x8] ss:$12 sps:$4 sm:$0xff]  }
 0x1b2   :  { %1094 = vmatmul.mubr.bf16.vlgmr.msra.gmra.mrb[8].mxu0 %v8754_v24  ;;  %7264 = vmatmul.mubr.bf16.vlgmr.msra.gmra.mrb[12].mxu1 %v8754_v24 }
 0x1b3   :  { %1326 = vmatpush1.bf16.msra.mxu0 %v8682_v29  ;;  %1357 = vmatprep.mubr.bf16.mxu0 %v8542_v1  ;;  %v7835_v29 = vld [vmem:[#allocation7 + $0x20] ss:$12 sps:$4 sm:$0xff]  }
 0x1b4   :  { %1327 = vmatprep.subr.bf16.mxu0 %v8688_v32  ;;  %7283 = vmatprep.mubr.msk.bf16.mxu1 %vm8543_vm0, %v8541_v0  ;;  %v7837_v32 = vld [vmem:[#allocation7 + $0x50] ss:$12 sps:$4 sm:$0xff]  }
 0x1b5   :  { %7268 = vmatpush3.bf16.msra.mxu1 %v7834_v28 }
 0x1b6   :  { %7269 = vmatprep.subr.bf16.mxu1 %v8541_v0 }
 0x1b7   :  { %1328 = vmatpush1.bf16.msra.mxu0 %v8686_v31  ;;  %v7836_v31 = vld [vmem:[#allocation7 + $0x38] ss:$12 sps:$4 sm:$0xff]  }
 0x1b8   :  { %1329 = vmatprep.subr.bf16.mxu0 %v8693_v34  ;;  %v7838_v34 = vld [vmem:[#allocation7 + $0x68] ss:$12 sps:$4 sm:$0xff]  }
 0x1b9   :  { %7270 = vmatpush3.bf16.msra.mxu1 %v7835_v29 }
 0x1ba   :  { %7271 = vmatprep.subr.bf16.mxu1 %v8541_v0 }
 0x1bb   :  { %1330 = vmatpush1.bf16.msra.mxu0 %v8696_v35  ;;  %v7839_v35 = vld [vmem:[#allocation7 + $0x80] ss:$12 sps:$4 sm:$0xff]  }
 0x1bc   :  { %1331 = vmatprep.subr.bf16.mxu0 %v8700_v37  ;;  %v7840_v37 = vld [vmem:[#allocation7 + $0x98] ss:$12 sps:$4 sm:$0xff]  }
 0x1bd   :  { %7272 = vmatpush3.bf16.msra.mxu1 %v7836_v31 }
 0x1be   :  { %7273 = vmatprep.subr.bf16.mxu1 %v8541_v0 }
 0x1bf   :  { %1332 = vmatpush1.bf16.msra.mxu0 %v8703_v38  ;;  %v7841_v38 = vld [vmem:[#allocation7 + $0xb0] ss:$12 sps:$4 sm:$0xff]  }
 0x1c0   :  { %1333 = vmatprep.subr.bf16.mxu0 %v8707_v40 }
 0x1c1   :  { %7274 = vmatpush3.bf16.msra.mxu1 %v7837_v32  ;;  %v899_v32 = vld [vmem:[#allocation2 + $0x20] sm:$0xff] }
 0x1c2   :  { %7275 = vmatprep.subr.bf16.mxu1 %v8541_v0 }
 0x1c3   :  { %1334 = vmatpush1.bf16.msra.mxu0 %v8710_v41 }
 0x1c4   :  { %1335 = vmatprep.subr.bf16.mxu0 %v8713_v43 }
 0x1c5   :  { %7276 = vmatpush3.bf16.msra.mxu1 %v7838_v34 }
 0x1c6   :  { %7277 = vmatprep.subr.bf16.mxu1 %v8541_v0 }
 0x1c7   :  { %1336 = vmatpush1.bf16.msra.mxu0 %v8716_v44 }
 0x1c8   :  { %1337 = vmatprep.subr.bf16.mxu0 %v8720_v46  ;;  %v400_v46 = vlaneseq }
 0x1c9   :  { %7278 = vmatpush3.bf16.msra.mxu1 %v7839_v35 }
 0x1ca   :  { %7279 = vmatprep.subr.bf16.mxu1 %v8541_v0 }
 0x1cb   :  { %1338 = vmatpush1.bf16.msra.mxu0 %v8722_v47  ;;  %v401_v47 = vshrl.u32 %v400_v46, 7 }
 0x1cc   :  { %1339 = vmatprep.subr.bf16.mxu0 %v8724_v49 }
 0x1cd   :  { %7280 = vmatpush3.bf16.msra.mxu1 %v7840_v37  ;;  %v402_v49 = vsub.s32 0, %v401_v47  ;;  %v410_v17 = vsub.s32 2, %v401_v47 }
 0x1ce   :  { %7281 = vmatprep.subr.bf16.mxu1 %v8541_v0 }
 0x1cf   :  { %1340 = vmatpush1.bf16.msra.mxu0 %v8729_v50  ;;  %v90_v50 = vld [vmem:[%s9877_s4] sm:$0x7] }
 0x1d0   :  { %1567 = vmatprep.subr.bf16.mxu0 %v8731_v52  ;;  %v406_v52 = vsub.s32 1, %v401_v47  ;;  %v8863_v24 = vrot.slane %v90_v50, %v402_v49  ;;  %v8874_v20 = vrot.slane %v90_v50, %v410_v17 }
 0x1d1   :  { %7282 = vmatpush3.bf16.msra.mxu1 %v7841_v38 }
 0x1d2   :  { %7287 = vmatprep.subr.bf16.mxu1 %v8541_v0  ;;  %v8865_v2 = vrot.slane %v90_v50, %v406_v52 }
 0x245   :  { %v618_v40 = vpop.f32.mrb[4].mxu1 }
 0x246   :  { %v7225_v41 = vpop.f32.mrb[5].mxu1  ;;  %v619_v45 = vadd.f32 %v618_v40, %v8874_v20 }
 0x247   :  { %v621_v43 = vpop.f32.mrb[6].mxu1 }
 0x248   :  { %v7226_v44 = vpop.f32.mrb[7].mxu1 }
 0x265   :  { %v821_v62 = vpop.f32.mrb[4].mxu0  ;;  %v862_v3 = vpop.f32.mrb[8].mxu1 }
 0x266   :  { %v7667_v4 = vadd.f32 %v821_v62, %v8863_v24  ;;  %v823_v5 = vpop.f32.mrb[5].mxu0  ;;  %v7245_v6 = vpop.f32.mrb[9].mxu1  ;;  %v888_v27 = vadd.f32 %v8872_v19, %v862_v3 }
 0x267   :  { %v825_v7 = vpop.f32.mrb[6].mxu0  ;;  %v865_v9 = vpop.f32.mrb[10].mxu1  ;;  %v7668_v13 = vadd.f32 %v823_v5, %v8865_v2 }
 0x268   :  { %v6436_v10 = vmul.f32 -1.442695, %v7667_v4  ;;  %v826_v11 = vpop.f32.mrb[7].mxu0  ;;  %v7246_v12 = vpop.f32.mrb[11].mxu1 }
 0x269   :  { %v6437_v14 = vmul.f32 -1.442695, %v7668_v13  ;;  %v900_v11 = vld [vmem:[#allocation2 + $0x28] sm:$0xff] }
 0x26a   :  { %8220 = vpow2.f32 %v6436_v10 }
 0x26b   :  { %8222 = vpow2.f32 %v6437_v14 }
 0x274   :  { %v8221_v15 = vpop.eup %8220 }
 0x275   :  { %v872_v16 = vadd.f32 1.0, %v8221_v15  ;;  %v8223_v18 = vpop.eup %8222 }
 0x276   :  { %v879_v23 = vadd.f32 1.0, %v8223_v18 }
 0x277   :  { %8224 = vrcp.f32 %v872_v16 }
 0x278   :  { %8226 = vrcp.f32 %v879_v23  ;;  %v7842_v23 = vld [vmem:[#allocation8 + $0x8] ss:$12 sps:$4 sm:$0xff]  }
 0x281   :  { %v8225_v36 = vpop.eup %8224 }
 0x282   :  { %v889_v53 = vmul.f32 %v8225_v36, %v888_v27  ;;  %v8227_v47 = vpop.eup %8226  ;;  %v7843_v36 = vld [vmem:[#allocation8 + $0x20] ss:$12 sps:$4 sm:$0xff]  }
 0x283   :  { %v892_v49 = vsub.f32 1.0, %v8227_v47  ;;  %v894_v62 = vmul.f32 %v8227_v47, %v8811_v63  ;;  %v8986_v47 = vld [vmem:[#allocation7] ss:$12 sps:$4 sm:$0xff]  }
 0x284   :  { %v890_v59 = vadd.f32 %v889_v53, %v619_v45  ;;  %v8942_v45 = vld [vmem:[#allocation5 + $0x4c] ss:$12 sps:$4 sm:$0xff]   ;;  %v8945_v53 = vld [vmem:[#allocation5 + $0x48] ss:$12 sps:$4 sm:$0xff]  }
 0x285   :  { %v1095_v28 = vpop.f32.mrb[8].mxu0  ;;  %v1136_v29 = vpop.f32.mrb[12].mxu1 }
 0x286   :  { %8228 = vtanh.f32 %v890_v59  ;;  %v1142_v31 = vadd.f32 %v1095_v28, %v898_v56  ;;  %v1097_v34 = vpop.f32.mrb[9].mxu0  ;;  %v7265_v35 = vpop.f32.mrb[13].mxu1  ;;  %v1156_v9 = vadd.f32 %v8742_v8, %v1136_v29  ;;  %v7865_v56 = vld [vmem:[#allocation5 + $0x50] ss:$12 sps:$4 sm:$0xff]   ;;  %v8952_v28 = vld [vmem:[#allocation5 + $0x60] ss:$12 sps:$4 sm:$0xff]  }
 0x287   :  { %v1099_v37 = vpop.f32.mrb[10].mxu0  ;;  %v1139_v38 = vpop.f32.mrb[14].mxu1  ;;  %v1149_v46 = vadd.f32 %v1097_v34, %v899_v32  ;;  %v8949_v59 = vld [vmem:[#allocation5 + $0x64] ss:$12 sps:$4 sm:$0xff]   ;;  %v7869_v29 = vld [vmem:[#allocation5 + $0x68] ss:$12 sps:$4 sm:$0xff]  }
 0x288   :  { %v6463_v41 = vmul.f32 -1.442695, %v1142_v31  ;;  %v1100_v43 = vpop.f32.mrb[11].mxu0  ;;  %v7266_v44 = vpop.f32.mrb[15].mxu1  ;;  %v8956_v31 = vld [vmem:[#allocation5 + $0x7c] ss:$12 sps:$4 sm:$0xff]  }
 0x289   :  { %v6464_v40 = vmul.f32 -1.442695, %v1149_v46  ;;  %v8959_v32 = vld [vmem:[#allocation5 + $0x78] ss:$12 sps:$4 sm:$0xff]   ;;  %v7873_v34 = vld [vmem:[#allocation5 + $0x80] ss:$12 sps:$4 sm:$0xff]  }
 0x28a   :  { %8230 = vpow2.f32 %v6463_v41  ;;  %v8963_v35 = vld [vmem:[#allocation5 + $0x94] ss:$12 sps:$4 sm:$0xff]   ;;  %v8966_v37 = vld [vmem:[#allocation5 + $0x90] ss:$12 sps:$4 sm:$0xff]   ;;  %v7877_v38 = vld [vmem:[#allocation5 + $0x98] ss:$12 sps:$4 sm:$0xff]  }
 0x28b   :  { %8232 = vpow2.f32 %v6464_v40  ;;  %v8970_v41 = vld [vmem:[#allocation5 + $0xac] ss:$12 sps:$4 sm:$0xff]   ;;  %v8973_v43 = vld [vmem:[#allocation5 + $0xa8] ss:$12 sps:$4 sm:$0xff]   ;;  %v7881_v44 = vld [vmem:[#allocation5 + $0xb0] ss:$12 sps:$4 sm:$0xff]  }
 0x28c   :  { %v8984_v46 = vld [vmem:[#allocation7 + $0x4] ss:$12 sps:$4 sm:$0xff]   ;;  %v7885_v40 = vld [vmem:[#allocation7 + $0x8] ss:$12 sps:$4 sm:$0xff]  }
 0x290   :  { %v8229_v50 = vpop.eup %8228 }
 0x291   :  { %v893_v52 = vmul.f32 %v8229_v50, %v892_v49  ;;  %v8990_v49 = vld [vmem:[#allocation7 + $0x1c] ss:$12 sps:$4 sm:$0xff]   ;;  %v8993_v50 = vld [vmem:[#allocation7 + $0x18] ss:$12 sps:$4 sm:$0xff]  }
 0x293   :  { %v8879_v3 = vadd.f32 %v894_v62, %v893_v52  ;;  %v7889_v52 = vld [vmem:[#allocation7 + $0x20] ss:$12 sps:$4 sm:$0xff]  }
 0x294   :  { %v8231_v4 = vpop.eup %8230  ;;  %v8997_v62 = vld [vmem:[#allocation7 + $0x34] ss:$12 sps:$4 sm:$0xff]  }
 0x295   :  { %v1146_v5 = vadd.f32 1.0, %v8231_v4  ;;  %896 = vst [vmem:[#allocation10] sm:$0xff] %v8879_v3  ;;  %v8233_v6 = vpop.eup %8232  ;;  %v9000_v4 = vld [vmem:[#allocation7 + $0x30] ss:$12 sps:$4 sm:$0xff]  }
 0x296   :  { %v1153_v7 = vadd.f32 1.0, %v8233_v6  ;;  %v9004_v6 = vld [vmem:[#allocation7 + $0x4c] ss:$12 sps:$4 sm:$0xff]  }
 0x297   :  { %8234 = vrcp.f32 %v1146_v5  ;;  %v7893_v5 = vld [vmem:[#allocation7 + $0x38] ss:$12 sps:$4 sm:$0xff]  }
 0x298   :  { %8236 = vrcp.f32 %v1153_v7  ;;  %v9007_v7 = vld [vmem:[#allocation7 + $0x48] ss:$12 sps:$4 sm:$0xff]  }
 0x2a1   :  { %v8235_v10 = vpop.eup %8234 }
 0x2a2   :  { %v1157_v12 = vmul.f32 %v8235_v10, %v1156_v9  ;;  %v8237_v14 = vpop.eup %8236  ;;  %v7897_v9 = vld [vmem:[#allocation7 + $0x50] ss:$12 sps:$4 sm:$0xff]  }
 0x2a3   :  { %v1160_v15 = vsub.f32 1.0, %v8237_v14  ;;  %v1162_v17 = vmul.f32 %v8237_v14, %v8748_v21  ;;  %v7844_v21 = vld [vmem:[#allocation8 + $0x38] ss:$12 sps:$4 sm:$0xff]  }
 0x2a4   :  { %v1158_v13 = vadd.f32 %v1157_v12, %v900_v11  ;;  %v9011_v10 = vld [vmem:[#allocation7 + $0x64] ss:$12 sps:$4 sm:$0xff]   ;;  %v9014_v11 = vld [vmem:[#allocation7 + $0x60] ss:$12 sps:$4 sm:$0xff]   ;;  %v7901_v12 = vld [vmem:[#allocation7 + $0x68] ss:$12 sps:$4 sm:$0xff]  }
 0x2a5   :  { %v9020_v14 = vld [vmem:[#allocation7 + $0x78] ss:$12 sps:$4 sm:$0xff]  }
 0x2a6   :  { %8238 = vtanh.f32 %v1158_v13  ;;  %v9017_v13 = vld [vmem:[#allocation7 + $0x7c] ss:$12 sps:$4 sm:$0xff]  }
 0x2b0   :  { %v8239_v63 = vpop.eup %8238 }
 0x2b1   :  { %v1161_v16 = vmul.f32 %v8239_v63, %v1160_v15  ;;  %v7905_v15 = vld [vmem:[#allocation7 + $0x80] ss:$12 sps:$4 sm:$0xff]  }
 0x2b2   :  { %v9024_v63 = vld [vmem:[#allocation7 + $0x94] ss:$12 sps:$4 sm:$0xff]  }
 0x2b3   :  { %v8884_v18 = vadd.f32 %v1162_v17, %v1161_v16  ;;  %v9027_v16 = vld [vmem:[#allocation7 + $0x90] ss:$12 sps:$4 sm:$0xff]   ;;  %v7909_v17 = vld [vmem:[#allocation7 + $0x98] ss:$12 sps:$4 sm:$0xff]  }
 0x2b5   :  { %v8888_v27 = vpack.c.bf16 %v8884_v18, %v8884_v18 }
 0x2b7   :  { %1358 = vmatmul.mubr.bf16.vlgmr.msra.gmra.mrb[12].mxu0 %v8888_v27  ;;  %7284 = vmatmul.mubr.bf16.vlgmr.msra.gmra.mrb[16].mxu1 %v8888_v27 }
 0x2b8   :  { %1568 = vmatpush1.bf16.msra.mxu0 %v8750_v22  ;;  %7288 = vmatpush3.bf16.msra.mxu1 %v7842_v23  ;;  %v7845_v22 = vld [vmem:[#allocation8 + $0x50] ss:$12 sps:$4 sm:$0xff]   ;;  %v9031_v23 = vld [vmem:[#allocation7 + $0xac] ss:$12 sps:$4 sm:$0xff]  }
 0x2b9   :  { %1569 = vmatprep.subr.bf16.mxu0 %v8756_v25  ;;  %7289 = vmatprep.subr.bf16.mxu1 %v8541_v0  ;;  %v7846_v25 = vld [vmem:[#allocation8 + $0x68] ss:$12 sps:$4 sm:$0xff]  }
 0x2ba   :  { %1599 = vmatprep.mubr.bf16.mxu0 %v8542_v1  ;;  %7303 = vmatprep.mubr.msk.bf16.mxu1 %vm8543_vm0, %v8541_v0 }
 0x2bc   :  { %1570 = vmatpush1.bf16.msra.mxu0 %v8761_v26  ;;  %7290 = vmatpush3.bf16.msra.mxu1 %v7843_v36  ;;  %v7847_v26 = vld [vmem:[#allocation8 + $0x80] ss:$12 sps:$4 sm:$0xff]   ;;  %v7913_v36 = vld [vmem:[#allocation7 + $0xb0] ss:$12 sps:$4 sm:$0xff]  }
 0x2bd   :  { %1571 = vmatprep.subr.bf16.mxu0 %v8765_v30  ;;  %7291 = vmatprep.subr.bf16.mxu1 %v8541_v0  ;;  %v7848_v30 = vld [vmem:[#allocation8 + $0x98] ss:$12 sps:$4 sm:$0xff]  }
 0x2c0   :  { %1572 = vmatpush1.bf16.msra.mxu0 %v8771_v33  ;;  %7292 = vmatpush3.bf16.msra.mxu1 %v7844_v21  ;;  %v7849_v33 = vld [vmem:[#allocation8 + $0xb0] ss:$12 sps:$4 sm:$0xff]  }
 0x2c1   :  { %1573 = vmatprep.subr.bf16.mxu0 %v8775_v39  ;;  %7293 = vmatprep.subr.bf16.mxu1 %v8541_v0  ;;  %v8916_v39 = vld [vmem:[#allocation5 + $0x4] ss:$12 sps:$4 sm:$0xff]  }
 0x2c2   :  { %v9038_v21 = vld [vmem:[#allocation8 + $0x4] ss:$12 sps:$4 sm:$0xff]  }
 0x2c4   :  { %1574 = vmatpush1.bf16.msra.mxu0 %v8778_v42  ;;  %7294 = vmatpush3.bf16.msra.mxu1 %v7845_v22  ;;  %v8919_v42 = vld [vmem:[#allocation5] ss:$12 sps:$4 sm:$0xff]  }
 0x2c5   :  { %1575 = vmatprep.subr.bf16.mxu0 %v8782_v48  ;;  %7295 = vmatprep.subr.bf16.mxu1 %v8541_v0  ;;  %v7853_v48 = vld [vmem:[#allocation5 + $0x8] ss:$12 sps:$4 sm:$0xff]  }
 0x2c8   :  { %1576 = vmatpush1.bf16.msra.mxu0 %v8785_v51  ;;  %7296 = vmatpush3.bf16.msra.mxu1 %v7846_v25  ;;  %v1406_v51 = vpack.c.bf16 %v8879_v3, %v8879_v3 }
 0x2c9   :  { %1577 = vmatprep.subr.bf16.mxu0 %v8789_v54  ;;  %7297 = vmatprep.subr.bf16.mxu1 %v8541_v0  ;;  %v8925_v54 = vld [vmem:[#allocation5 + $0x1c] ss:$12 sps:$4 sm:$0xff]  }
 0x2cc   :  { %1578 = vmatpush1.bf16.msra.mxu0 %v8792_v55  ;;  %7298 = vmatpush3.bf16.msra.mxu1 %v7847_v26  ;;  %v8928_v55 = vld [vmem:[#allocation5 + $0x18] ss:$12 sps:$4 sm:$0xff]  }
 0x2cd   :  { %1579 = vmatprep.subr.bf16.mxu0 %v8796_v57  ;;  %7299 = vmatprep.subr.bf16.mxu1 %v8541_v0  ;;  %v7857_v57 = vld [vmem:[#allocation5 + $0x20] ss:$12 sps:$4 sm:$0xff]  }
 0x2d0   :  { %1580 = vmatpush1.bf16.msra.mxu0 %v8799_v58  ;;  %7300 = vmatpush3.bf16.msra.mxu1 %v7848_v30  ;;  %v8932_v58 = vld [vmem:[#allocation5 + $0x34] ss:$12 sps:$4 sm:$0xff]  }
 0x2d1   :  { %1581 = vmatprep.subr.bf16.mxu0 %v8803_v60  ;;  %7301 = vmatprep.subr.bf16.mxu1 %v8541_v0  ;;  %v8938_v60 = vld [vmem:[#allocation5 + $0x30] ss:$12 sps:$4 sm:$0xff]  }
 0x2d4   :  { %1582 = vmatpush1.bf16.msra.mxu0 %v8806_v61  ;;  %7302 = vmatpush3.bf16.msra.mxu1 %v7849_v33  ;;  %v7861_v61 = vld [vmem:[#allocation5 + $0x38] ss:$12 sps:$4 sm:$0xff]  }
 0x2d5   :  { %1836 = vmatprep.subr.bf16.mxu0 %v8916_v39  ;;  %7307 = vmatprep.subr.bf16.mxu1 %v8541_v0 }
 0x2d7   :  { %1600 = vmatmul.mubr.bf16.vlgmr.msra.gmra.mrb[12].mxu0 %v1406_v51  ;;  %7304 = vmatmul.mubr.bf16.vlgmr.msra.gmra.mrb[20].mxu1 %v1406_v51 }
 0x2d8   :  { %1837 = vmatpush1.bf16.msra.mxu0 %v8919_v42  ;;  %7308 = vmatpush3.bf16.msra.mxu1 %v7853_v48 }
 0x2d9   :  { %1838 = vmatprep.subr.bf16.mxu0 %v8925_v54  ;;  %7309 = vmatprep.subr.bf16.mxu1 %v8541_v0 }
 0x2da   :  { %1868 = vmatprep.mubr.bf16.mxu0 %v8542_v1  ;;  %7323 = vmatprep.mubr.msk.bf16.mxu1 %vm8543_vm0, %v8541_v0 }
 0x2dc   :  { %1839 = vmatpush1.bf16.msra.mxu0 %v8928_v55  ;;  %7310 = vmatpush3.bf16.msra.mxu1 %v7857_v57 }
 0x2dd   :  { %1840 = vmatprep.subr.bf16.mxu0 %v8932_v58  ;;  %7311 = vmatprep.subr.bf16.mxu1 %v8541_v0 }
 0x2e0   :  { %1841 = vmatpush1.bf16.msra.mxu0 %v8938_v60  ;;  %7312 = vmatpush3.bf16.msra.mxu1 %v7861_v61 }
 0x2e1   :  { %1842 = vmatprep.subr.bf16.mxu0 %v8942_v45  ;;  %7313 = vmatprep.subr.bf16.mxu1 %v8541_v0 }
 0x2e4   :  { %1843 = vmatpush1.bf16.msra.mxu0 %v8945_v53  ;;  %7314 = vmatpush3.bf16.msra.mxu1 %v7865_v56 }
 0x2e5   :  { %1844 = vmatprep.subr.bf16.mxu0 %v8949_v59  ;;  %7315 = vmatprep.subr.bf16.mxu1 %v8541_v0 }
 0x2e8   :  { %1845 = vmatpush1.bf16.msra.mxu0 %v8952_v28  ;;  %7316 = vmatpush3.bf16.msra.mxu1 %v7869_v29 }
 0x2e9   :  { %1846 = vmatprep.subr.bf16.mxu0 %v8956_v31  ;;  %7317 = vmatprep.subr.bf16.mxu1 %v8541_v0 }
 0x2ec   :  { %1847 = vmatpush1.bf16.msra.mxu0 %v8959_v32  ;;  %7318 = vmatpush3.bf16.msra.mxu1 %v7873_v34 }
 0x2ed   :  { %1848 = vmatprep.subr.bf16.mxu0 %v8963_v35  ;;  %7319 = vmatprep.subr.bf16.mxu1 %v8541_v0 }
 0x2f0   :  { %1849 = vmatpush1.bf16.msra.mxu0 %v8966_v37  ;;  %7320 = vmatpush3.bf16.msra.mxu1 %v7877_v38 }
 0x2f1   :  { %1850 = vmatprep.subr.bf16.mxu0 %v8970_v41  ;;  %7321 = vmatprep.subr.bf16.mxu1 %v8541_v0 }
 0x2f4   :  { %1851 = vmatpush1.bf16.msra.mxu0 %v8973_v43  ;;  %7322 = vmatpush3.bf16.msra.mxu1 %v7881_v44 }
 0x2f5   :  { %7327 = vmatprep.subr.bf16.mxu1 %v8541_v0  ;;  %2100 = vmatprep.subr.bf16.mxu0 %v8984_v46 }
 0x2f7   :  { %1869 = vmatmul.mubr.bf16.vlgmr.msra.gmra.mrb[16].mxu0 %v8888_v27  ;;  %7324 = vmatmul.mubr.bf16.vlgmr.msra.gmra.mrb[24].mxu1 %v8888_v27  ;;  %v9034_v27 = vld [vmem:[#allocation7 + $0xa8] ss:$12 sps:$4 sm:$0xff]  }
 0x2f8   :  { %2132 = vmatprep.mubr.bf16.mxu0 %v8542_v1  ;;  %7343 = vmatprep.mubr.msk.bf16.mxu1 %vm8543_vm0, %v8541_v0 }
 0x2f9   :  { %2101 = vmatpush1.bf16.msra.mxu0 %v8986_v47  ;;  %7328 = vmatpush3.bf16.msra.mxu1 %v7885_v40 }
 0x2fa   :  { %7329 = vmatprep.subr.bf16.mxu1 %v8541_v0  ;;  %2102 = vmatprep.subr.bf16.mxu0 %v8990_v49 }
 0x2fd   :  { %2103 = vmatpush1.bf16.msra.mxu0 %v8993_v50  ;;  %7330 = vmatpush3.bf16.msra.mxu1 %v7889_v52 }
 0x2fe   :  { %7331 = vmatprep.subr.bf16.mxu1 %v8541_v0  ;;  %2104 = vmatprep.subr.bf16.mxu0 %v8997_v62 }
 0x301   :  { %2105 = vmatpush1.bf16.msra.mxu0 %v9000_v4  ;;  %7332 = vmatpush3.bf16.msra.mxu1 %v7893_v5 }
 0x302   :  { %7333 = vmatprep.subr.bf16.mxu1 %v8541_v0  ;;  %2106 = vmatprep.subr.bf16.mxu0 %v9004_v6 }
 0x305   :  { %2107 = vmatpush1.bf16.msra.mxu0 %v9007_v7  ;;  %7334 = vmatpush3.bf16.msra.mxu1 %v7897_v9 }
 0x306   :  { %7335 = vmatprep.subr.bf16.mxu1 %v8541_v0  ;;  %2108 = vmatprep.subr.bf16.mxu0 %v9011_v10 }
 0x309   :  { %2109 = vmatpush1.bf16.msra.mxu0 %v9014_v11  ;;  %7336 = vmatpush3.bf16.msra.mxu1 %v7901_v12 }
 0x30a   :  { %2110 = vmatprep.subr.bf16.mxu0 %v9017_v13  ;;  %7337 = vmatprep.subr.bf16.mxu1 %v8541_v0 }
 0x30d   :  { %2111 = vmatpush1.bf16.msra.mxu0 %v9020_v14  ;;  %7338 = vmatpush3.bf16.msra.mxu1 %v7905_v15 }
 0x30e   :  { %2112 = vmatprep.subr.bf16.mxu0 %v9024_v63  ;;  %7339 = vmatprep.subr.bf16.mxu1 %v8541_v0 }
 0x311   :  { %2113 = vmatpush1.bf16.msra.mxu0 %v9027_v16  ;;  %7340 = vmatpush3.bf16.msra.mxu1 %v7909_v17 }
 0x312   :  { %2114 = vmatprep.subr.bf16.mxu0 %v9031_v23  ;;  %7341 = vmatprep.subr.bf16.mxu1 %v8541_v0 }
 0x315   :  { %2115 = vmatpush1.bf16.msra.mxu0 %v9034_v27  ;;  %7342 = vmatpush3.bf16.msra.mxu1 %v7913_v36 }
 0x316   :  { %2342 = vmatprep.subr.bf16.mxu0 %v9038_v21  ;;  %7347 = vmatprep.subr.bf16.mxu1 %v8541_v0 }
 0x38a   :  { %v1400_v22 = vpop.f32.mrb[16].mxu1 }
 0x38b   :  { %v7285_v25 = vpop.f32.mrb[17].mxu1 }
 0x38c   :  { %v1403_v26 = vpop.f32.mrb[18].mxu1  ;;  %v1401_v25 = vadd.f32 %v1400_v22, %v8874_v20 }
 0x38d   :  { %v7286_v30 = vpop.f32.mrb[19].mxu1 }
 0x38e   :  { %v1673_v30 = vld [vmem:[#allocation2 + $0x30] sm:$0xff] }
 0x3aa   :  { %v1601_v33 = vpop.f32.mrb[12].mxu0  ;;  %v1642_v48 = vpop.f32.mrb[20].mxu1 }
 0x3ab   :  { %v7669_v51 = vadd.f32 %v1601_v33, %v8863_v24  ;;  %v1603_v57 = vpop.f32.mrb[13].mxu0  ;;  %v7305_v61 = vpop.f32.mrb[21].mxu1  ;;  %v1662_v17 = vadd.f32 %v8872_v19, %v1642_v48 }
 0x3ac   :  { %v1605_v56 = vpop.f32.mrb[14].mxu0  ;;  %v1645_v29 = vpop.f32.mrb[22].mxu1  ;;  %v7670_v40 = vadd.f32 %v1603_v57, %v8865_v2 }
 0x3ad   :  { %v6513_v34 = vmul.f32 -1.442695, %v7669_v51  ;;  %v1606_v38 = vpop.f32.mrb[15].mxu0  ;;  %v7306_v44 = vpop.f32.mrb[23].mxu1  ;;  %v1674_v56 = vld [vmem:[#allocation2 + $0x38] sm:$0xff] }
 0x3ae   :  { %v6514_v52 = vmul.f32 -1.442695, %v7670_v40 }
 0x3af   :  { %8240 = vpow2.f32 %v6513_v34 }
 0x3b0   :  { %8242 = vpow2.f32 %v6514_v52 }
 0x3b9   :  { %v8241_v5 = vpop.eup %8240 }
 0x3ba   :  { %v1652_v9 = vadd.f32 1.0, %v8241_v5  ;;  %v8243_v12 = vpop.eup %8242 }
 0x3bb   :  { %v1659_v15 = vadd.f32 1.0, %v8243_v12 }
 0x3bc   :  { %8244 = vrcp.f32 %v1652_v9 }
 0x3bd   :  { %8246 = vrcp.f32 %v1659_v15 }
 0x3c6   :  { %v8245_v36 = vpop.eup %8244 }
 0x3c7   :  { %v1663_v26 = vmul.f32 %v8245_v36, %v1662_v17  ;;  %v8247_v9 = vpop.eup %8246 }
 0x3c8   :  { %v1666_v12 = vsub.f32 1.0, %v8247_v9  ;;  %v1668_v36 = vmul.f32 %v8247_v9, %v8879_v3  ;;  %v9055_v9 = vld [vmem:[#allocation8] ss:$12 sps:$4 sm:$0xff]  }
 0x3c9   :  { %v1664_v33 = vadd.f32 %v1663_v26, %v1401_v25 }
 0x3ca   :  { %v1870_v51 = vpop.f32.mrb[16].mxu0  ;;  %v1911_v61 = vpop.f32.mrb[24].mxu1 }
 0x3cb   :  { %8248 = vtanh.f32 %v1664_v33  ;;  %v1917_v57 = vadd.f32 %v1870_v51, %v1673_v30  ;;  %v1872_v29 = vpop.f32.mrb[17].mxu0  ;;  %v7325_v34 = vpop.f32.mrb[25].mxu1 }
 0x3cc   :  { %v1874_v38 = vpop.f32.mrb[18].mxu0  ;;  %v1914_v44 = vpop.f32.mrb[26].mxu1  ;;  %v1924_v48 = vadd.f32 %v1872_v29, %v1674_v56  ;;  %v1675_v29 = vld [vmem:[#allocation2 + $0x40] sm:$0xff] }
 0x3cd   :  { %v6539_v40 = vmul.f32 -1.442695, %v1917_v57  ;;  %v1875_v52 = vpop.f32.mrb[19].mxu0  ;;  %v7326_v5 = vpop.f32.mrb[27].mxu1  ;;  %v1931_v57 = vadd.f32 %v8742_v8, %v1911_v61  ;;  %v9061_v61 = vld [vmem:[#allocation8 + $0x1c] ss:$12 sps:$4 sm:$0xff]  }
 0x3ce   :  { %v6540_v22 = vmul.f32 -1.442695, %v1924_v48 }
 0x3cf   :  { %8250 = vpow2.f32 %v6539_v40 }
 0x3d0   :  { %8252 = vpow2.f32 %v6540_v22  ;;  %v7917_v22 = vld [vmem:[#allocation8 + $0x8] ss:$12 sps:$4 sm:$0xff]  }
 0x3d5   :  { %v8249_v15 = vpop.eup %8248 }
 0x3d6   :  { %v1667_v17 = vmul.f32 %v8249_v15, %v1666_v12  ;;  %v9066_v12 = vld [vmem:[#allocation8 + $0x18] ss:$12 sps:$4 sm:$0xff]   ;;  %v9070_v15 = vld [vmem:[#allocation8 + $0x34] ss:$12 sps:$4 sm:$0xff]  }
 0x3d8   :  { %v9048_v25 = vadd.f32 %v1668_v36, %v1667_v17  ;;  %v9076_v17 = vld [vmem:[#allocation8 + $0x30] ss:$12 sps:$4 sm:$0xff]   ;;  %v7925_v36 = vld [vmem:[#allocation8 + $0x38] ss:$12 sps:$4 sm:$0xff]  }
 0x3d9   :  { %v8251_v26 = vpop.eup %8250 }
 0x3da   :  { %v1921_v30 = vadd.f32 1.0, %v8251_v26  ;;  %1671 = vst [vmem:[#allocation10 + $0x8] sm:$0xff] %v9048_v25  ;;  %v8253_v33 = vpop.eup %8252  ;;  %v9080_v26 = vld [vmem:[#allocation8 + $0x4c] ss:$12 sps:$4 sm:$0xff]  }
 0x3db   :  { %v1928_v51 = vadd.f32 1.0, %v8253_v33  ;;  %v7929_v33 = vld [vmem:[#allocation8 + $0x50] ss:$12 sps:$4 sm:$0xff]  }
 0x3dc   :  { %8254 = vrcp.f32 %v1921_v30  ;;  %v9083_v30 = vld [vmem:[#allocation8 + $0x48] ss:$12 sps:$4 sm:$0xff]  }
 0x3dd   :  { %8256 = vrcp.f32 %v1928_v51  ;;  %v9087_v51 = vld [vmem:[#allocation8 + $0x64] ss:$12 sps:$4 sm:$0xff]  }
 0x3e6   :  { %v8255_v56 = vpop.eup %8254 }
 0x3e7   :  { %v1932_v34 = vmul.f32 %v8255_v56, %v1931_v57  ;;  %v8257_v44 = vpop.eup %8256  ;;  %v9090_v57 = vld [vmem:[#allocation8 + $0x60] ss:$12 sps:$4 sm:$0xff]   ;;  %v7933_v56 = vld [vmem:[#allocation8 + $0x68] ss:$12 sps:$4 sm:$0xff]  }
 0x3e8   :  { %v1935_v40 = vsub.f32 1.0, %v8257_v44  ;;  %v1937_v5 = vmul.f32 %v8257_v44, %v8884_v18  ;;  %v7921_v18 = vld [vmem:[#allocation8 + $0x20] ss:$12 sps:$4 sm:$0xff]  }
 0x3e9   :  { %v1933_v38 = vadd.f32 %v1932_v34, %v1675_v29  ;;  %v9094_v29 = vld [vmem:[#allocation8 + $0x7c] ss:$12 sps:$4 sm:$0xff]   ;;  %v9097_v34 = vld [vmem:[#allocation8 + $0x78] ss:$12 sps:$4 sm:$0xff]   ;;  %v9101_v44 = vld [vmem:[#allocation8 + $0x94] ss:$12 sps:$4 sm:$0xff]  }
 0x3eb   :  { %8258 = vtanh.f32 %v1933_v38  ;;  %v7937_v38 = vld [vmem:[#allocation8 + $0x80] ss:$12 sps:$4 sm:$0xff]  }
 0x3f5   :  { %v8259_v3 = vpop.eup %8258 }
 0x3f6   :  { %v1936_v52 = vmul.f32 %v8259_v3, %v1935_v40  ;;  %v9104_v40 = vld [vmem:[#allocation8 + $0x90] ss:$12 sps:$4 sm:$0xff]   ;;  %v7941_v3 = vld [vmem:[#allocation8 + $0x98] ss:$12 sps:$4 sm:$0xff]  }
 0x3f8   :  { %v9053_v48 = vadd.f32 %v1937_v5, %v1936_v52  ;;  %v9108_v52 = vld [vmem:[#allocation8 + $0xac] ss:$12 sps:$4 sm:$0xff]   ;;  %v9111_v5 = vld [vmem:[#allocation8 + $0xa8] ss:$12 sps:$4 sm:$0xff]  }
 0x3fa   :  { %v9059_v8 = vpack.c.bf16 %v9053_v48, %v9053_v48 }
 0x3fc   :  { %2133 = vmatmul.mubr.bf16.vlgmr.msra.gmra.mrb[20].mxu0 %v9059_v8  ;;  %7344 = vmatmul.mubr.bf16.vlgmr.msra.gmra.mrb[28].mxu1 %v9059_v8 }
 0x3fd   :  { %2343 = vmatpush1.bf16.msra.mxu0 %v9055_v9  ;;  %7348 = vmatpush3.bf16.msra.mxu1 %v7917_v22  ;;  %v7945_v22 = vld [vmem:[#allocation8 + $0xb0] ss:$12 sps:$4 sm:$0xff]  }
 0x3fe   :  { %2344 = vmatprep.subr.bf16.mxu0 %v9061_v61  ;;  %7349 = vmatprep.subr.bf16.mxu1 %v8541_v0 }
 0x3ff   :  { %2374 = vmatprep.mubr.bf16.mxu0 %v8542_v1  ;;  %7363 = vmatprep.mubr.msk.bf16.mxu1 %vm8543_vm0, %v8541_v0 }
 0x401   :  { %2345 = vmatpush1.bf16.msra.mxu0 %v9066_v12  ;;  %7350 = vmatpush3.bf16.msra.mxu1 %v7921_v18  ;;  %v7946_v18 = vld [vmem:[#allocation5 + $0x8] ss:$12 sps:$4 sm:$0xff]  }
 0x402   :  { %2346 = vmatprep.subr.bf16.mxu0 %v9070_v15  ;;  %7351 = vmatprep.subr.bf16.mxu1 %v8541_v0 }
 0x405   :  { %2347 = vmatpush1.bf16.msra.mxu0 %v9076_v17  ;;  %7352 = vmatpush3.bf16.msra.mxu1 %v7925_v36  ;;  %v2181_v36 = vpack.c.bf16 %v9048_v25, %v9048_v25 }
 0x406   :  { %2348 = vmatprep.subr.bf16.mxu0 %v9080_v26  ;;  %7353 = vmatprep.subr.bf16.mxu1 %v8541_v0 }
 0x409   :  { %2349 = vmatpush1.bf16.msra.mxu0 %v9083_v30  ;;  %7354 = vmatpush3.bf16.msra.mxu1 %v7929_v33  ;;  %v7947_v33 = vld [vmem:[#allocation5 + $0x20] ss:$12 sps:$4 sm:$0xff]  }
 0x40a   :  { %2350 = vmatprep.subr.bf16.mxu0 %v9087_v51  ;;  %7355 = vmatprep.subr.bf16.mxu1 %v8541_v0 }
 0x40d   :  { %2351 = vmatpush1.bf16.msra.mxu0 %v9090_v57  ;;  %7356 = vmatpush3.bf16.msra.mxu1 %v7933_v56 }
 0x40e   :  { %2352 = vmatprep.subr.bf16.mxu0 %v9094_v29  ;;  %7357 = vmatprep.subr.bf16.mxu1 %v8541_v0 }
 0x411   :  { %2353 = vmatpush1.bf16.msra.mxu0 %v9097_v34  ;;  %7358 = vmatpush3.bf16.msra.mxu1 %v7937_v38 }
 0x412   :  { %2354 = vmatprep.subr.bf16.mxu0 %v9101_v44  ;;  %7359 = vmatprep.subr.bf16.mxu1 %v8541_v0 }
 0x415   :  { %2355 = vmatpush1.bf16.msra.mxu0 %v9104_v40  ;;  %7360 = vmatpush3.bf16.msra.mxu1 %v7941_v3 }
 0x416   :  { %2356 = vmatprep.subr.bf16.mxu0 %v9108_v52  ;;  %7361 = vmatprep.subr.bf16.mxu1 %v8541_v0 }
 0x419   :  { %2357 = vmatpush1.bf16.msra.mxu0 %v9111_v5  ;;  %7362 = vmatpush3.bf16.msra.mxu1 %v7945_v22 }
 0x41a   :  { %2611 = vmatprep.subr.bf16.mxu0 %v8916_v39  ;;  %7367 = vmatprep.subr.bf16.mxu1 %v8541_v0  ;;  %v7948_v39 = vld [vmem:[#allocation5 + $0x38] ss:$12 sps:$4 sm:$0xff]  }
 0x41c   :  { %2375 = vmatmul.mubr.bf16.vlgmr.msra.gmra.mrb[20].mxu0 %v2181_v36  ;;  %7364 = vmatmul.mubr.bf16.vlgmr.msra.gmra.mrb[32].mxu1 %v2181_v36 }
 0x41d   :  { %2612 = vmatpush1.bf16.msra.mxu0 %v8919_v42  ;;  %7368 = vmatpush3.bf16.msra.mxu1 %v7946_v18  ;;  %v7949_v42 = vld [vmem:[#allocation5 + $0x50] ss:$12 sps:$4 sm:$0xff]   ;;  %v2448_v18 = vld [vmem:[#allocation2 + $0x48] sm:$0xff] }
 0x41e   :  { %2613 = vmatprep.subr.bf16.mxu0 %v8925_v54  ;;  %7369 = vmatprep.subr.bf16.mxu1 %v8541_v0  ;;  %v7950_v54 = vld [vmem:[#allocation5 + $0x68] ss:$12 sps:$4 sm:$0xff]  }
 0x41f   :  { %2643 = vmatprep.mubr.bf16.mxu0 %v8542_v1  ;;  %7383 = vmatprep.mubr.msk.bf16.mxu1 %vm8543_vm0, %v8541_v0 }
 0x421   :  { %2614 = vmatpush1.bf16.msra.mxu0 %v8928_v55  ;;  %7370 = vmatpush3.bf16.msra.mxu1 %v7947_v33  ;;  %v7951_v55 = vld [vmem:[#allocation5 + $0x80] ss:$12 sps:$4 sm:$0xff]  }
 0x422   :  { %2615 = vmatprep.subr.bf16.mxu0 %v8932_v58  ;;  %7371 = vmatprep.subr.bf16.mxu1 %v8541_v0  ;;  %v7952_v58 = vld [vmem:[#allocation5 + $0x98] ss:$12 sps:$4 sm:$0xff]  }
 0x425   :  { %2616 = vmatpush1.bf16.msra.mxu0 %v8938_v60  ;;  %7372 = vmatpush3.bf16.msra.mxu1 %v7948_v39  ;;  %v7953_v60 = vld [vmem:[#allocation5 + $0xb0] ss:$12 sps:$4 sm:$0xff]  }
 0x426   :  { %2617 = vmatprep.subr.bf16.mxu0 %v8942_v45  ;;  %7373 = vmatprep.subr.bf16.mxu1 %v8541_v0  ;;  %v7954_v45 = vld [vmem:[#allocation7 + $0x8] ss:$12 sps:$4 sm:$0xff]  }
 0x429   :  { %2618 = vmatpush1.bf16.msra.mxu0 %v8945_v53  ;;  %7374 = vmatpush3.bf16.msra.mxu1 %v7949_v42  ;;  %v7955_v53 = vld [vmem:[#allocation7 + $0x20] ss:$12 sps:$4 sm:$0xff]  }
 0x42a   :  { %2619 = vmatprep.subr.bf16.mxu0 %v8949_v59  ;;  %7375 = vmatprep.subr.bf16.mxu1 %v8541_v0  ;;  %v7956_v59 = vld [vmem:[#allocation7 + $0x38] ss:$12 sps:$4 sm:$0xff]  }
 0x42d   :  { %2620 = vmatpush1.bf16.msra.mxu0 %v8952_v28  ;;  %7376 = vmatpush3.bf16.msra.mxu1 %v7950_v54  ;;  %v7957_v28 = vld [vmem:[#allocation7 + $0x50] ss:$12 sps:$4 sm:$0xff]  }
 0x42e   :  { %2621 = vmatprep.subr.bf16.mxu0 %v8956_v31  ;;  %7377 = vmatprep.subr.bf16.mxu1 %v8541_v0  ;;  %v7958_v31 = vld [vmem:[#allocation7 + $0x68] ss:$12 sps:$4 sm:$0xff]  }
 0x42f   :  { %v2449_v54 = vld [vmem:[#allocation2 + $0x50] sm:$0xff] }
 0x431   :  { %2622 = vmatpush1.bf16.msra.mxu0 %v8959_v32  ;;  %7378 = vmatpush3.bf16.msra.mxu1 %v7951_v55  ;;  %v7959_v32 = vld [vmem:[#allocation7 + $0x80] ss:$12 sps:$4 sm:$0xff]  }
 0x432   :  { %2623 = vmatprep.subr.bf16.mxu0 %v8963_v35  ;;  %7379 = vmatprep.subr.bf16.mxu1 %v8541_v0  ;;  %v7960_v35 = vld [vmem:[#allocation7 + $0x98] ss:$12 sps:$4 sm:$0xff]  }
 0x435   :  { %2624 = vmatpush1.bf16.msra.mxu0 %v8966_v37  ;;  %7380 = vmatpush3.bf16.msra.mxu1 %v7952_v58  ;;  %v7961_v37 = vld [vmem:[#allocation7 + $0xb0] ss:$12 sps:$4 sm:$0xff]  }
 0x436   :  { %2625 = vmatprep.subr.bf16.mxu0 %v8970_v41  ;;  %7381 = vmatprep.subr.bf16.mxu1 %v8541_v0 }
 0x439   :  { %2626 = vmatpush1.bf16.msra.mxu0 %v8973_v43  ;;  %7382 = vmatpush3.bf16.msra.mxu1 %v7953_v60 }
 0x43a   :  { %2875 = vmatprep.subr.bf16.mxu0 %v8984_v46  ;;  %7387 = vmatprep.subr.bf16.mxu1 %v8541_v0 }
 0x43c   :  { %2644 = vmatmul.mubr.bf16.vlgmr.msra.gmra.mrb[24].mxu0 %v9059_v8  ;;  %7384 = vmatmul.mubr.bf16.vlgmr.msra.gmra.mrb[36].mxu1 %v9059_v8 }
 0x43d   :  { %2876 = vmatpush1.bf16.msra.mxu0 %v8986_v47  ;;  %2907 = vmatprep.mubr.bf16.mxu0 %v8542_v1 }
 0x43e   :  { %2877 = vmatprep.subr.bf16.mxu0 %v8990_v49  ;;  %7403 = vmatprep.mubr.msk.bf16.mxu1 %vm8543_vm0, %v8541_v0 }
 0x43f   :  { %7388 = vmatpush3.bf16.msra.mxu1 %v7954_v45 }
 0x440   :  { %7389 = vmatprep.subr.bf16.mxu1 %v8541_v0 }
 0x441   :  { %2878 = vmatpush1.bf16.msra.mxu0 %v8993_v50 }
 0x442   :  { %2879 = vmatprep.subr.bf16.mxu0 %v8997_v62 }
 0x443   :  { %7390 = vmatpush3.bf16.msra.mxu1 %v7955_v53 }
 0x444   :  { %7391 = vmatprep.subr.bf16.mxu1 %v8541_v0 }
 0x445   :  { %2880 = vmatpush1.bf16.msra.mxu0 %v9000_v4 }
 0x446   :  { %2881 = vmatprep.subr.bf16.mxu0 %v9004_v6 }
 0x447   :  { %7392 = vmatpush3.bf16.msra.mxu1 %v7956_v59 }
 0x448   :  { %7393 = vmatprep.subr.bf16.mxu1 %v8541_v0 }
 0x449   :  { %2882 = vmatpush1.bf16.msra.mxu0 %v9007_v7 }
 0x44a   :  { %2883 = vmatprep.subr.bf16.mxu0 %v9011_v10 }
 0x44b   :  { %7394 = vmatpush3.bf16.msra.mxu1 %v7957_v28 }
 0x44c   :  { %7395 = vmatprep.subr.bf16.mxu1 %v8541_v0 }
 0x44d   :  { %2884 = vmatpush1.bf16.msra.mxu0 %v9014_v11 }
 0x44e   :  { %2885 = vmatprep.subr.bf16.mxu0 %v9017_v13 }
 0x44f   :  { %7396 = vmatpush3.bf16.msra.mxu1 %v7958_v31 }
 0x450   :  { %7397 = vmatprep.subr.bf16.mxu1 %v8541_v0 }
 0x451   :  { %2886 = vmatpush1.bf16.msra.mxu0 %v9020_v14 }
 0x452   :  { %2887 = vmatprep.subr.bf16.mxu0 %v9024_v63 }
 0x453   :  { %7398 = vmatpush3.bf16.msra.mxu1 %v7959_v32 }
 0x454   :  { %7399 = vmatprep.subr.bf16.mxu1 %v8541_v0 }
 0x455   :  { %2888 = vmatpush1.bf16.msra.mxu0 %v9027_v16 }
 0x456   :  { %2889 = vmatprep.subr.bf16.mxu0 %v9031_v23 }
 0x457   :  { %7400 = vmatpush3.bf16.msra.mxu1 %v7960_v35 }
 0x458   :  { %7401 = vmatprep.subr.bf16.mxu1 %v8541_v0 }
 0x459   :  { %2890 = vmatpush1.bf16.msra.mxu0 %v9034_v27 }
 0x45a   :  { %3117 = vmatprep.subr.bf16.mxu0 %v9038_v21 }
 0x45b   :  { %7402 = vmatpush3.bf16.msra.mxu1 %v7961_v37 }
 0x45c   :  { %7407 = vmatprep.subr.bf16.mxu1 %v8541_v0 }
 0x4cf   :  { %v2175_v41 = vpop.f32.mrb[28].mxu1 }
 0x4d0   :  { %v7345_v43 = vpop.f32.mrb[29].mxu1  ;;  %v2176_v3 = vadd.f32 %v2175_v41, %v8874_v20 }
 0x4d1   :  { %v2178_v46 = vpop.f32.mrb[30].mxu1 }
 0x4d2   :  { %v7346_v47 = vpop.f32.mrb[31].mxu1 }
 0x4ef   :  { %v2376_v49 = vpop.f32.mrb[20].mxu0  ;;  %v2417_v50 = vpop.f32.mrb[32].mxu1 }
 0x4f0   :  { %v7671_v62 = vadd.f32 %v2376_v49, %v8863_v24  ;;  %v2378_v4 = vpop.f32.mrb[21].mxu0  ;;  %v7365_v6 = vpop.f32.mrb[33].mxu1  ;;  %v2437_v56 = vadd.f32 %v8872_v19, %v2417_v50 }
 0x4f1   :  { %v2380_v7 = vpop.f32.mrb[22].mxu0  ;;  %v2420_v10 = vpop.f32.mrb[34].mxu1  ;;  %v7672_v63 = vadd.f32 %v2378_v4, %v8865_v2  ;;  %v9187_v4 = vld [vmem:[%s9875_s2] ss:$0 sm:$0xff] }
 0x4f2   :  { %v6589_v11 = vmul.f32 -1.442695, %v7671_v62  ;;  %v2381_v13 = vpop.f32.mrb[23].mxu0  ;;  %v7366_v14 = vpop.f32.mrb[35].mxu1  ;;  %v2450_v10 = vld [vmem:[#allocation2 + $0x58] sm:$0xff] }
 0x4f3   :  { %v6590_v16 = vmul.f32 -1.442695, %v7672_v63 }
 0x4f4   :  { %8260 = vpow2.f32 %v6589_v11 }
 0x4f5   :  { %8262 = vpow2.f32 %v6590_v16 }
 0x4fe   :  { %v8261_v23 = vpop.eup %8260 }
 0x4ff   :  { %v2427_v27 = vadd.f32 1.0, %v8261_v23  ;;  %v8263_v21 = vpop.eup %8262 }
 0x500   :  { %v2434_v8 = vadd.f32 1.0, %v8263_v21  ;;  %v7962_v21 = vld [vmem:[#allocation8 + $0x8] ss:$12 sps:$4 sm:$0xff]  }
 0x501   :  { %8264 = vrcp.f32 %v2427_v27 }
 0x502   :  { %8266 = vrcp.f32 %v2434_v8 }
 0x50b   :  { %v8265_v38 = vpop.eup %8264 }
 0x50c   :  { %v2438_v22 = vmul.f32 %v8265_v38, %v2437_v56  ;;  %v8267_v31 = vpop.eup %8266  ;;  %v7963_v56 = vld [vmem:[#allocation8 + $0x20] ss:$12 sps:$4 sm:$0xff]  }
 0x50d   :  { %v2441_v35 = vsub.f32 1.0, %v8267_v31  ;;  %v2443_v43 = vmul.f32 %v8267_v31, %v9048_v25  ;;  %v9249_v38 = vld [vmem:[#allocation5 + $0x4c] ss:$12 sps:$4 sm:$0xff]   ;;  %v8005_v31 = vld [vmem:[#allocation7 + $0x8] ss:$12 sps:$4 sm:$0xff]  }
 0x50e   :  { %v2439_v36 = vadd.f32 %v2438_v22, %v2176_v3  ;;  %v9252_v3 = vld [vmem:[#allocation5 + $0x48] ss:$12 sps:$4 sm:$0xff]   ;;  %v7985_v22 = vld [vmem:[#allocation5 + $0x50] ss:$12 sps:$4 sm:$0xff]  }
 0x50f   :  { %v2645_v33 = vpop.f32.mrb[24].mxu0  ;;  %v2686_v39 = vpop.f32.mrb[36].mxu1 }
 0x510   :  { %8268 = vtanh.f32 %v2439_v36  ;;  %v2692_v42 = vadd.f32 %v2645_v33, %v2448_v18  ;;  %v2647_v55 = vpop.f32.mrb[25].mxu0  ;;  %v7385_v58 = vpop.f32.mrb[37].mxu1  ;;  %v2706_v6 = vadd.f32 %v9187_v4, %v2686_v39  ;;  %v9256_v18 = vld [vmem:[#allocation5 + $0x64] ss:$12 sps:$4 sm:$0xff]   ;;  %v9259_v36 = vld [vmem:[#allocation5 + $0x60] ss:$12 sps:$4 sm:$0xff]  }
 0x511   :  { %v2649_v60 = vpop.f32.mrb[26].mxu0  ;;  %v2689_v45 = vpop.f32.mrb[38].mxu1  ;;  %v2699_v19 = vadd.f32 %v2647_v55, %v2449_v54  ;;  %v7989_v33 = vld [vmem:[#allocation5 + $0x68] ss:$12 sps:$4 sm:$0xff]   ;;  %v7993_v54 = vld [vmem:[#allocation5 + $0x80] ss:$12 sps:$4 sm:$0xff]  }
 0x512   :  { %v6615_v53 = vmul.f32 -1.442695, %v2692_v42  ;;  %v2650_v59 = vpop.f32.mrb[27].mxu0  ;;  %v7386_v28 = vpop.f32.mrb[39].mxu1  ;;  %v9263_v39 = vld [vmem:[#allocation5 + $0x7c] ss:$12 sps:$4 sm:$0xff]  }
 0x513   :  { %v6616_v32 = vmul.f32 -1.442695, %v2699_v19  ;;  %v9266_v42 = vld [vmem:[#allocation5 + $0x78] ss:$12 sps:$4 sm:$0xff]   ;;  %v9270_v55 = vld [vmem:[#allocation5 + $0x94] ss:$12 sps:$4 sm:$0xff]  }
 0x514   :  { %8270 = vpow2.f32 %v6615_v53  ;;  %v9273_v58 = vld [vmem:[#allocation5 + $0x90] ss:$12 sps:$4 sm:$0xff]   ;;  %v7997_v60 = vld [vmem:[#allocation5 + $0x98] ss:$12 sps:$4 sm:$0xff]   ;;  %v9280_v53 = vld [vmem:[#allocation5 + $0xa8] ss:$12 sps:$4 sm:$0xff]  }
 0x515   :  { %8272 = vpow2.f32 %v6616_v32  ;;  %v9277_v45 = vld [vmem:[#allocation5 + $0xac] ss:$12 sps:$4 sm:$0xff]   ;;  %v8001_v59 = vld [vmem:[#allocation5 + $0xb0] ss:$12 sps:$4 sm:$0xff]  }
 0x516   :  { %v9291_v28 = vld [vmem:[#allocation7 + $0x4] ss:$12 sps:$4 sm:$0xff]   ;;  %v9293_v19 = vld [vmem:[#allocation7] ss:$12 sps:$4 sm:$0xff]   ;;  %v9297_v32 = vld [vmem:[#allocation7 + $0x1c] ss:$12 sps:$4 sm:$0xff]  }
 0x51a   :  { %v8269_v37 = vpop.eup %8268 }
 0x51b   :  { %v2442_v41 = vmul.f32 %v8269_v37, %v2441_v35  ;;  %v9300_v35 = vld [vmem:[#allocation7 + $0x18] ss:$12 sps:$4 sm:$0xff]   ;;  %v8009_v37 = vld [vmem:[#allocation7 + $0x20] ss:$12 sps:$4 sm:$0xff]  }
 0x51d   :  { %v9181_v46 = vadd.f32 %v2443_v43, %v2442_v41  ;;  %v9304_v41 = vld [vmem:[#allocation7 + $0x34] ss:$12 sps:$4 sm:$0xff]   ;;  %v9307_v43 = vld [vmem:[#allocation7 + $0x30] ss:$12 sps:$4 sm:$0xff]  }
 0x51e   :  { %v8271_v47 = vpop.eup %8270 }
 0x51f   :  { %v2696_v49 = vadd.f32 1.0, %v8271_v47  ;;  %2446 = vst [vmem:[#allocation10 + $0x10] sm:$0xff] %v9181_v46  ;;  %v8273_v50 = vpop.eup %8272  ;;  %v8013_v47 = vld [vmem:[#allocation7 + $0x38] ss:$12 sps:$4 sm:$0xff]  }
 0x520   :  { %v2703_v62 = vadd.f32 1.0, %v8273_v50  ;;  %v9314_v50 = vld [vmem:[#allocation7 + $0x48] ss:$12 sps:$4 sm:$0xff]  }
 0x521   :  { %8274 = vrcp.f32 %v2696_v49  ;;  %v9311_v49 = vld [vmem:[#allocation7 + $0x4c] ss:$12 sps:$4 sm:$0xff]  }
 0x522   :  { %8276 = vrcp.f32 %v2703_v62  ;;  %v8017_v62 = vld [vmem:[#allocation7 + $0x50] ss:$12 sps:$4 sm:$0xff]  }
 0x52b   :  { %v8275_v7 = vpop.eup %8274 }
 0x52c   :  { %v2707_v11 = vmul.f32 %v8275_v7, %v2706_v6  ;;  %v8277_v13 = vpop.eup %8276  ;;  %v9318_v6 = vld [vmem:[#allocation7 + $0x64] ss:$12 sps:$4 sm:$0xff]   ;;  %v9321_v7 = vld [vmem:[#allocation7 + $0x60] ss:$12 sps:$4 sm:$0xff]  }
 0x52d   :  { %v2710_v14 = vsub.f32 1.0, %v8277_v13  ;;  %v2712_v23 = vmul.f32 %v8277_v13, %v9053_v48  ;;  %v7964_v48 = vld [vmem:[#allocation8 + $0x38] ss:$12 sps:$4 sm:$0xff]   ;;  %v8025_v13 = vld [vmem:[#allocation7 + $0x80] ss:$12 sps:$4 sm:$0xff]  }
 0x52e   :  { %v2708_v25 = vadd.f32 %v2707_v11, %v2450_v10  ;;  %v8021_v10 = vld [vmem:[#allocation7 + $0x68] ss:$12 sps:$4 sm:$0xff]  }
 0x52f   :  { %v9324_v11 = vld [vmem:[#allocation7 + $0x7c] ss:$12 sps:$4 sm:$0xff]  }
 0x530   :  { %8278 = vtanh.f32 %v2708_v25  ;;  %v9327_v25 = vld [vmem:[#allocation7 + $0x78] ss:$12 sps:$4 sm:$0xff]  }
 0x53a   :  { %v8279_v63 = vpop.eup %8278 }
 0x53b   :  { %v2711_v16 = vmul.f32 %v8279_v63, %v2710_v14  ;;  %v9331_v14 = vld [vmem:[#allocation7 + $0x94] ss:$12 sps:$4 sm:$0xff]   ;;  %v9334_v63 = vld [vmem:[#allocation7 + $0x90] ss:$12 sps:$4 sm:$0xff]  }
 0x53d   :  { %v9191_v27 = vadd.f32 %v2712_v23, %v2711_v16  ;;  %v8029_v16 = vld [vmem:[#allocation7 + $0x98] ss:$12 sps:$4 sm:$0xff]  }
 0x53e   :  { %v9338_v23 = vld [vmem:[#allocation7 + $0xac] ss:$12 sps:$4 sm:$0xff]  }
 0x53f   :  { %v9195_v8 = vpack.c.bf16 %v9191_v27, %v9191_v27 }
 0x541   :  { %2908 = vmatmul.mubr.bf16.vlgmr.msra.gmra.mrb[28].mxu0 %v9195_v8  ;;  %7404 = vmatmul.mubr.bf16.vlgmr.msra.gmra.mrb[40].mxu1 %v9195_v8 }
 0x542   :  { %3118 = vmatpush1.bf16.msra.mxu0 %v9055_v9  ;;  %7408 = vmatpush3.bf16.msra.mxu1 %v7962_v21  ;;  %v7965_v9 = vld [vmem:[#allocation8 + $0x50] ss:$12 sps:$4 sm:$0xff]   ;;  %v9341_v21 = vld [vmem:[#allocation7 + $0xa8] ss:$12 sps:$4 sm:$0xff]  }
 0x543   :  { %3119 = vmatprep.subr.bf16.mxu0 %v9061_v61  ;;  %7409 = vmatprep.subr.bf16.mxu1 %v8541_v0  ;;  %v7966_v61 = vld [vmem:[#allocation8 + $0x68] ss:$12 sps:$4 sm:$0xff]  }
 0x544   :  { %3149 = vmatprep.mubr.bf16.mxu0 %v8542_v1  ;;  %7423 = vmatprep.mubr.msk.bf16.mxu1 %vm8543_vm0, %v8541_v0 }
 0x546   :  { %3120 = vmatpush1.bf16.msra.mxu0 %v9066_v12  ;;  %7410 = vmatpush3.bf16.msra.mxu1 %v7963_v56  ;;  %v7967_v12 = vld [vmem:[#allocation8 + $0x80] ss:$12 sps:$4 sm:$0xff]   ;;  %v9345_v56 = vld [vmem:[#allocation8 + $0x4] ss:$12 sps:$4 sm:$0xff]  }
 0x547   :  { %3121 = vmatprep.subr.bf16.mxu0 %v9070_v15  ;;  %7411 = vmatprep.subr.bf16.mxu1 %v8541_v0  ;;  %v7968_v15 = vld [vmem:[#allocation8 + $0x98] ss:$12 sps:$4 sm:$0xff]  }
 0x54a   :  { %3122 = vmatpush1.bf16.msra.mxu0 %v9076_v17  ;;  %7412 = vmatpush3.bf16.msra.mxu1 %v7964_v48  ;;  %v7969_v17 = vld [vmem:[#allocation8 + $0xb0] ss:$12 sps:$4 sm:$0xff]  }
 0x54b   :  { %3123 = vmatprep.subr.bf16.mxu0 %v9080_v26  ;;  %7413 = vmatprep.subr.bf16.mxu1 %v8541_v0  ;;  %v9223_v26 = vld [vmem:[#allocation5 + $0x4] ss:$12 sps:$4 sm:$0xff]  }
 0x54e   :  { %3124 = vmatpush1.bf16.msra.mxu0 %v9083_v30  ;;  %7414 = vmatpush3.bf16.msra.mxu1 %v7965_v9  ;;  %v9226_v30 = vld [vmem:[#allocation5] ss:$12 sps:$4 sm:$0xff]  }
 0x54f   :  { %3125 = vmatprep.subr.bf16.mxu0 %v9087_v51  ;;  %7415 = vmatprep.subr.bf16.mxu1 %v8541_v0  ;;  %v7973_v51 = vld [vmem:[#allocation5 + $0x8] ss:$12 sps:$4 sm:$0xff]  }
 0x552   :  { %3126 = vmatpush1.bf16.msra.mxu0 %v9090_v57  ;;  %7416 = vmatpush3.bf16.msra.mxu1 %v7966_v61  ;;  %v2956_v57 = vpack.c.bf16 %v9181_v46, %v9181_v46 }
 0x553   :  { %3127 = vmatprep.subr.bf16.mxu0 %v9094_v29  ;;  %7417 = vmatprep.subr.bf16.mxu1 %v8541_v0  ;;  %v9232_v29 = vld [vmem:[#allocation5 + $0x1c] ss:$12 sps:$4 sm:$0xff]  }
 0x556   :  { %3128 = vmatpush1.bf16.msra.mxu0 %v9097_v34  ;;  %7418 = vmatpush3.bf16.msra.mxu1 %v7967_v12  ;;  %v9235_v34 = vld [vmem:[#allocation5 + $0x18] ss:$12 sps:$4 sm:$0xff]  }
 0x557   :  { %3129 = vmatprep.subr.bf16.mxu0 %v9101_v44  ;;  %7419 = vmatprep.subr.bf16.mxu1 %v8541_v0  ;;  %v7977_v44 = vld [vmem:[#allocation5 + $0x20] ss:$12 sps:$4 sm:$0xff]  }
 0x55a   :  { %3130 = vmatpush1.bf16.msra.mxu0 %v9104_v40  ;;  %7420 = vmatpush3.bf16.msra.mxu1 %v7968_v15  ;;  %v9239_v40 = vld [vmem:[#allocation5 + $0x34] ss:$12 sps:$4 sm:$0xff]  }
 0x55b   :  { %3131 = vmatprep.subr.bf16.mxu0 %v9108_v52  ;;  %7421 = vmatprep.subr.bf16.mxu1 %v8541_v0  ;;  %v9245_v52 = vld [vmem:[#allocation5 + $0x30] ss:$12 sps:$4 sm:$0xff]  }
 0x55e   :  { %3132 = vmatpush1.bf16.msra.mxu0 %v9111_v5  ;;  %7422 = vmatpush3.bf16.msra.mxu1 %v7969_v17  ;;  %v7981_v5 = vld [vmem:[#allocation5 + $0x38] ss:$12 sps:$4 sm:$0xff]  }
 0x55f   :  { %3386 = vmatprep.subr.bf16.mxu0 %v9223_v26  ;;  %7427 = vmatprep.subr.bf16.mxu1 %v8541_v0 }
 0x561   :  { %3150 = vmatmul.mubr.bf16.vlgmr.msra.gmra.mrb[28].mxu0 %v2956_v57  ;;  %7424 = vmatmul.mubr.bf16.vlgmr.msra.gmra.mrb[44].mxu1 %v2956_v57 }
 0x562   :  { %3387 = vmatpush1.bf16.msra.mxu0 %v9226_v30  ;;  %7428 = vmatpush3.bf16.msra.mxu1 %v7973_v51 }
 0x563   :  { %3388 = vmatprep.subr.bf16.mxu0 %v9232_v29  ;;  %7429 = vmatprep.subr.bf16.mxu1 %v8541_v0 }
 0x564   :  { %3418 = vmatprep.mubr.bf16.mxu0 %v8542_v1  ;;  %7443 = vmatprep.mubr.msk.bf16.mxu1 %vm8543_vm0, %v8541_v0 }
 0x566   :  { %3389 = vmatpush1.bf16.msra.mxu0 %v9235_v34  ;;  %7430 = vmatpush3.bf16.msra.mxu1 %v7977_v44 }
 0x567   :  { %3390 = vmatprep.subr.bf16.mxu0 %v9239_v40  ;;  %7431 = vmatprep.subr.bf16.mxu1 %v8541_v0 }
 0x56a   :  { %3391 = vmatpush1.bf16.msra.mxu0 %v9245_v52  ;;  %7432 = vmatpush3.bf16.msra.mxu1 %v7981_v5 }
 0x56b   :  { %3392 = vmatprep.subr.bf16.mxu0 %v9249_v38  ;;  %7433 = vmatprep.subr.bf16.mxu1 %v8541_v0 }
 0x56e   :  { %3393 = vmatpush1.bf16.msra.mxu0 %v9252_v3  ;;  %7434 = vmatpush3.bf16.msra.mxu1 %v7985_v22 }
 0x56f   :  { %3394 = vmatprep.subr.bf16.mxu0 %v9256_v18  ;;  %7435 = vmatprep.subr.bf16.mxu1 %v8541_v0 }
 0x572   :  { %3395 = vmatpush1.bf16.msra.mxu0 %v9259_v36  ;;  %7436 = vmatpush3.bf16.msra.mxu1 %v7989_v33 }
 0x573   :  { %3396 = vmatprep.subr.bf16.mxu0 %v9263_v39  ;;  %7437 = vmatprep.subr.bf16.mxu1 %v8541_v0 }
 0x576   :  { %3397 = vmatpush1.bf16.msra.mxu0 %v9266_v42  ;;  %7438 = vmatpush3.bf16.msra.mxu1 %v7993_v54 }
 0x577   :  { %3398 = vmatprep.subr.bf16.mxu0 %v9270_v55  ;;  %7439 = vmatprep.subr.bf16.mxu1 %v8541_v0 }
 0x57a   :  { %3399 = vmatpush1.bf16.msra.mxu0 %v9273_v58  ;;  %7440 = vmatpush3.bf16.msra.mxu1 %v7997_v60 }
 0x57b   :  { %3400 = vmatprep.subr.bf16.mxu0 %v9277_v45  ;;  %7441 = vmatprep.subr.bf16.mxu1 %v8541_v0 }
 0x57e   :  { %3401 = vmatpush1.bf16.msra.mxu0 %v9280_v53  ;;  %7442 = vmatpush3.bf16.msra.mxu1 %v8001_v59 }
 0x57f   :  { %7447 = vmatprep.subr.bf16.mxu1 %v8541_v0  ;;  %3650 = vmatprep.subr.bf16.mxu0 %v9291_v28 }
 0x581   :  { %3419 = vmatmul.mubr.bf16.vlgmr.msra.gmra.mrb[32].mxu0 %v9195_v8  ;;  %7444 = vmatmul.mubr.bf16.vlgmr.msra.gmra.mrb[48].mxu1 %v9195_v8  ;;  %v8033_v8 = vld [vmem:[#allocation7 + $0xb0] ss:$12 sps:$4 sm:$0xff]  }
 0x582   :  { %3682 = vmatprep.mubr.bf16.mxu0 %v8542_v1  ;;  %7463 = vmatprep.mubr.msk.bf16.mxu1 %vm8543_vm0, %v8541_v0 }
 0x583   :  { %3651 = vmatpush1.bf16.msra.mxu0 %v9293_v19  ;;  %7448 = vmatpush3.bf16.msra.mxu1 %v8005_v31 }
 0x584   :  { %7449 = vmatprep.subr.bf16.mxu1 %v8541_v0  ;;  %3652 = vmatprep.subr.bf16.mxu0 %v9297_v32 }
 0x587   :  { %3653 = vmatpush1.bf16.msra.mxu0 %v9300_v35  ;;  %7450 = vmatpush3.bf16.msra.mxu1 %v8009_v37 }
 0x588   :  { %7451 = vmatprep.subr.bf16.mxu1 %v8541_v0  ;;  %3654 = vmatprep.subr.bf16.mxu0 %v9304_v41 }
 0x58b   :  { %3655 = vmatpush1.bf16.msra.mxu0 %v9307_v43  ;;  %7452 = vmatpush3.bf16.msra.mxu1 %v8013_v47 }
 0x58c   :  { %7453 = vmatprep.subr.bf16.mxu1 %v8541_v0  ;;  %3656 = vmatprep.subr.bf16.mxu0 %v9311_v49 }
 0x58f   :  { %3657 = vmatpush1.bf16.msra.mxu0 %v9314_v50  ;;  %7454 = vmatpush3.bf16.msra.mxu1 %v8017_v62 }
 0x590   :  { %7455 = vmatprep.subr.bf16.mxu1 %v8541_v0  ;;  %3658 = vmatprep.subr.bf16.mxu0 %v9318_v6 }
 0x593   :  { %3659 = vmatpush1.bf16.msra.mxu0 %v9321_v7  ;;  %7456 = vmatpush3.bf16.msra.mxu1 %v8021_v10 }
 0x594   :  { %3660 = vmatprep.subr.bf16.mxu0 %v9324_v11  ;;  %7457 = vmatprep.subr.bf16.mxu1 %v8541_v0 }
 0x597   :  { %3661 = vmatpush1.bf16.msra.mxu0 %v9327_v25  ;;  %7458 = vmatpush3.bf16.msra.mxu1 %v8025_v13  ;;  %v9355_v13 = vld [vmem:[%s9879_s6] ss:$0 sm:$0xff] }
 0x598   :  { %3662 = vmatprep.subr.bf16.mxu0 %v9331_v14  ;;  %7459 = vmatprep.subr.bf16.mxu1 %v8541_v0 }
 0x59b   :  { %3663 = vmatpush1.bf16.msra.mxu0 %v9334_v63  ;;  %7460 = vmatpush3.bf16.msra.mxu1 %v8029_v16 }
 0x59c   :  { %3664 = vmatprep.subr.bf16.mxu0 %v9338_v23  ;;  %7461 = vmatprep.subr.bf16.mxu1 %v8541_v0 }
 0x59f   :  { %3665 = vmatpush1.bf16.msra.mxu0 %v9341_v21  ;;  %7462 = vmatpush3.bf16.msra.mxu1 %v8033_v8 }
 0x5a0   :  { %3892 = vmatprep.subr.bf16.mxu0 %v9345_v56  ;;  %7467 = vmatprep.subr.bf16.mxu1 %v8541_v0 }
 0x614   :  { %v2950_v48 = vpop.f32.mrb[40].mxu1 }
 0x615   :  { %v7405_v9 = vpop.f32.mrb[41].mxu1 }
 0x616   :  { %v2953_v61 = vpop.f32.mrb[42].mxu1  ;;  %v2951_v9 = vadd.f32 %v2950_v48, %v8874_v20 }
 0x617   :  { %v7406_v12 = vpop.f32.mrb[43].mxu1 }
 0x618   :  { %v3223_v12 = vld [vmem:[#allocation2 + $0x60] sm:$0xff] }
 0x634   :  { %v3151_v15 = vpop.f32.mrb[28].mxu0  ;;  %v3192_v17 = vpop.f32.mrb[44].mxu1 }
 0x635   :  { %v7673_v51 = vadd.f32 %v3151_v15, %v8863_v24  ;;  %v3153_v57 = vpop.f32.mrb[29].mxu0  ;;  %v7425_v44 = vpop.f32.mrb[45].mxu1  ;;  %v3212_v16 = vadd.f32 %v9355_v13, %v3192_v17 }
 0x636   :  { %v3155_v5 = vpop.f32.mrb[30].mxu0  ;;  %v3195_v22 = vpop.f32.mrb[46].mxu1  ;;  %v7674_v59 = vadd.f32 %v3153_v57, %v8865_v2 }
 0x637   :  { %v6665_v33 = vmul.f32 -1.442695, %v7673_v51  ;;  %v3156_v54 = vpop.f32.mrb[31].mxu0  ;;  %v7426_v60 = vpop.f32.mrb[47].mxu1  ;;  %v3224_v5 = vld [vmem:[#allocation2 + $0x68] sm:$0xff] }
 0x638   :  { %v6666_v31 = vmul.f32 -1.442695, %v7674_v59 }
 0x639   :  { %8280 = vpow2.f32 %v6665_v33 }
 0x63a   :  { %8282 = vpow2.f32 %v6666_v31 }
 0x643   :  { %v8281_v37 = vpop.eup %8280 }
 0x644   :  { %v3202_v47 = vadd.f32 1.0, %v8281_v37  ;;  %v8283_v62 = vpop.eup %8282 }
 0x645   :  { %v3209_v10 = vadd.f32 1.0, %v8283_v62 }
 0x646   :  { %8284 = vrcp.f32 %v3202_v47 }
 0x647   :  { %8286 = vrcp.f32 %v3209_v10 }
 0x650   :  { %v8285_v8 = vpop.eup %8284 }
 0x651   :  { %v3213_v61 = vmul.f32 %v8285_v8, %v3212_v16  ;;  %v8287_v47 = vpop.eup %8286 }
 0x652   :  { %v3216_v62 = vsub.f32 1.0, %v8287_v47  ;;  %v3218_v8 = vmul.f32 %v8287_v47, %v9181_v46  ;;  %v9367_v47 = vld [vmem:[#allocation8] ss:$12 sps:$4 sm:$0xff]  }
 0x653   :  { %v3214_v15 = vadd.f32 %v3213_v61, %v2951_v9 }
 0x654   :  { %v3420_v51 = vpop.f32.mrb[32].mxu0  ;;  %v3461_v57 = vpop.f32.mrb[48].mxu1 }
 0x655   :  { %8288 = vtanh.f32 %v3214_v15  ;;  %v3467_v44 = vadd.f32 %v3420_v51, %v3223_v12  ;;  %v3422_v22 = vpop.f32.mrb[33].mxu0  ;;  %v7445_v33 = vpop.f32.mrb[49].mxu1 }
 0x656   :  { %v3424_v54 = vpop.f32.mrb[34].mxu0  ;;  %v3464_v60 = vpop.f32.mrb[50].mxu1  ;;  %v3474_v17 = vadd.f32 %v3422_v22, %v3224_v5  ;;  %v3225_v22 = vld [vmem:[#allocation2 + $0x70] sm:$0xff] }
 0x657   :  { %v6691_v59 = vmul.f32 -1.442695, %v3467_v44  ;;  %v3425_v31 = vpop.f32.mrb[35].mxu0  ;;  %v7446_v37 = vpop.f32.mrb[51].mxu1  ;;  %v3481_v44 = vadd.f32 %v9187_v4, %v3461_v57 }
 0x658   :  { %v6692_v48 = vmul.f32 -1.442695, %v3474_v17 }
 0x659   :  { %8290 = vpow2.f32 %v6691_v59 }
 0x65a   :  { %8292 = vpow2.f32 %v6692_v48  ;;  %v8037_v48 = vld [vmem:[#allocation8 + $0x8] ss:$12 sps:$4 sm:$0xff]  }
 0x65f   :  { %v8289_v10 = vpop.eup %8288 }
 0x660   :  { %v3217_v16 = vmul.f32 %v8289_v10, %v3216_v62  ;;  %v9373_v62 = vld [vmem:[#allocation8 + $0x1c] ss:$12 sps:$4 sm:$0xff]   ;;  %v9378_v10 = vld [vmem:[#allocation8 + $0x18] ss:$12 sps:$4 sm:$0xff]  }
 0x662   :  { %v9360_v9 = vadd.f32 %v3218_v8, %v3217_v16  ;;  %v9382_v16 = vld [vmem:[#allocation8 + $0x34] ss:$12 sps:$4 sm:$0xff]   ;;  %v9388_v8 = vld [vmem:[#allocation8 + $0x30] ss:$12 sps:$4 sm:$0xff]  }
 0x663   :  { %v8291_v61 = vpop.eup %8290 }
 0x664   :  { %v3471_v12 = vadd.f32 1.0, %v8291_v61  ;;  %3221 = vst [vmem:[#allocation10 + $0x18] sm:$0xff] %v9360_v9  ;;  %v8293_v15 = vpop.eup %8292  ;;  %v8045_v61 = vld [vmem:[#allocation8 + $0x38] ss:$12 sps:$4 sm:$0xff]  }
 0x665   :  { %v3478_v51 = vadd.f32 1.0, %v8293_v15  ;;  %v9395_v15 = vld [vmem:[#allocation8 + $0x48] ss:$12 sps:$4 sm:$0xff]  }
 0x666   :  { %8294 = vrcp.f32 %v3471_v12  ;;  %v9392_v12 = vld [vmem:[#allocation8 + $0x4c] ss:$12 sps:$4 sm:$0xff]  }
 0x667   :  { %8296 = vrcp.f32 %v3478_v51  ;;  %v8049_v51 = vld [vmem:[#allocation8 + $0x50] ss:$12 sps:$4 sm:$0xff]  }
 0x670   :  { %v8295_v5 = vpop.eup %8294 }
 0x671   :  { %v3482_v33 = vmul.f32 %v8295_v5, %v3481_v44  ;;  %v8297_v60 = vpop.eup %8296  ;;  %v9399_v44 = vld [vmem:[#allocation8 + $0x64] ss:$12 sps:$4 sm:$0xff]   ;;  %v9402_v5 = vld [vmem:[#allocation8 + $0x60] ss:$12 sps:$4 sm:$0xff]  }
 0x672   :  { %v3485_v59 = vsub.f32 1.0, %v8297_v60  ;;  %v3487_v37 = vmul.f32 %v8297_v60, %v9191_v27  ;;  %v8041_v27 = vld [vmem:[#allocation8 + $0x20] ss:$12 sps:$4 sm:$0xff]  }
 0x673   :  { %v3483_v54 = vadd.f32 %v3482_v33, %v3225_v22  ;;  %v8053_v22 = vld [vmem:[#allocation8 + $0x68] ss:$12 sps:$4 sm:$0xff]   ;;  %v8057_v60 = vld [vmem:[#allocation8 + $0x80] ss:$12 sps:$4 sm:$0xff]  }
 0x674   :  { %v9406_v33 = vld [vmem:[#allocation8 + $0x7c] ss:$12 sps:$4 sm:$0xff]  }
 0x675   :  { %8298 = vtanh.f32 %v3483_v54  ;;  %v9409_v54 = vld [vmem:[#allocation8 + $0x78] ss:$12 sps:$4 sm:$0xff]  }
 0x67f   :  { %v8299_v46 = vpop.eup %8298 }
 0x680   :  { %v3486_v31 = vmul.f32 %v8299_v46, %v3485_v59  ;;  %v9413_v59 = vld [vmem:[#allocation8 + $0x94] ss:$12 sps:$4 sm:$0xff]   ;;  %v9416_v46 = vld [vmem:[#allocation8 + $0x90] ss:$12 sps:$4 sm:$0xff]  }
 0x682   :  { %v9365_v17 = vadd.f32 %v3487_v37, %v3486_v31  ;;  %v8061_v31 = vld [vmem:[#allocation8 + $0x98] ss:$12 sps:$4 sm:$0xff]  }
 0x683   :  { %v9420_v37 = vld [vmem:[#allocation8 + $0xac] ss:$12 sps:$4 sm:$0xff]  }
 0x684   :  { %v9371_v57 = vpack.c.bf16 %v9365_v17, %v9365_v17 }
 0x686   :  { %3683 = vmatmul.mubr.bf16.vlgmr.msra.gmra.mrb[36].mxu0 %v9371_v57  ;;  %7464 = vmatmul.mubr.bf16.vlgmr.msra.gmra.mrb[52].mxu1 %v9371_v57 }
 0x687   :  { %3893 = vmatpush1.bf16.msra.mxu0 %v9367_v47  ;;  %7468 = vmatpush3.bf16.msra.mxu1 %v8037_v48  ;;  %v9423_v48 = vld [vmem:[#allocation8 + $0xa8] ss:$12 sps:$4 sm:$0xff]  }
 0x688   :  { %3894 = vmatprep.subr.bf16.mxu0 %v9373_v62  ;;  %7469 = vmatprep.subr.bf16.mxu1 %v8541_v0 }
 0x689   :  { %3924 = vmatprep.mubr.bf16.mxu0 %v8542_v1  ;;  %7483 = vmatprep.mubr.msk.bf16.mxu1 %vm8543_vm0, %v8541_v0 }
 0x68b   :  { %3895 = vmatpush1.bf16.msra.mxu0 %v9378_v10  ;;  %7470 = vmatpush3.bf16.msra.mxu1 %v8041_v27  ;;  %v8065_v27 = vld [vmem:[#allocation8 + $0xb0] ss:$12 sps:$4 sm:$0xff]  }
 0x68c   :  { %3896 = vmatprep.subr.bf16.mxu0 %v9382_v16  ;;  %7471 = vmatprep.subr.bf16.mxu1 %v8541_v0 }
 0x68f   :  { %3897 = vmatpush1.bf16.msra.mxu0 %v9388_v8  ;;  %7472 = vmatpush3.bf16.msra.mxu1 %v8045_v61  ;;  %v8066_v61 = vld [vmem:[#allocation5 + $0x8] ss:$12 sps:$4 sm:$0xff]  }
 0x690   :  { %3898 = vmatprep.subr.bf16.mxu0 %v9392_v12  ;;  %7473 = vmatprep.subr.bf16.mxu1 %v8541_v0 }
 0x693   :  { %3899 = vmatpush1.bf16.msra.mxu0 %v9395_v15  ;;  %7474 = vmatpush3.bf16.msra.mxu1 %v8049_v51  ;;  %v3731_v51 = vpack.c.bf16 %v9360_v9, %v9360_v9 }
 0x694   :  { %3900 = vmatprep.subr.bf16.mxu0 %v9399_v44  ;;  %7475 = vmatprep.subr.bf16.mxu1 %v8541_v0 }
 0x697   :  { %3901 = vmatpush1.bf16.msra.mxu0 %v9402_v5  ;;  %7476 = vmatpush3.bf16.msra.mxu1 %v8053_v22  ;;  %v8067_v22 = vld [vmem:[#allocation5 + $0x20] ss:$12 sps:$4 sm:$0xff]  }
 0x698   :  { %3902 = vmatprep.subr.bf16.mxu0 %v9406_v33  ;;  %7477 = vmatprep.subr.bf16.mxu1 %v8541_v0 }
 0x69b   :  { %3903 = vmatpush1.bf16.msra.mxu0 %v9409_v54  ;;  %7478 = vmatpush3.bf16.msra.mxu1 %v8057_v60 }
 0x69c   :  { %3904 = vmatprep.subr.bf16.mxu0 %v9413_v59  ;;  %7479 = vmatprep.subr.bf16.mxu1 %v8541_v0 }
 0x69f   :  { %3905 = vmatpush1.bf16.msra.mxu0 %v9416_v46  ;;  %7480 = vmatpush3.bf16.msra.mxu1 %v8061_v31 }
 0x6a0   :  { %3906 = vmatprep.subr.bf16.mxu0 %v9420_v37  ;;  %7481 = vmatprep.subr.bf16.mxu1 %v8541_v0 }
 0x6a3   :  { %3907 = vmatpush1.bf16.msra.mxu0 %v9423_v48  ;;  %7482 = vmatpush3.bf16.msra.mxu1 %v8065_v27 }
 0x6a4   :  { %4161 = vmatprep.subr.bf16.mxu0 %v9223_v26  ;;  %7487 = vmatprep.subr.bf16.mxu1 %v8541_v0  ;;  %v8068_v26 = vld [vmem:[#allocation5 + $0x38] ss:$12 sps:$4 sm:$0xff]  }
 0x6a6   :  { %3925 = vmatmul.mubr.bf16.vlgmr.msra.gmra.mrb[36].mxu0 %v3731_v51  ;;  %7484 = vmatmul.mubr.bf16.vlgmr.msra.gmra.mrb[56].mxu1 %v3731_v51  ;;  %v3998_v51 = vld [vmem:[#allocation2 + $0x78] sm:$0xff] }
 0x6a7   :  { %4162 = vmatpush1.bf16.msra.mxu0 %v9226_v30  ;;  %7488 = vmatpush3.bf16.msra.mxu1 %v8066_v61  ;;  %v8069_v30 = vld [vmem:[#allocation5 + $0x50] ss:$12 sps:$4 sm:$0xff]  }
 0x6a8   :  { %4163 = vmatprep.subr.bf16.mxu0 %v9232_v29  ;;  %7489 = vmatprep.subr.bf16.mxu1 %v8541_v0  ;;  %v8070_v29 = vld [vmem:[#allocation5 + $0x68] ss:$12 sps:$4 sm:$0xff]  }
 0x6a9   :  { %4193 = vmatprep.mubr.bf16.mxu0 %v8542_v1  ;;  %7503 = vmatprep.mubr.msk.bf16.mxu1 %vm8543_vm0, %v8541_v0 }
 0x6ab   :  { %4164 = vmatpush1.bf16.msra.mxu0 %v9235_v34  ;;  %7490 = vmatpush3.bf16.msra.mxu1 %v8067_v22  ;;  %v8071_v34 = vld [vmem:[#allocation5 + $0x80] ss:$12 sps:$4 sm:$0xff]  }
 0x6ac   :  { %4165 = vmatprep.subr.bf16.mxu0 %v9239_v40  ;;  %7491 = vmatprep.subr.bf16.mxu1 %v8541_v0  ;;  %v8072_v40 = vld [vmem:[#allocation5 + $0x98] ss:$12 sps:$4 sm:$0xff]  }
 0x6af   :  { %4166 = vmatpush1.bf16.msra.mxu0 %v9245_v52  ;;  %7492 = vmatpush3.bf16.msra.mxu1 %v8068_v26  ;;  %v8073_v52 = vld [vmem:[#allocation5 + $0xb0] ss:$12 sps:$4 sm:$0xff]  }
 0x6b0   :  { %4167 = vmatprep.subr.bf16.mxu0 %v9249_v38  ;;  %7493 = vmatprep.subr.bf16.mxu1 %v8541_v0  ;;  %v8074_v38 = vld [vmem:[#allocation7 + $0x8] ss:$12 sps:$4 sm:$0xff]  }
 0x6b3   :  { %4168 = vmatpush1.bf16.msra.mxu0 %v9252_v3  ;;  %7494 = vmatpush3.bf16.msra.mxu1 %v8069_v30  ;;  %v8075_v3 = vld [vmem:[#allocation7 + $0x20] ss:$12 sps:$4 sm:$0xff]  }
 0x6b4   :  { %4169 = vmatprep.subr.bf16.mxu0 %v9256_v18  ;;  %7495 = vmatprep.subr.bf16.mxu1 %v8541_v0  ;;  %v8076_v18 = vld [vmem:[#allocation7 + $0x38] ss:$12 sps:$4 sm:$0xff]  }
 0x6b7   :  { %4170 = vmatpush1.bf16.msra.mxu0 %v9259_v36  ;;  %7496 = vmatpush3.bf16.msra.mxu1 %v8070_v29  ;;  %v8077_v36 = vld [vmem:[#allocation7 + $0x50] ss:$12 sps:$4 sm:$0xff]  }
 0x6b8   :  { %4171 = vmatprep.subr.bf16.mxu0 %v9263_v39  ;;  %7497 = vmatprep.subr.bf16.mxu1 %v8541_v0  ;;  %v8078_v39 = vld [vmem:[#allocation7 + $0x68] ss:$12 sps:$4 sm:$0xff]  }
 0x6bb   :  { %4172 = vmatpush1.bf16.msra.mxu0 %v9266_v42  ;;  %7498 = vmatpush3.bf16.msra.mxu1 %v8071_v34  ;;  %v8079_v42 = vld [vmem:[#allocation7 + $0x80] ss:$12 sps:$4 sm:$0xff]  }
 0x6bc   :  { %4173 = vmatprep.subr.bf16.mxu0 %v9270_v55  ;;  %7499 = vmatprep.subr.bf16.mxu1 %v8541_v0  ;;  %v8080_v55 = vld [vmem:[#allocation7 + $0x98] ss:$12 sps:$4 sm:$0xff]  }
 0x6bd   :  { %v3999_v34 = vld [vmem:[#allocation2 + $0x80] sm:$0xff] }
 0x6bf   :  { %4174 = vmatpush1.bf16.msra.mxu0 %v9273_v58  ;;  %7500 = vmatpush3.bf16.msra.mxu1 %v8072_v40  ;;  %v8081_v58 = vld [vmem:[#allocation7 + $0xb0] ss:$12 sps:$4 sm:$0xff]  }
 0x6c0   :  { %4175 = vmatprep.subr.bf16.mxu0 %v9277_v45  ;;  %7501 = vmatprep.subr.bf16.mxu1 %v8541_v0 }
 0x6c3   :  { %4176 = vmatpush1.bf16.msra.mxu0 %v9280_v53  ;;  %7502 = vmatpush3.bf16.msra.mxu1 %v8073_v52 }
 0x6c4   :  { %4425 = vmatprep.subr.bf16.mxu0 %v9291_v28  ;;  %7507 = vmatprep.subr.bf16.mxu1 %v8541_v0 }
 0x6c6   :  { %4194 = vmatmul.mubr.bf16.vlgmr.msra.gmra.mrb[40].mxu0 %v9371_v57  ;;  %7504 = vmatmul.mubr.bf16.vlgmr.msra.gmra.mrb[60].mxu1 %v9371_v57 }
 0x6c7   :  { %4426 = vmatpush1.bf16.msra.mxu0 %v9293_v19  ;;  %4457 = vmatprep.mubr.bf16.mxu0 %v8542_v1 }
 0x6c8   :  { %4427 = vmatprep.subr.bf16.mxu0 %v9297_v32  ;;  %7523 = vmatprep.mubr.msk.bf16.mxu1 %vm8543_vm0, %v8541_v0 }
 0x6c9   :  { %7508 = vmatpush3.bf16.msra.mxu1 %v8074_v38 }
 0x6ca   :  { %7509 = vmatprep.subr.bf16.mxu1 %v8541_v0 }
 0x6cb   :  { %4428 = vmatpush1.bf16.msra.mxu0 %v9300_v35 }
 0x6cc   :  { %4429 = vmatprep.subr.bf16.mxu0 %v9304_v41 }
 0x6cd   :  { %7510 = vmatpush3.bf16.msra.mxu1 %v8075_v3 }
 0x6ce   :  { %7511 = vmatprep.subr.bf16.mxu1 %v8541_v0 }
 0x6cf   :  { %4430 = vmatpush1.bf16.msra.mxu0 %v9307_v43 }
 0x6d0   :  { %4431 = vmatprep.subr.bf16.mxu0 %v9311_v49 }
 0x6d1   :  { %7512 = vmatpush3.bf16.msra.mxu1 %v8076_v18 }
 0x6d2   :  { %7513 = vmatprep.subr.bf16.mxu1 %v8541_v0 }
 0x6d3   :  { %4432 = vmatpush1.bf16.msra.mxu0 %v9314_v50 }
 0x6d4   :  { %4433 = vmatprep.subr.bf16.mxu0 %v9318_v6 }
 0x6d5   :  { %7514 = vmatpush3.bf16.msra.mxu1 %v8077_v36 }
 0x6d6   :  { %7515 = vmatprep.subr.bf16.mxu1 %v8541_v0 }
 0x6d7   :  { %4434 = vmatpush1.bf16.msra.mxu0 %v9321_v7 }
 0x6d8   :  { %4435 = vmatprep.subr.bf16.mxu0 %v9324_v11 }
 0x6d9   :  { %7516 = vmatpush3.bf16.msra.mxu1 %v8078_v39 }
 0x6da   :  { %7517 = vmatprep.subr.bf16.mxu1 %v8541_v0 }
 0x6db   :  { %4436 = vmatpush1.bf16.msra.mxu0 %v9327_v25 }
 0x6dc   :  { %4437 = vmatprep.subr.bf16.mxu0 %v9331_v14 }
 0x6dd   :  { %7518 = vmatpush3.bf16.msra.mxu1 %v8079_v42 }
 0x6de   :  { %7519 = vmatprep.subr.bf16.mxu1 %v8541_v0 }
 0x6df   :  { %4438 = vmatpush1.bf16.msra.mxu0 %v9334_v63 }
 0x6e0   :  { %4439 = vmatprep.subr.bf16.mxu0 %v9338_v23 }
 0x6e1   :  { %7520 = vmatpush3.bf16.msra.mxu1 %v8080_v55 }
 0x6e2   :  { %7521 = vmatprep.subr.bf16.mxu1 %v8541_v0 }
 0x6e3   :  { %4440 = vmatpush1.bf16.msra.mxu0 %v9341_v21 }
 0x6e4   :  { %4667 = vmatprep.subr.bf16.mxu0 %v9345_v56 }
 0x6e5   :  { %7522 = vmatpush3.bf16.msra.mxu1 %v8081_v58 }
 0x6e6   :  { %7527 = vmatprep.subr.bf16.mxu1 %v8541_v0 }
 0x759   :  { %v3725_v45 = vpop.f32.mrb[52].mxu1 }
 0x75a   :  { %v7465_v53 = vpop.f32.mrb[53].mxu1  ;;  %v3726_v27 = vadd.f32 %v3725_v45, %v8874_v20 }
 0x75b   :  { %v3728_v28 = vpop.f32.mrb[54].mxu1 }
 0x75c   :  { %v7466_v19 = vpop.f32.mrb[55].mxu1 }
 0x779   :  { %v3926_v32 = vpop.f32.mrb[36].mxu0  ;;  %v3967_v35 = vpop.f32.mrb[56].mxu1 }
 0x77a   :  { %v7675_v41 = vadd.f32 %v3926_v32, %v8863_v24  ;;  %v3928_v43 = vpop.f32.mrb[37].mxu0  ;;  %v7485_v49 = vpop.f32.mrb[57].mxu1  ;;  %v3987_v60 = vadd.f32 %v9355_v13, %v3967_v35 }
 0x77b   :  { %v3930_v50 = vpop.f32.mrb[38].mxu0  ;;  %v3970_v6 = vpop.f32.mrb[58].mxu1  ;;  %v7676_v14 = vadd.f32 %v3928_v43, %v8865_v2 }
 0x77c   :  { %v6741_v7 = vmul.f32 -1.442695, %v7675_v41  ;;  %v3931_v11 = vpop.f32.mrb[39].mxu0  ;;  %v7486_v25 = vpop.f32.mrb[59].mxu1 }
 0x77d   :  { %v6742_v63 = vmul.f32 -1.442695, %v7676_v14 }
 0x77e   :  { %8300 = vpow2.f32 %v6741_v7  ;;  %v4000_v7 = vld [vmem:[#allocation2 + $0x88] sm:$0xff] }
 0x77f   :  { %8302 = vpow2.f32 %v6742_v63 }
 0x788   :  { %v8301_v23 = vpop.eup %8300 }
 0x789   :  { %v3977_v21 = vadd.f32 1.0, %v8301_v23  ;;  %v8303_v56 = vpop.eup %8302 }
 0x78a   :  { %v3984_v57 = vadd.f32 1.0, %v8303_v56 }
 0x78b   :  { %8304 = vrcp.f32 %v3977_v21 }
 0x78c   :  { %8306 = vrcp.f32 %v3984_v57  ;;  %v8082_v57 = vld [vmem:[#allocation8 + $0x8] ss:$12 sps:$4 sm:$0xff]  }
 0x795   :  { %v8305_v31 = vpop.eup %8304 }
 0x796   :  { %v3988_v61 = vmul.f32 %v8305_v31, %v3987_v60  ;;  %v8307_v55 = vpop.eup %8306  ;;  %v9556_v31 = vld [vmem:[#allocation5 + $0x4c] ss:$12 sps:$4 sm:$0xff]  }
 0x797   :  { %v3991_v45 = vsub.f32 1.0, %v8307_v55  ;;  %v3993_v19 = vmul.f32 %v8307_v55, %v9360_v9  ;;  %v8125_v55 = vld [vmem:[#allocation7 + $0x8] ss:$12 sps:$4 sm:$0xff]  }
 0x798   :  { %v3989_v22 = vadd.f32 %v3988_v61, %v3726_v27  ;;  %v9559_v27 = vld [vmem:[#allocation5 + $0x48] ss:$12 sps:$4 sm:$0xff]   ;;  %v8105_v61 = vld [vmem:[#allocation5 + $0x50] ss:$12 sps:$4 sm:$0xff]  }
 0x799   :  { %v4195_v26 = vpop.f32.mrb[40].mxu0  ;;  %v4236_v30 = vpop.f32.mrb[60].mxu1 }
 0x79a   :  { %8308 = vtanh.f32 %v3989_v22  ;;  %v4242_v29 = vadd.f32 %v4195_v26, %v3998_v51  ;;  %v4197_v40 = vpop.f32.mrb[41].mxu0  ;;  %v7505_v52 = vpop.f32.mrb[61].mxu1  ;;  %v4256_v50 = vadd.f32 %v9187_v4, %v4236_v30  ;;  %v8083_v4 = vld [vmem:[#allocation8 + $0x20] ss:$12 sps:$4 sm:$0xff]   ;;  %v9563_v51 = vld [vmem:[#allocation5 + $0x64] ss:$12 sps:$4 sm:$0xff]  }
 0x79b   :  { %v4199_v38 = vpop.f32.mrb[42].mxu0  ;;  %v4239_v3 = vpop.f32.mrb[62].mxu1  ;;  %v4249_v42 = vadd.f32 %v4197_v40, %v3999_v34  ;;  %v9566_v22 = vld [vmem:[#allocation5 + $0x60] ss:$12 sps:$4 sm:$0xff]   ;;  %v8109_v26 = vld [vmem:[#allocation5 + $0x68] ss:$12 sps:$4 sm:$0xff]  }
 0x79c   :  { %v6767_v18 = vmul.f32 -1.442695, %v4242_v29  ;;  %v4200_v36 = vpop.f32.mrb[43].mxu0  ;;  %v7506_v39 = vpop.f32.mrb[63].mxu1  ;;  %v9570_v30 = vld [vmem:[#allocation5 + $0x7c] ss:$12 sps:$4 sm:$0xff]  }
 0x79d   :  { %v6768_v58 = vmul.f32 -1.442695, %v4249_v42  ;;  %v9573_v29 = vld [vmem:[#allocation5 + $0x78] ss:$12 sps:$4 sm:$0xff]   ;;  %v8113_v34 = vld [vmem:[#allocation5 + $0x80] ss:$12 sps:$4 sm:$0xff]  }
 0x79e   :  { %8310 = vpow2.f32 %v6767_v18  ;;  %v9577_v40 = vld [vmem:[#allocation5 + $0x94] ss:$12 sps:$4 sm:$0xff]   ;;  %v9580_v52 = vld [vmem:[#allocation5 + $0x90] ss:$12 sps:$4 sm:$0xff]   ;;  %v8117_v38 = vld [vmem:[#allocation5 + $0x98] ss:$12 sps:$4 sm:$0xff]  }
 0x79f   :  { %8312 = vpow2.f32 %v6768_v58  ;;  %v9584_v3 = vld [vmem:[#allocation5 + $0xac] ss:$12 sps:$4 sm:$0xff]   ;;  %v9587_v18 = vld [vmem:[#allocation5 + $0xa8] ss:$12 sps:$4 sm:$0xff]   ;;  %v8121_v36 = vld [vmem:[#allocation5 + $0xb0] ss:$12 sps:$4 sm:$0xff]  }
 0x7a0   :  { %v9598_v39 = vld [vmem:[#allocation7 + $0x4] ss:$12 sps:$4 sm:$0xff]   ;;  %v9600_v42 = vld [vmem:[#allocation7] ss:$12 sps:$4 sm:$0xff]   ;;  %v9604_v58 = vld [vmem:[#allocation7 + $0x1c] ss:$12 sps:$4 sm:$0xff]  }
 0x7a4   :  { %v8309_v53 = vpop.eup %8308 }
 0x7a5   :  { %v3992_v28 = vmul.f32 %v8309_v53, %v3991_v45  ;;  %v9607_v45 = vld [vmem:[#allocation7 + $0x18] ss:$12 sps:$4 sm:$0xff]   ;;  %v8129_v53 = vld [vmem:[#allocation7 + $0x20] ss:$12 sps:$4 sm:$0xff]  }
 0x7a7   :  { %v9493_v32 = vadd.f32 %v3993_v19, %v3992_v28  ;;  %v9611_v28 = vld [vmem:[#allocation7 + $0x34] ss:$12 sps:$4 sm:$0xff]   ;;  %v9614_v19 = vld [vmem:[#allocation7 + $0x30] ss:$12 sps:$4 sm:$0xff]  }
 0x7a8   :  { %v8311_v35 = vpop.eup %8310 }
 0x7a9   :  { %v4246_v41 = vadd.f32 1.0, %v8311_v35  ;;  %3996 = vst [vmem:[#allocation10 + $0x20] sm:$0xff] %v9493_v32  ;;  %v8313_v43 = vpop.eup %8312  ;;  %v8133_v35 = vld [vmem:[#allocation7 + $0x38] ss:$12 sps:$4 sm:$0xff]  }
 0x7aa   :  { %v4253_v49 = vadd.f32 1.0, %v8313_v43  ;;  %v9621_v43 = vld [vmem:[#allocation7 + $0x48] ss:$12 sps:$4 sm:$0xff]  }
 0x7ab   :  { %8314 = vrcp.f32 %v4246_v41  ;;  %v9618_v41 = vld [vmem:[#allocation7 + $0x4c] ss:$12 sps:$4 sm:$0xff]  }
 0x7ac   :  { %8316 = vrcp.f32 %v4253_v49  ;;  %v8137_v49 = vld [vmem:[#allocation7 + $0x50] ss:$12 sps:$4 sm:$0xff]  }
 0x7b5   :  { %v8315_v6 = vpop.eup %8314 }
 0x7b6   :  { %v4257_v11 = vmul.f32 %v8315_v6, %v4256_v50  ;;  %v8317_v14 = vpop.eup %8316  ;;  %v9625_v50 = vld [vmem:[#allocation7 + $0x64] ss:$12 sps:$4 sm:$0xff]   ;;  %v9628_v6 = vld [vmem:[#allocation7 + $0x60] ss:$12 sps:$4 sm:$0xff]  }
 0x7b7   :  { %v4260_v63 = vsub.f32 1.0, %v8317_v14  ;;  %v4262_v21 = vmul.f32 %v8317_v14, %v9365_v17  ;;  %v8084_v17 = vld [vmem:[#allocation8 + $0x38] ss:$12 sps:$4 sm:$0xff]   ;;  %v8145_v14 = vld [vmem:[#allocation7 + $0x80] ss:$12 sps:$4 sm:$0xff]  }
 0x7b8   :  { %v4258_v25 = vadd.f32 %v4257_v11, %v4000_v7  ;;  %v8141_v7 = vld [vmem:[#allocation7 + $0x68] ss:$12 sps:$4 sm:$0xff]  }
 0x7b9   :  { %v9631_v11 = vld [vmem:[#allocation7 + $0x7c] ss:$12 sps:$4 sm:$0xff]  }
 0x7ba   :  { %8318 = vtanh.f32 %v4258_v25  ;;  %v9634_v25 = vld [vmem:[#allocation7 + $0x78] ss:$12 sps:$4 sm:$0xff]  }
 0x7c4   :  { %v8319_v9 = vpop.eup %8318 }
 0x7c5   :  { %v4261_v23 = vmul.f32 %v8319_v9, %v4260_v63  ;;  %v9638_v63 = vld [vmem:[#allocation7 + $0x94] ss:$12 sps:$4 sm:$0xff]   ;;  %v9641_v9 = vld [vmem:[#allocation7 + $0x90] ss:$12 sps:$4 sm:$0xff]  }
 0x7c7   :  { %v9498_v56 = vadd.f32 %v4262_v21, %v4261_v23  ;;  %v8149_v23 = vld [vmem:[#allocation7 + $0x98] ss:$12 sps:$4 sm:$0xff]  }
 0x7c8   :  { %v9645_v21 = vld [vmem:[#allocation7 + $0xac] ss:$12 sps:$4 sm:$0xff]  }
 0x7c9   :  { %v9502_v60 = vpack.c.bf16 %v9498_v56, %v9498_v56 }
 0x7cb   :  { %4458 = vmatmul.mubr.bf16.vlgmr.msra.gmra.mrb[44].mxu0 %v9502_v60  ;;  %7524 = vmatmul.mubr.bf16.vlgmr.msra.gmra.mrb[64].mxu1 %v9502_v60 }
 0x7cc   :  { %4668 = vmatpush1.bf16.msra.mxu0 %v9367_v47  ;;  %7528 = vmatpush3.bf16.msra.mxu1 %v8082_v57  ;;  %v8085_v47 = vld [vmem:[#allocation8 + $0x50] ss:$12 sps:$4 sm:$0xff]   ;;  %v9648_v57 = vld [vmem:[#allocation7 + $0xa8] ss:$12 sps:$4 sm:$0xff]  }
 0x7cd   :  { %4669 = vmatprep.subr.bf16.mxu0 %v9373_v62  ;;  %7529 = vmatprep.subr.bf16.mxu1 %v8541_v0  ;;  %v8086_v62 = vld [vmem:[#allocation8 + $0x68] ss:$12 sps:$4 sm:$0xff]  }
 0x7ce   :  { %4699 = vmatprep.mubr.bf16.mxu0 %v8542_v1  ;;  %7543 = vmatprep.mubr.msk.bf16.mxu1 %vm8543_vm0, %v8541_v0 }
 0x7d0   :  { %4670 = vmatpush1.bf16.msra.mxu0 %v9378_v10  ;;  %7530 = vmatpush3.bf16.msra.mxu1 %v8083_v4  ;;  %v8087_v10 = vld [vmem:[#allocation8 + $0x80] ss:$12 sps:$4 sm:$0xff]   ;;  %v9652_v4 = vld [vmem:[#allocation8 + $0x4] ss:$12 sps:$4 sm:$0xff]  }
 0x7d1   :  { %4671 = vmatprep.subr.bf16.mxu0 %v9382_v16  ;;  %7531 = vmatprep.subr.bf16.mxu1 %v8541_v0  ;;  %v8088_v16 = vld [vmem:[#allocation8 + $0x98] ss:$12 sps:$4 sm:$0xff]  }
 0x7d4   :  { %4672 = vmatpush1.bf16.msra.mxu0 %v9388_v8  ;;  %7532 = vmatpush3.bf16.msra.mxu1 %v8084_v17  ;;  %v8089_v8 = vld [vmem:[#allocation8 + $0xb0] ss:$12 sps:$4 sm:$0xff]  }
 0x7d5   :  { %4673 = vmatprep.subr.bf16.mxu0 %v9392_v12  ;;  %7533 = vmatprep.subr.bf16.mxu1 %v8541_v0  ;;  %v9530_v12 = vld [vmem:[#allocation5 + $0x4] ss:$12 sps:$4 sm:$0xff]  }
 0x7d8   :  { %4674 = vmatpush1.bf16.msra.mxu0 %v9395_v15  ;;  %7534 = vmatpush3.bf16.msra.mxu1 %v8085_v47  ;;  %v9533_v15 = vld [vmem:[#allocation5] ss:$12 sps:$4 sm:$0xff]  }
 0x7d9   :  { %4675 = vmatprep.subr.bf16.mxu0 %v9399_v44  ;;  %7535 = vmatprep.subr.bf16.mxu1 %v8541_v0  ;;  %v8093_v44 = vld [vmem:[#allocation5 + $0x8] ss:$12 sps:$4 sm:$0xff]  }
 0x7dc   :  { %4676 = vmatpush1.bf16.msra.mxu0 %v9402_v5  ;;  %7536 = vmatpush3.bf16.msra.mxu1 %v8086_v62  ;;  %v4506_v5 = vpack.c.bf16 %v9493_v32, %v9493_v32 }
 0x7dd   :  { %4677 = vmatprep.subr.bf16.mxu0 %v9406_v33  ;;  %7537 = vmatprep.subr.bf16.mxu1 %v8541_v0  ;;  %v9539_v33 = vld [vmem:[#allocation5 + $0x1c] ss:$12 sps:$4 sm:$0xff]  }
 0x7e0   :  { %4678 = vmatpush1.bf16.msra.mxu0 %v9409_v54  ;;  %7538 = vmatpush3.bf16.msra.mxu1 %v8087_v10  ;;  %v9542_v54 = vld [vmem:[#allocation5 + $0x18] ss:$12 sps:$4 sm:$0xff]  }
 0x7e1   :  { %4679 = vmatprep.subr.bf16.mxu0 %v9413_v59  ;;  %7539 = vmatprep.subr.bf16.mxu1 %v8541_v0  ;;  %v8097_v59 = vld [vmem:[#allocation5 + $0x20] ss:$12 sps:$4 sm:$0xff]  }
 0x7e4   :  { %4680 = vmatpush1.bf16.msra.mxu0 %v9416_v46  ;;  %7540 = vmatpush3.bf16.msra.mxu1 %v8088_v16  ;;  %v9546_v46 = vld [vmem:[#allocation5 + $0x34] ss:$12 sps:$4 sm:$0xff]  }
 0x7e5   :  { %4681 = vmatprep.subr.bf16.mxu0 %v9420_v37  ;;  %7541 = vmatprep.subr.bf16.mxu1 %v8541_v0  ;;  %v9552_v37 = vld [vmem:[#allocation5 + $0x30] ss:$12 sps:$4 sm:$0xff]  }
 0x7e8   :  { %4682 = vmatpush1.bf16.msra.mxu0 %v9423_v48  ;;  %7542 = vmatpush3.bf16.msra.mxu1 %v8089_v8  ;;  %v8101_v48 = vld [vmem:[#allocation5 + $0x38] ss:$12 sps:$4 sm:$0xff]  }
 0x7e9   :  { %4936 = vmatprep.subr.bf16.mxu0 %v9530_v12  ;;  %7547 = vmatprep.subr.bf16.mxu1 %v8541_v0 }
 0x7eb   :  { %4700 = vmatmul.mubr.bf16.vlgmr.msra.gmra.mrb[44].mxu0 %v4506_v5  ;;  %7544 = vmatmul.mubr.bf16.vlgmr.msra.gmra.mrb[68].mxu1 %v4506_v5 }
 0x7ec   :  { %4937 = vmatpush1.bf16.msra.mxu0 %v9533_v15  ;;  %7548 = vmatpush3.bf16.msra.mxu1 %v8093_v44 }
 0x7ed   :  { %4938 = vmatprep.subr.bf16.mxu0 %v9539_v33  ;;  %7549 = vmatprep.subr.bf16.mxu1 %v8541_v0 }
 0x7ee   :  { %4968 = vmatprep.mubr.bf16.mxu0 %v8542_v1  ;;  %7563 = vmatprep.mubr.msk.bf16.mxu1 %vm8543_vm0, %v8541_v0 }
 0x7f0   :  { %4939 = vmatpush1.bf16.msra.mxu0 %v9542_v54  ;;  %7550 = vmatpush3.bf16.msra.mxu1 %v8097_v59 }
 0x7f1   :  { %4940 = vmatprep.subr.bf16.mxu0 %v9546_v46  ;;  %7551 = vmatprep.subr.bf16.mxu1 %v8541_v0 }
 0x7f4   :  { %4941 = vmatpush1.bf16.msra.mxu0 %v9552_v37  ;;  %7552 = vmatpush3.bf16.msra.mxu1 %v8101_v48 }
 0x7f5   :  { %4942 = vmatprep.subr.bf16.mxu0 %v9556_v31  ;;  %7553 = vmatprep.subr.bf16.mxu1 %v8541_v0 }
 0x7f8   :  { %4943 = vmatpush1.bf16.msra.mxu0 %v9559_v27  ;;  %7554 = vmatpush3.bf16.msra.mxu1 %v8105_v61 }
 0x7f9   :  { %4944 = vmatprep.subr.bf16.mxu0 %v9563_v51  ;;  %7555 = vmatprep.subr.bf16.mxu1 %v8541_v0 }
 0x7fc   :  { %4945 = vmatpush1.bf16.msra.mxu0 %v9566_v22  ;;  %7556 = vmatpush3.bf16.msra.mxu1 %v8109_v26 }
 0x7fd   :  { %4946 = vmatprep.subr.bf16.mxu0 %v9570_v30  ;;  %7557 = vmatprep.subr.bf16.mxu1 %v8541_v0 }
 0x800   :  { %4947 = vmatpush1.bf16.msra.mxu0 %v9573_v29  ;;  %7558 = vmatpush3.bf16.msra.mxu1 %v8113_v34 }
 0x801   :  { %4948 = vmatprep.subr.bf16.mxu0 %v9577_v40  ;;  %7559 = vmatprep.subr.bf16.mxu1 %v8541_v0 }
 0x804   :  { %4949 = vmatpush1.bf16.msra.mxu0 %v9580_v52  ;;  %7560 = vmatpush3.bf16.msra.mxu1 %v8117_v38 }
 0x805   :  { %4950 = vmatprep.subr.bf16.mxu0 %v9584_v3  ;;  %7561 = vmatprep.subr.bf16.mxu1 %v8541_v0 }
 0x808   :  { %4951 = vmatpush1.bf16.msra.mxu0 %v9587_v18  ;;  %7562 = vmatpush3.bf16.msra.mxu1 %v8121_v36 }
 0x809   :  { %7567 = vmatprep.subr.bf16.mxu1 %v8541_v0  ;;  %5200 = vmatprep.subr.bf16.mxu0 %v9598_v39 }
 0x80b   :  { %4969 = vmatmul.mubr.bf16.vlgmr.msra.gmra.mrb[48].mxu0 %v9502_v60  ;;  %7564 = vmatmul.mubr.bf16.vlgmr.msra.gmra.mrb[72].mxu1 %v9502_v60  ;;  %v8153_v60 = vld [vmem:[#allocation7 + $0xb0] ss:$12 sps:$4 sm:$0xff]  }
 0x80c   :  { %5232 = vmatprep.mubr.bf16.mxu0 %v8542_v1  ;;  %7583 = vmatprep.mubr.msk.bf16.mxu1 %vm8543_vm0, %v8541_v0 }
 0x80d   :  { %5201 = vmatpush1.bf16.msra.mxu0 %v9600_v42  ;;  %7568 = vmatpush3.bf16.msra.mxu1 %v8125_v55 }
 0x80e   :  { %7569 = vmatprep.subr.bf16.mxu1 %v8541_v0  ;;  %5202 = vmatprep.subr.bf16.mxu0 %v9604_v58 }
 0x811   :  { %5203 = vmatpush1.bf16.msra.mxu0 %v9607_v45  ;;  %7570 = vmatpush3.bf16.msra.mxu1 %v8129_v53 }
 0x812   :  { %7571 = vmatprep.subr.bf16.mxu1 %v8541_v0  ;;  %5204 = vmatprep.subr.bf16.mxu0 %v9611_v28 }
 0x815   :  { %5205 = vmatpush1.bf16.msra.mxu0 %v9614_v19  ;;  %7572 = vmatpush3.bf16.msra.mxu1 %v8133_v35 }
 0x816   :  { %7573 = vmatprep.subr.bf16.mxu1 %v8541_v0  ;;  %5206 = vmatprep.subr.bf16.mxu0 %v9618_v41 }
 0x819   :  { %5207 = vmatpush1.bf16.msra.mxu0 %v9621_v43  ;;  %7574 = vmatpush3.bf16.msra.mxu1 %v8137_v49 }
 0x81a   :  { %7575 = vmatprep.subr.bf16.mxu1 %v8541_v0  ;;  %5208 = vmatprep.subr.bf16.mxu0 %v9625_v50 }
 0x81d   :  { %5209 = vmatpush1.bf16.msra.mxu0 %v9628_v6  ;;  %7576 = vmatpush3.bf16.msra.mxu1 %v8141_v7 }
 0x81e   :  { %5210 = vmatprep.subr.bf16.mxu0 %v9631_v11  ;;  %7577 = vmatprep.subr.bf16.mxu1 %v8541_v0 }
 0x821   :  { %5211 = vmatpush1.bf16.msra.mxu0 %v9634_v25  ;;  %7578 = vmatpush3.bf16.msra.mxu1 %v8145_v14 }
 0x822   :  { %5212 = vmatprep.subr.bf16.mxu0 %v9638_v63  ;;  %7579 = vmatprep.subr.bf16.mxu1 %v8541_v0 }
 0x825   :  { %5213 = vmatpush1.bf16.msra.mxu0 %v9641_v9  ;;  %7580 = vmatpush3.bf16.msra.mxu1 %v8149_v23 }
 0x826   :  { %5214 = vmatprep.subr.bf16.mxu0 %v9645_v21  ;;  %7581 = vmatprep.subr.bf16.mxu1 %v8541_v0 }
 0x829   :  { %5215 = vmatpush1.bf16.msra.mxu0 %v9648_v57  ;;  %7582 = vmatpush3.bf16.msra.mxu1 %v8153_v60 }
 0x82a   :  { %5442 = vmatprep.subr.bf16.mxu0 %v9652_v4  ;;  %7587 = vmatprep.subr.bf16.mxu1 %v8541_v0 }
 0x89e   :  { %v4500_v17 = vpop.f32.mrb[64].mxu1 }
 0x89f   :  { %v7525_v47 = vpop.f32.mrb[65].mxu1  ;;  %v4501_v60 = vadd.f32 %v4500_v17, %v8874_v20 }
 0x8a0   :  { %v4503_v62 = vpop.f32.mrb[66].mxu1 }
 0x8a1   :  { %v7526_v10 = vpop.f32.mrb[67].mxu1  ;;  %v4773_v62 = vld [vmem:[#allocation2 + $0x90] sm:$0xff] }
 0x8be   :  { %v4701_v16 = vpop.f32.mrb[44].mxu0  ;;  %v4742_v8 = vpop.f32.mrb[68].mxu1 }
 0x8bf   :  { %v7677_v44 = vadd.f32 %v4701_v16, %v8863_v24  ;;  %v4703_v5 = vpop.f32.mrb[45].mxu0  ;;  %v7545_v59 = vpop.f32.mrb[69].mxu1  ;;  %v4762_v14 = vadd.f32 %v9355_v13, %v4742_v8 }
 0x8c0   :  { %v4705_v48 = vpop.f32.mrb[46].mxu0  ;;  %v4745_v61 = vpop.f32.mrb[70].mxu1  ;;  %v7678_v36 = vadd.f32 %v4703_v5, %v8865_v2  ;;  %v4774_v59 = vld [vmem:[#allocation2 + $0x98] sm:$0xff] }
 0x8c1   :  { %v6817_v26 = vmul.f32 -1.442695, %v7677_v44  ;;  %v4706_v34 = vpop.f32.mrb[47].mxu0  ;;  %v7546_v38 = vpop.f32.mrb[71].mxu1 }
 0x8c2   :  { %v6818_v55 = vmul.f32 -1.442695, %v7678_v36 }
 0x8c3   :  { %8320 = vpow2.f32 %v6817_v26 }
 0x8c4   :  { %8322 = vpow2.f32 %v6818_v55 }
 0x8cd   :  { %v8321_v53 = vpop.eup %8320 }
 0x8ce   :  { %v4752_v35 = vadd.f32 1.0, %v8321_v53  ;;  %v8323_v49 = vpop.eup %8322 }
 0x8cf   :  { %v4759_v7 = vadd.f32 1.0, %v8323_v49 }
 0x8d0   :  { %8324 = vrcp.f32 %v4752_v35 }
 0x8d1   :  { %8326 = vrcp.f32 %v4759_v7 }
 0x8da   :  { %v8325_v23 = vpop.eup %8324 }
 0x8db   :  { %v4763_v47 = vmul.f32 %v8325_v23, %v4762_v14  ;;  %v8327_v8 = vpop.eup %8326 }
 0x8dc   :  { %v4766_v53 = vsub.f32 1.0, %v8327_v8  ;;  %v4768_v7 = vmul.f32 %v8327_v8, %v9493_v32  ;;  %v8157_v8 = vld [vmem:[#allocation8 + $0x8] ss:$12 sps:$4 sm:$0xff]  }
 0x8dd   :  { %v4764_v10 = vadd.f32 %v4763_v47, %v4501_v60 }
 0x8de   :  { %v4970_v16 = vpop.f32.mrb[48].mxu0  ;;  %v5011_v44 = vpop.f32.mrb[72].mxu1 }
 0x8df   :  { %8328 = vtanh.f32 %v4764_v10  ;;  %v5017_v5 = vadd.f32 %v4970_v16, %v4773_v62  ;;  %v4972_v48 = vpop.f32.mrb[49].mxu0  ;;  %v7565_v61 = vpop.f32.mrb[73].mxu1  ;;  %v9668_v10 = vld [vmem:[%s9875_s2] ss:$0 sm:$0xff] }
 0x8e0   :  { %v4974_v26 = vpop.f32.mrb[50].mxu0  ;;  %v5014_v34 = vpop.f32.mrb[74].mxu1  ;;  %v5024_v13 = vadd.f32 %v4972_v48, %v4774_v59  ;;  %v5031_v16 = vadd.f32 %v9668_v10, %v5011_v44  ;;  %v4775_v59 = vld [vmem:[#allocation2 + $0xa0] sm:$0xff] }
 0x8e1   :  { %v6843_v38 = vmul.f32 -1.442695, %v5017_v5  ;;  %v4975_v36 = vpop.f32.mrb[51].mxu0  ;;  %v7566_v55 = vpop.f32.mrb[75].mxu1 }
 0x8e2   :  { %v6844_v17 = vmul.f32 -1.442695, %v5024_v13  ;;  %v9674_v13 = vld [vmem:[#allocation8] ss:$12 sps:$4 sm:$0xff]  }
 0x8e3   :  { %8330 = vpow2.f32 %v6843_v38 }
 0x8e4   :  { %8332 = vpow2.f32 %v6844_v17  ;;  %v9680_v17 = vld [vmem:[#allocation8 + $0x1c] ss:$12 sps:$4 sm:$0xff]  }
 0x8e9   :  { %v8329_v35 = vpop.eup %8328 }
 0x8ea   :  { %v4767_v49 = vmul.f32 %v8329_v35, %v4766_v53  ;;  %v9685_v53 = vld [vmem:[#allocation8 + $0x18] ss:$12 sps:$4 sm:$0xff]   ;;  %v9689_v35 = vld [vmem:[#allocation8 + $0x34] ss:$12 sps:$4 sm:$0xff]  }
 0x8ec   :  { %v9662_v14 = vadd.f32 %v4768_v7, %v4767_v49  ;;  %v9695_v49 = vld [vmem:[#allocation8 + $0x30] ss:$12 sps:$4 sm:$0xff]   ;;  %v8165_v7 = vld [vmem:[#allocation8 + $0x38] ss:$12 sps:$4 sm:$0xff]  }
 0x8ed   :  { %v8331_v23 = vpop.eup %8330 }
 0x8ee   :  { %v5021_v60 = vadd.f32 1.0, %v8331_v23  ;;  %4771 = vst [vmem:[#allocation10 + $0x28] sm:$0xff] %v9662_v14  ;;  %v8333_v47 = vpop.eup %8332  ;;  %v9699_v23 = vld [vmem:[#allocation8 + $0x4c] ss:$12 sps:$4 sm:$0xff]  }
 0x8ef   :  { %v5028_v62 = vadd.f32 1.0, %v8333_v47  ;;  %v8169_v47 = vld [vmem:[#allocation8 + $0x50] ss:$12 sps:$4 sm:$0xff]  }
 0x8f0   :  { %8334 = vrcp.f32 %v5021_v60  ;;  %v9702_v60 = vld [vmem:[#allocation8 + $0x48] ss:$12 sps:$4 sm:$0xff]  }
 0x8f1   :  { %8336 = vrcp.f32 %v5028_v62  ;;  %v9706_v62 = vld [vmem:[#allocation8 + $0x64] ss:$12 sps:$4 sm:$0xff]  }
 0x8fa   :  { %v8335_v5 = vpop.eup %8334 }
 0x8fb   :  { %v5032_v48 = vmul.f32 %v8335_v5, %v5031_v16  ;;  %v8337_v61 = vpop.eup %8336  ;;  %v9709_v16 = vld [vmem:[#allocation8 + $0x60] ss:$12 sps:$4 sm:$0xff]   ;;  %v8173_v5 = vld [vmem:[#allocation8 + $0x68] ss:$12 sps:$4 sm:$0xff]  }
 0x8fc   :  { %v5035_v26 = vsub.f32 1.0, %v8337_v61  ;;  %v5037_v36 = vmul.f32 %v8337_v61, %v9498_v56  ;;  %v8161_v56 = vld [vmem:[#allocation8 + $0x20] ss:$12 sps:$4 sm:$0xff]  }
 0x8fd   :  { %v5033_v32 = vadd.f32 %v5032_v48, %v4775_v59  ;;  %v9713_v59 = vld [vmem:[#allocation8 + $0x7c] ss:$12 sps:$4 sm:$0xff]   ;;  %v9716_v48 = vld [vmem:[#allocation8 + $0x78] ss:$12 sps:$4 sm:$0xff]   ;;  %v9720_v61 = vld [vmem:[#allocation8 + $0x94] ss:$12 sps:$4 sm:$0xff]  }
 0x8ff   :  { %8338 = vtanh.f32 %v5033_v32  ;;  %v8177_v32 = vld [vmem:[#allocation8 + $0x80] ss:$12 sps:$4 sm:$0xff]  }
 0x909   :  { %v8339_v34 = vpop.eup %8338 }
 0x90a   :  { %v5036_v38 = vmul.f32 %v8339_v34, %v5035_v26  ;;  %v9723_v26 = vld [vmem:[#allocation8 + $0x90] ss:$12 sps:$4 sm:$0xff]   ;;  %v8181_v34 = vld [vmem:[#allocation8 + $0x98] ss:$12 sps:$4 sm:$0xff]  }
 0x90c   :  { %v9672_v55 = vadd.f32 %v5037_v36, %v5036_v38  ;;  %v9727_v38 = vld [vmem:[#allocation8 + $0xac] ss:$12 sps:$4 sm:$0xff]   ;;  %v9730_v36 = vld [vmem:[#allocation8 + $0xa8] ss:$12 sps:$4 sm:$0xff]  }
 0x90e   :  { %v9678_v44 = vpack.c.bf16 %v9672_v55, %v9672_v55 }
 0x910   :  { %5233 = vmatmul.mubr.bf16.vlgmr.msra.gmra.mrb[52].mxu0 %v9678_v44  ;;  %7584 = vmatmul.mubr.bf16.vlgmr.msra.gmra.mrb[76].mxu1 %v9678_v44 }
 0x911   :  { %5443 = vmatpush1.bf16.msra.mxu0 %v9674_v13  ;;  %7588 = vmatpush3.bf16.msra.mxu1 %v8157_v8  ;;  %v8185_v8 = vld [vmem:[#allocation8 + $0xb0] ss:$12 sps:$4 sm:$0xff]  }
 0x912   :  { %5444 = vmatprep.subr.bf16.mxu0 %v9680_v17  ;;  %7589 = vmatprep.subr.bf16.mxu1 %v8541_v0 }
 0x913   :  { %5474 = vmatprep.mubr.bf16.mxu0 %v8542_v1  ;;  %7603 = vmatprep.mubr.msk.bf16.mxu1 %vm8543_vm0, %v8541_v0 }
 0x915   :  { %5445 = vmatpush1.bf16.msra.mxu0 %v9685_v53  ;;  %7590 = vmatpush3.bf16.msra.mxu1 %v8161_v56  ;;  %v8186_v56 = vld [vmem:[#allocation5 + $0x8] ss:$12 sps:$4 sm:$0xff]  }
 0x916   :  { %5446 = vmatprep.subr.bf16.mxu0 %v9689_v35  ;;  %7591 = vmatprep.subr.bf16.mxu1 %v8541_v0 }
 0x919   :  { %5447 = vmatpush1.bf16.msra.mxu0 %v9695_v49  ;;  %7592 = vmatpush3.bf16.msra.mxu1 %v8165_v7  ;;  %v5281_v7 = vpack.c.bf16 %v9662_v14, %v9662_v14 }
 0x91a   :  { %5448 = vmatprep.subr.bf16.mxu0 %v9699_v23  ;;  %7593 = vmatprep.subr.bf16.mxu1 %v8541_v0 }
 0x91d   :  { %5449 = vmatpush1.bf16.msra.mxu0 %v9702_v60  ;;  %7594 = vmatpush3.bf16.msra.mxu1 %v8169_v47  ;;  %v8187_v47 = vld [vmem:[#allocation5 + $0x20] ss:$12 sps:$4 sm:$0xff]  }
 0x91e   :  { %5450 = vmatprep.subr.bf16.mxu0 %v9706_v62  ;;  %7595 = vmatprep.subr.bf16.mxu1 %v8541_v0 }
 0x921   :  { %5451 = vmatpush1.bf16.msra.mxu0 %v9709_v16  ;;  %7596 = vmatpush3.bf16.msra.mxu1 %v8173_v5  ;;  %v9800_v5 = vld [vmem:[%s9879_s6] ss:$0 sm:$0xff]  ;;  %s8544_s6 = smov [#allocation10]  }
 0x922   :  { %5452 = vmatprep.subr.bf16.mxu0 %v9713_v59  ;;  %7597 = vmatprep.subr.bf16.mxu1 %v8541_v0  ;;  %s6330_s12 = sshll.u32 %s8544_s6, 4  ;;  %s6331_s12 = int_to_ptr.vmem [resolvable:$true] %s6330_s12 }
 0x923   :  { %s8479_s13 = scalar_lea.vmem %s6331_s12, 1024  ;;  %p8484_p5 = scmp.lt.s32.totalorder %s6331_s12, %s6331_s12 }
 0x924   :  { %p8480_p4 = scmp.ne.s32.totalorder %s6331_s12, %s8479_s13  ;;  %p8485_p6 = scmp.lt.s32.totalorder %s8479_s13, %s8479_s13 }
 0x925   :  { %5453 = vmatpush1.bf16.msra.mxu0 %v9716_v48  ;;  %7598 = vmatpush3.bf16.msra.mxu1 %v8177_v32 }
 0x926   :  { %5454 = vmatprep.subr.bf16.mxu0 %v9720_v61  ;;  %7599 = vmatprep.subr.bf16.mxu1 %v8541_v0  ;;  %p8486_p7 = por %p8485_p6, %p8484_p5 }
 0x928   :  { %p8487_p8 = pnand %p8486_p7, %p8480_p4 }
 0x929   :  { %5455 = vmatpush1.bf16.msra.mxu0 %v9723_v26  ;;  %7600 = vmatpush3.bf16.msra.mxu1 %v8181_v34 }
 0x92a   :  { %5456 = vmatprep.subr.bf16.mxu0 %v9727_v38  ;;  %7601 = vmatprep.subr.bf16.mxu1 %v8541_v0 }
 0x92d   :  { %5457 = vmatpush1.bf16.msra.mxu0 %v9730_v36  ;;  %7602 = vmatpush3.bf16.msra.mxu1 %v8185_v8 }
 0x92e   :  { %5711 = vmatprep.subr.bf16.mxu0 %v9530_v12  ;;  %7607 = vmatprep.subr.bf16.mxu1 %v8541_v0  ;;  %v8188_v12 = vld [vmem:[#allocation5 + $0x38] ss:$12 sps:$4 sm:$0xff]  }
 0x930   :  { %5475 = vmatmul.mubr.bf16.vlgmr.msra.gmra.mrb[52].mxu0 %v5281_v7  ;;  %7604 = vmatmul.mubr.bf16.vlgmr.msra.gmra.mrb[80].mxu1 %v5281_v7  ;;  %v5548_v7 = vld [vmem:[#allocation2 + $0xa8] sm:$0xff] }
 0x931   :  { %5712 = vmatpush1.bf16.msra.mxu0 %v9533_v15  ;;  %7608 = vmatpush3.bf16.msra.mxu1 %v8186_v56  ;;  %v8189_v15 = vld [vmem:[#allocation5 + $0x50] ss:$12 sps:$4 sm:$0xff]  }
 0x932   :  { %5713 = vmatprep.subr.bf16.mxu0 %v9539_v33  ;;  %7609 = vmatprep.subr.bf16.mxu1 %v8541_v0  ;;  %v8190_v33 = vld [vmem:[#allocation5 + $0x68] ss:$12 sps:$4 sm:$0xff]  }
 0x933   :  { %5743 = vmatprep.mubr.bf16.mxu0 %v8542_v1  ;;  %7623 = vmatprep.mubr.msk.bf16.mxu1 %vm8543_vm0, %v8541_v0 }
 0x935   :  { %5714 = vmatpush1.bf16.msra.mxu0 %v9542_v54  ;;  %7610 = vmatpush3.bf16.msra.mxu1 %v8187_v47  ;;  %v8191_v54 = vld [vmem:[#allocation5 + $0x80] ss:$12 sps:$4 sm:$0xff]  }
 0x936   :  { %5715 = vmatprep.subr.bf16.mxu0 %v9546_v46  ;;  %7611 = vmatprep.subr.bf16.mxu1 %v8541_v0  ;;  %v8192_v46 = vld [vmem:[#allocation5 + $0x98] ss:$12 sps:$4 sm:$0xff]  }
 0x939   :  { %5716 = vmatpush1.bf16.msra.mxu0 %v9552_v37  ;;  %7612 = vmatpush3.bf16.msra.mxu1 %v8188_v12  ;;  %v8193_v37 = vld [vmem:[#allocation5 + $0xb0] ss:$12 sps:$4 sm:$0xff]  }
 0x93a   :  { %5717 = vmatprep.subr.bf16.mxu0 %v9556_v31  ;;  %7613 = vmatprep.subr.bf16.mxu1 %v8541_v0  ;;  %v8194_v31 = vld [vmem:[#allocation7 + $0x8] ss:$12 sps:$4 sm:$0xff]  }
 0x93d   :  { %5718 = vmatpush1.bf16.msra.mxu0 %v9559_v27  ;;  %7614 = vmatpush3.bf16.msra.mxu1 %v8189_v15  ;;  %v8195_v27 = vld [vmem:[#allocation7 + $0x20] ss:$12 sps:$4 sm:$0xff]  }
 0x93e   :  { %5719 = vmatprep.subr.bf16.mxu0 %v9563_v51  ;;  %7615 = vmatprep.subr.bf16.mxu1 %v8541_v0  ;;  %v8196_v51 = vld [vmem:[#allocation7 + $0x38] ss:$12 sps:$4 sm:$0xff]  }
 0x941   :  { %5720 = vmatpush1.bf16.msra.mxu0 %v9566_v22  ;;  %7616 = vmatpush3.bf16.msra.mxu1 %v8190_v33  ;;  %v8197_v22 = vld [vmem:[#allocation7 + $0x50] ss:$12 sps:$4 sm:$0xff]  }
 0x942   :  { %5721 = vmatprep.subr.bf16.mxu0 %v9570_v30  ;;  %7617 = vmatprep.subr.bf16.mxu1 %v8541_v0  ;;  %v8198_v30 = vld [vmem:[#allocation7 + $0x68] ss:$12 sps:$4 sm:$0xff]  }
 0x945   :  { %5722 = vmatpush1.bf16.msra.mxu0 %v9573_v29  ;;  %7618 = vmatpush3.bf16.msra.mxu1 %v8191_v54  ;;  %v8199_v29 = vld [vmem:[#allocation7 + $0x80] ss:$12 sps:$4 sm:$0xff]   ;;  %v5549_v54 = vld [vmem:[#allocation2 + $0xb0] sm:$0xff] }
 0x946   :  { %5723 = vmatprep.subr.bf16.mxu0 %v9577_v40  ;;  %7619 = vmatprep.subr.bf16.mxu1 %v8541_v0  ;;  %v8200_v40 = vld [vmem:[#allocation7 + $0x98] ss:$12 sps:$4 sm:$0xff]  }
 0x949   :  { %5724 = vmatpush1.bf16.msra.mxu0 %v9580_v52  ;;  %7620 = vmatpush3.bf16.msra.mxu1 %v8192_v46  ;;  %v8201_v52 = vld [vmem:[#allocation7 + $0xb0] ss:$12 sps:$4 sm:$0xff]  }
 0x94a   :  { %5725 = vmatprep.subr.bf16.mxu0 %v9584_v3  ;;  %7621 = vmatprep.subr.bf16.mxu1 %v8541_v0 }
 0x94d   :  { %5726 = vmatpush1.bf16.msra.mxu0 %v9587_v18  ;;  %7622 = vmatpush3.bf16.msra.mxu1 %v8193_v37 }
 0x94e   :  { %5975 = vmatprep.subr.bf16.mxu0 %v9598_v39  ;;  %7627 = vmatprep.subr.bf16.mxu1 %v8541_v0 }
 0x950   :  { %5744 = vmatmul.mubr.bf16.vlgmr.msra.gmra.mrb[56].mxu0 %v9678_v44  ;;  %7624 = vmatmul.mubr.bf16.vlgmr.msra.gmra.mrb[84].mxu1 %v9678_v44 }
 0x951   :  { %5976 = vmatpush1.bf16.msra.mxu0 %v9600_v42  ;;  %6007 = vmatprep.mubr.bf16.mxu0 %v8542_v1 }
 0x952   :  { %5977 = vmatprep.subr.bf16.mxu0 %v9604_v58  ;;  %7643 = vmatprep.mubr.msk.bf16.mxu1 %vm8543_vm0, %v8541_v0 }
 0x953   :  { %7628 = vmatpush3.bf16.msra.mxu1 %v8194_v31 }
 0x954   :  { %7629 = vmatprep.subr.bf16.mxu1 %v8541_v0 }
 0x955   :  { %5978 = vmatpush1.bf16.msra.mxu0 %v9607_v45 }
 0x956   :  { %5979 = vmatprep.subr.bf16.mxu0 %v9611_v28 }
 0x957   :  { %7630 = vmatpush3.bf16.msra.mxu1 %v8195_v27 }
 0x958   :  { %7631 = vmatprep.subr.bf16.mxu1 %v8541_v0 }
 0x959   :  { %5980 = vmatpush1.bf16.msra.mxu0 %v9614_v19 }
 0x95a   :  { %5981 = vmatprep.subr.bf16.mxu0 %v9618_v41 }
 0x95b   :  { %7632 = vmatpush3.bf16.msra.mxu1 %v8196_v51 }
 0x95c   :  { %7633 = vmatprep.subr.bf16.mxu1 %v8541_v0 }
 0x95d   :  { %5982 = vmatpush1.bf16.msra.mxu0 %v9621_v43 }
 0x95e   :  { %5983 = vmatprep.subr.bf16.mxu0 %v9625_v50 }
 0x95f   :  { %7634 = vmatpush3.bf16.msra.mxu1 %v8197_v22 }
 0x960   :  { %7635 = vmatprep.subr.bf16.mxu1 %v8541_v0 }
 0x961   :  { %5984 = vmatpush1.bf16.msra.mxu0 %v9628_v6 }
 0x962   :  { %5985 = vmatprep.subr.bf16.mxu0 %v9631_v11 }
 0x963   :  { %7636 = vmatpush3.bf16.msra.mxu1 %v8198_v30 }
 0x964   :  { %7637 = vmatprep.subr.bf16.mxu1 %v8541_v0 }
 0x965   :  { %5986 = vmatpush1.bf16.msra.mxu0 %v9634_v25 }
 0x966   :  { %5987 = vmatprep.subr.bf16.mxu0 %v9638_v63 }
 0x967   :  { %7638 = vmatpush3.bf16.msra.mxu1 %v8199_v29 }
 0x968   :  { %7639 = vmatprep.subr.bf16.mxu1 %v8541_v0 }
 0x969   :  { %5988 = vmatpush1.bf16.msra.mxu0 %v9641_v9 }
 0x96a   :  { %5989 = vmatprep.subr.bf16.mxu0 %v9645_v21 }
 0x96b   :  { %7640 = vmatpush3.bf16.msra.mxu1 %v8200_v40 }
 0x96c   :  { %7641 = vmatprep.subr.bf16.mxu1 %v8541_v0 }
 0x96d   :  { %5990 = vmatpush1.bf16.msra.mxu0 %v9648_v57 }
 0x96e   :  { %6217 = vmatprep.subr.bf16.mxu0 %v9652_v4 }
 0x96f   :  { %7642 = vmatpush3.bf16.msra.mxu1 %v8201_v52 }
 0x970   :  { %7647 = vmatprep.subr.bf16.mxu1 %v8541_v0 }
 0x9e3   :  { %v5275_v3 = vpop.f32.mrb[76].mxu1 }
 0x9e4   :  { %v7585_v18 = vpop.f32.mrb[77].mxu1  ;;  %v5276_v8 = vadd.f32 %v5275_v3, %v8874_v20 }
 0x9e5   :  { %v5278_v39 = vpop.f32.mrb[78].mxu1 }
 0x9e6   :  { %v7586_v42 = vpop.f32.mrb[79].mxu1 }
 0xa03   :  { %v5476_v58 = vpop.f32.mrb[52].mxu0  ;;  %v5517_v45 = vpop.f32.mrb[80].mxu1 }
 0xa04   :  { %v7679_v28 = vadd.f32 %v5476_v58, %v8863_v24  ;;  %v5478_v19 = vpop.f32.mrb[53].mxu0  ;;  %v7605_v41 = vpop.f32.mrb[81].mxu1  ;;  %v5537_v32 = vadd.f32 %v9800_v5, %v5517_v45 }
 0xa05   :  { %v5480_v43 = vpop.f32.mrb[54].mxu0  ;;  %v5520_v50 = vpop.f32.mrb[82].mxu1  ;;  %v7680_v63 = vadd.f32 %v5478_v19, %v8865_v2 }
 0xa06   :  { %v6893_v6 = vmul.f32 -1.442695, %v7679_v28  ;;  %v5481_v11 = vpop.f32.mrb[55].mxu0  ;;  %v7606_v25 = vpop.f32.mrb[83].mxu1 }
 0xa07   :  { %v6894_v9 = vmul.f32 -1.442695, %v7680_v63 }
 0xa08   :  { %8340 = vpow2.f32 %v6893_v6  ;;  %v5550_v6 = vld [vmem:[#allocation2 + $0xb8] sm:$0xff] }
 0xa09   :  { %8342 = vpow2.f32 %v6894_v9 }
 0xa12   :  { %v8341_v21 = vpop.eup %8340 }
 0xa13   :  { %v5527_v57 = vadd.f32 1.0, %v8341_v21  ;;  %v8343_v4 = vpop.eup %8342 }
 0xa14   :  { %v5534_v44 = vadd.f32 1.0, %v8343_v4 }
 0xa15   :  { %8344 = vrcp.f32 %v5527_v57 }
 0xa16   :  { %8346 = vrcp.f32 %v5534_v44  ;;  %v8202_v44 = vld [vmem:[#allocation8 + $0x8] ss:$12 sps:$4 sm:$0xff]  }
 0xa1f   :  { %v8345_v34 = vpop.eup %8344 }
 0xa20   :  { %v5538_v56 = vmul.f32 %v8345_v34, %v5537_v32  ;;  %v8347_v40 = vpop.eup %8346 }
 0xa21   :  { %v5541_v3 = vsub.f32 1.0, %v8347_v40  ;;  %v5543_v42 = vmul.f32 %v8347_v40, %v9662_v14 }
 0xa22   :  { %v5539_v47 = vadd.f32 %v5538_v56, %v5276_v8 }
 0xa23   :  { %v5745_v12 = vpop.f32.mrb[56].mxu0  ;;  %v5786_v15 = vpop.f32.mrb[84].mxu1 }
 0xa24   :  { %8348 = vtanh.f32 %v5539_v47  ;;  %v5792_v33 = vadd.f32 %v5745_v12, %v5548_v7  ;;  %v5747_v46 = vpop.f32.mrb[57].mxu0  ;;  %v7625_v37 = vpop.f32.mrb[85].mxu1  ;;  %v5806_v43 = vadd.f32 %v9668_v10, %v5786_v15  ;;  %v8203_v10 = vld [vmem:[#allocation8 + $0x20] ss:$12 sps:$4 sm:$0xff]  }
 0xa25   :  { %v5749_v31 = vpop.f32.mrb[58].mxu0  ;;  %v5789_v27 = vpop.f32.mrb[86].mxu1  ;;  %v5799_v29 = vadd.f32 %v5747_v46, %v5549_v54 }
 0xa26   :  { %v6919_v51 = vmul.f32 -1.442695, %v5792_v33  ;;  %v5750_v22 = vpop.f32.mrb[59].mxu0  ;;  %v7626_v30 = vpop.f32.mrb[87].mxu1 }
 0xa27   :  { %v6920_v52 = vmul.f32 -1.442695, %v5799_v29 }
 0xa28   :  { %8350 = vpow2.f32 %v6919_v51 }
 0xa29   :  { %8352 = vpow2.f32 %v6920_v52 }
 0xa2e   :  { %v8349_v18 = vpop.eup %8348 }
 0xa2f   :  { %v5542_v39 = vmul.f32 %v8349_v18, %v5541_v3 }
 0xa31   :  { %v9805_v58 = vadd.f32 %v5543_v42, %v5542_v39 }
 0xa32   :  { %v8351_v45 = vpop.eup %8350 }
 0xa33   :  { %v5796_v28 = vadd.f32 1.0, %v8351_v45  ;;  %5546 = vst [vmem:[#allocation10 + $0x30] sm:$0xff] %v9805_v58  ;;  %v8353_v19 = vpop.eup %8352 }
 0xa34   :  { %v5803_v41 = vadd.f32 1.0, %v8353_v19 }
 0xa35   :  { %8354 = vrcp.f32 %v5796_v28 }
 0xa36   :  { %8356 = vrcp.f32 %v5803_v41 }
 0xa3f   :  { %v8355_v50 = vpop.eup %8354 }
 0xa40   :  { %v5807_v11 = vmul.f32 %v8355_v50, %v5806_v43  ;;  %v8357_v63 = vpop.eup %8356 }
 0xa41   :  { %v5810_v9 = vsub.f32 1.0, %v8357_v63  ;;  %v5812_v57 = vmul.f32 %v8357_v63, %v9672_v55  ;;  %v8204_v55 = vld [vmem:[#allocation8 + $0x38] ss:$12 sps:$4 sm:$0xff]  }
 0xa42   :  { %v5808_v25 = vadd.f32 %v5807_v11, %v5550_v6 }
 0xa44   :  { %8358 = vtanh.f32 %v5808_v25 }
 0xa4e   :  { %v8359_v14 = vpop.eup %8358 }
 0xa4f   :  { %v5811_v21 = vmul.f32 %v8359_v14, %v5810_v9 }
 0xa51   :  { %v5813_v4 = vadd.f32 %v5812_v57, %v5811_v21 }
 0xa53   :  { %v5814_v32 = vpack.c.bf16 %v5813_v4, %v5813_v4  ;;  %6322 = vst [vmem:[#allocation11] sm:$0xff] %v5813_v4 }
 0xa55   :  { %6008 = vmatmul.mubr.bf16.vlgmr.msra.gmra.mrb[60].mxu0 %v5814_v32  ;;  %7644 = vmatmul.mubr.bf16.vlgmr.msra.gmra.mrb[88].mxu1 %v5814_v32 }
 0xa56   :  { %6218 = vmatpush1.bf16.msra.mxu0 %v9674_v13  ;;  %7648 = vmatpush3.bf16.msra.mxu1 %v8202_v44  ;;  %v8205_v13 = vld [vmem:[#allocation8 + $0x50] ss:$12 sps:$4 sm:$0xff]  }
 0xa57   :  { %6219 = vmatprep.subr.bf16.mxu0 %v9680_v17  ;;  %7649 = vmatprep.subr.bf16.mxu1 %v8541_v0  ;;  %v8207_v17 = vld [vmem:[#allocation8 + $0x80] ss:$12 sps:$4 sm:$0xff]  }
 0xa58   :  { %6249 = vmatprep.mubr.bf16.mxu0 %v8542_v1  ;;  %7663 = vmatprep.mubr.msk.bf16.mxu1 %vm8543_vm0, %v8541_v0  ;;  %v8206_v1 = vld [vmem:[#allocation8 + $0x68] ss:$12 sps:$4 sm:$0xff]  }
 0xa5a   :  { %6220 = vmatpush1.bf16.msra.mxu0 %v9685_v53  ;;  %7650 = vmatpush3.bf16.msra.mxu1 %v8203_v10  ;;  %v8208_v53 = vld [vmem:[#allocation8 + $0x98] ss:$12 sps:$4 sm:$0xff]  }
 0xa5b   :  { %6221 = vmatprep.subr.bf16.mxu0 %v9689_v35  ;;  %7651 = vmatprep.subr.bf16.mxu1 %v8541_v0  ;;  %v8209_v35 = vld [vmem:[#allocation8 + $0xb0] ss:$12 sps:$4 sm:$0xff]  }
 0xa5e   :  { %6222 = vmatpush1.bf16.msra.mxu0 %v9695_v49  ;;  %7652 = vmatpush3.bf16.msra.mxu1 %v8204_v55  ;;  %v6056_v49 = vpack.c.bf16 %v9805_v58, %v9805_v58 }
 0xa5f   :  { %6223 = vmatprep.subr.bf16.mxu0 %v9699_v23  ;;  %7653 = vmatprep.subr.bf16.mxu1 %v8541_v0 }
 0xa62   :  { %6224 = vmatpush1.bf16.msra.mxu0 %v9702_v60  ;;  %7654 = vmatpush3.bf16.msra.mxu1 %v8205_v13 }
 0xa63   :  { %6225 = vmatprep.subr.bf16.mxu0 %v9706_v62  ;;  %7655 = vmatprep.subr.bf16.mxu1 %v8541_v0 }
 0xa66   :  { %6226 = vmatpush1.bf16.msra.mxu0 %v9709_v16  ;;  %7656 = vmatpush3.bf16.msra.mxu1 %v8206_v1 }
 0xa67   :  { %6227 = vmatprep.subr.bf16.mxu0 %v9713_v59  ;;  %7657 = vmatprep.subr.bf16.mxu1 %v8541_v0 }
 0xa6a   :  { %6228 = vmatpush1.bf16.msra.mxu0 %v9716_v48  ;;  %7658 = vmatpush3.bf16.msra.mxu1 %v8207_v17 }
 0xa6b   :  { %6229 = vmatprep.subr.bf16.mxu0 %v9720_v61  ;;  %7659 = vmatprep.subr.bf16.mxu1 %v8541_v0 }
 0xa6e   :  { %6230 = vmatpush1.bf16.msra.mxu0 %v9723_v26  ;;  %7660 = vmatpush3.bf16.msra.mxu1 %v8208_v53 }
 0xa6f   :  { %6231 = vmatprep.subr.bf16.mxu0 %v9727_v38  ;;  %7661 = vmatprep.subr.bf16.mxu1 %v8541_v0 }
 0xa72   :  { %6232 = vmatpush1.bf16.msra.mxu0 %v9730_v36  ;;  %7662 = vmatpush3.bf16.msra.mxu1 %v8209_v35 }
 0xa75   :  { %6250 = vmatmul.mubr.bf16.vlgmr.msra.gmra.mrb[60].mxu0 %v6056_v49  ;;  %7664 = vmatmul.mubr.bf16.vlgmr.msra.gmra.mrb[92].mxu1 %v6056_v49 }
 0xb28   :  { %v6050_v23 = vpop.f32.mrb[88].mxu1 }
 0xb29   :  { %v7645_v60 = vpop.f32.mrb[89].mxu1  ;;  %v6051_v37 = vadd.f32 %v6050_v23, %v8874_v20 }
 0xb2a   :  { %v6053_v62 = vpop.f32.mrb[90].mxu1 }
 0xb2b   :  { %v7646_v16 = vpop.f32.mrb[91].mxu1 }
 0xb48   :  { %v6251_v59 = vpop.f32.mrb[60].mxu0  ;;  %v6292_v48 = vpop.f32.mrb[92].mxu1 }
 0xb49   :  { %v7681_v61 = vadd.f32 %v6251_v59, %v8863_v24  ;;  %v6253_v26 = vpop.f32.mrb[61].mxu0  ;;  %v7665_v38 = vpop.f32.mrb[93].mxu1  ;;  %v6312_v46 = vadd.f32 %v9800_v5, %v6292_v48 }
 0xb4a   :  { %v6255_v34 = vpop.f32.mrb[62].mxu0  ;;  %v6295_v0 = vpop.f32.mrb[94].mxu1  ;;  %v7682_v7 = vadd.f32 %v6253_v26, %v8865_v2 }
 0xb4b   :  { %v6969_v8 = vmul.f32 -1.442695, %v7681_v61  ;;  %v6256_v36 = vpop.f32.mrb[63].mxu0  ;;  %v7666_v56 = vpop.f32.mrb[95].mxu1 }
 0xb4c   :  { %v6970_v47 = vmul.f32 -1.442695, %v7682_v7 }
 0xb4d   :  { %8360 = vpow2.f32 %v6969_v8 }
 0xb4e   :  { %8362 = vpow2.f32 %v6970_v47 }
 0xb57   :  { %v8361_v12 = vpop.eup %8360 }
 0xb58   :  { %v6302_v15 = vadd.f32 1.0, %v8361_v12  ;;  %v8363_v33 = vpop.eup %8362 }
 0xb59   :  { %v6309_v54 = vadd.f32 1.0, %v8363_v33 }
 0xb5a   :  { %8364 = vrcp.f32 %v6302_v15 }
 0xb5b   :  { %8366 = vrcp.f32 %v6309_v54 }
 0xb64   :  { %v8365_v24 = vpop.eup %8364 }
 0xb65   :  { %v6313_v31 = vmul.f32 %v8365_v24, %v6312_v46  ;;  %v8367_v51 = vpop.eup %8366 }
 0xb66   :  { %v6316_v22 = vsub.f32 1.0, %v8367_v51  ;;  %v6318_v29 = vmul.f32 %v8367_v51, %v9805_v58 }
 0xb67   :  { %v6314_v27 = vadd.f32 %v6313_v31, %v6051_v37 }
 0xb69   :  { %8368 = vtanh.f32 %v6314_v27 }
 0xb73   :  { %v8369_v2 = vpop.eup %8368 }
 0xb74   :  { %v6317_v30 = vmul.f32 %v8369_v2, %v6316_v22 }
 0xb76   :  { %v6319_v40 = vadd.f32 %v6318_v29, %v6317_v30 }
 0xb78   :  { %6321 = vst [vmem:[#allocation10 + $0x38] sm:$0xff] %v6319_v40  ;;  %6324 = vst [vmem:[#allocation11 + $0x8] sm:$0xff] %v6319_v40 }
 0xb79   :  { %8490 = shalt.err (!%p8487_p8)
}
 0xb7a   :  { %s8491_s3 = scalar_lea.hbm %s9881_s8, 1024 }
 0xb7b   :  { %p8492_p9 = scmp.ne.s32.totalorder %s9881_s8, %s8491_s3  ;;  %p8495_p10 = scmp.lt.u32.totalorder %s8491_s3, %s9881_s8 }
 0xb7d   :  { %p8497_p11 = pnand %p8495_p10, %p8492_p9 }
 0xb7f   :  { %8500 = shalt.err (!%p8497_p11)
}
 0xb80   :  { %s8546_s17 = smov 128   ;;  %s8547_s18 = smov 8  }
 0xb81   :  { %6336 = dma.vmem_to_hbm [thread:$0]  %s6331_s12, 1024, %s9881_s8, [#allocation4], %s8546_s17, %s8546_s17, %s8547_s18  }
 0xb82   :  { %s8501_s23 = scalar_lea.vmem %s9842_s10, 256  ;;  %p8506_p13 = scmp.lt.s32.totalorder %s9842_s10, %s9842_s10 }
 0xb83   :  { %p8502_p12 = scmp.ne.s32.totalorder %s9842_s10, %s8501_s23  ;;  %p8507_p0 = scmp.lt.s32.totalorder %s8501_s23, %s8501_s23 }
 0xb85   :  { %p8508_p1 = por %p8507_p0, %p8506_p13 }
 0xb87   :  { %p8509_p2 = pnand %p8508_p1, %p8502_p12 }
 0xb89   :  { %8512 = shalt.err (!%p8509_p2)
}
 0xb8a   :  { %s8513_s4 = scalar_lea.hbm %s9882_s9, 256 }
 0xb8b   :  { %p8514_p3 = scmp.ne.s32.totalorder %s9882_s9, %s8513_s4  ;;  %p8517_p4 = scmp.lt.u32.totalorder %s8513_s4, %s9882_s9 }
 0xb8d   :  { %p8519_p5 = pnand %p8517_p4, %p8514_p3 }
 0xb8f   :  { %8522 = shalt.err (!%p8519_p5)
}
 0xb90   :  { %6348 = dma.vmem_to_hbm [thread:$0]  %s9842_s10, 256, %s9882_s9, [#allocation12], %s8546_s17, %s8546_s17, %s8547_s18  }
 0xb91   :  { %8529 = dma.done.wait [#allocation4], 1024  }
 0xb92   :  { %8530 = vsyncadd [#allocation4], 4294966272 }
 0xb93   :  { %8531 = dma.done.wait [#allocation12], 256  }
 0xb94   :  { %8532 = vsyncadd [#allocation12], 4294967040 }
 0xb95   :  { %6355 = vsyncpa [#allocation3], 1 }
 0xb96   :  { %6356 = vsyncpa [#allocation6], 1 }
 0xb97   :  { %6357 = vsyncpa [#allocation9], 1 }
 0xb98   :  { %6358 = vsyncpa [#allocation4], 1 }
 0xb99   :  { %6359 = vsyncpa [#allocation12], 1 }

</bundles_post_ra>
